<compile_context>
chip_gen: v7x
topology: tpu7x:2x2x1
jax: 0.10.0
libtpu: 0.0.40
codegen_flags: <defaults>
</compile_context>

<pallas_src>
import functools

import jax
import jax.numpy as jnp
from jax.experimental import pallas as pl
from jax.experimental.pallas import tpu as pltpu

EPS = 1e-5  # nn.BatchNorm2d default eps


@functools.lru_cache(maxsize=None)
def _vmem_limit_bytes():
    """Per-generation scoped-VMEM limit: ~3/4 of physical VMEM, capped at 96 MiB."""
    try:
        cap = getattr(pltpu.get_tpu_info(), "vmem_capacity_bytes", None)
        if cap:
            return int(min(cap * 3 // 4, 96 * 1024 * 1024))
    except Exception:
        pass
    return 48 * 1024 * 1024


def _cparams(sem):
    return pltpu.CompilerParams(dimension_semantics=sem,
                                vmem_limit_bytes=_vmem_limit_bytes())


# ----------------------------------------------------------------------------- kernels

def upconv2x2_kernel(x_ref, w_ref, b_ref, o_ref):
    """ConvTranspose2d(kernel=2, stride=2) as one fat per-pixel MXU matmul.

    x_ref: (1, H0, W0, Ci)        bf16 NHWC sample
    w_ref: (Ci, 4*Cu)             bf16, columns ordered (di, dj, cout)
    b_ref: (1, 4*Cu)              f32 bias tiled over the four (di, dj) taps
    o_ref: (1, H0, 2, W0, 2*Cu)   bf16; free XLA reshape to (Hc, Wc, Cu) outside
    """
    _, h0, w0, ci = x_ref.shape
    cu2 = w_ref.shape[1] // 2                         # = 2 * Cu  (the (dj, cout) slab)
    xm = x_ref[0].reshape(h0 * w0, ci)
    acc = jnp.dot(xm, w_ref[...], preferred_element_type=jnp.float32) + b_ref[...]
    for di in range(2):
        o_ref[0, :, di, :, :] = (
            acc[:, di * cu2:(di + 1) * cu2].reshape(h0, w0, cu2).astype(o_ref.dtype))


def _zero_border(xpad_ref):
    """Zero only the 1-pixel border of the padded scratch (interior is fully overwritten)."""
    hp, wp, cin = xpad_ref.shape
    zrow = jnp.zeros((1, wp, cin), xpad_ref.dtype)
    zcol = jnp.zeros((hp, 1, cin), xpad_ref.dtype)
    xpad_ref[0:1, :, :] = zrow
    xpad_ref[hp - 1:hp, :, :] = zrow
    xpad_ref[:, 0:1, :] = zcol
    xpad_ref[:, wp - 1:wp, :] = zcol


def _im2col_conv3x3_relu(xpad_ref, w_ref, b_ref, r0, th, wc):
    """relu(conv3x3 + bias) over padded rows [r0, r0+th+2) -> f32 (th*wc, Cout).

    One fat (rows, 9*Cin) @ (9*Cin, Cout) bf16 MXU contraction (xpad is already bf16)."""
    cin = xpad_ref.shape[-1]
    cols = [xpad_ref[pl.ds(r0 + dy, th), dx:dx + wc, :]
            for dy in range(3) for dx in range(3)]
    patches = jnp.concatenate(cols, axis=-1).reshape(th * wc, 9 * cin)
    acc = jnp.dot(patches, w_ref[...], preferred_element_type=jnp.float32)
    return jnp.maximum(acc + b_ref[...], 0.0)


def _accumulate_bn_stats(st_ref, vals, rt):
    """Welford/Chan combine of per-tile (mean, M2) into the resident per-sample stats block.

    st_ref block: (1, 2, C); row 0 = running mean, row 1 = running M2 (sum of squared
    deviations).  Numerically robust vs. the E[x^2]-E[x]^2 form for non-negative ReLU data."""
    rows = vals.shape[0]
    mean_b = jnp.mean(vals, axis=0, keepdims=True)                 # (1, C)
    m2_b = jnp.sum((vals - mean_b) ** 2, axis=0, keepdims=True)    # (1, C)

    @pl.when(rt == 0)
    def _init():
        st_ref[0, 0:1, :] = mean_b
        st_ref[0, 1:2, :] = m2_b

    @pl.when(rt != 0)
    def _combine():
        cnt_a = (rt * rows).astype(jnp.float32)
        cnt_b = jnp.float32(rows)
        n = cnt_a + cnt_b
        mean_a = st_ref[0, 0:1, :]
        delta = mean_b - mean_a
        st_ref[0, 0:1, :] = mean_a + delta * (cnt_b / n)
        st_ref[0, 1:2, :] = st_ref[0, 1:2, :] + m2_b + delta * delta * (cnt_a * cnt_b / n)


def conv1_relu_stats_kernel(up_ref, br_ref, w_ref, b_ref, y_ref, st_ref, xpad_ref):
    """Block-1 pass 1: [channel concat + zero-pad fused] conv3x3 + bias + ReLU per row tile,
    with per-sample BatchNorm1 (mean, M2) partials accumulated in the resident stats block."""
    rt = pl.program_id(1)
    _, th, wc, cout = y_ref.shape
    hp, _, cin = xpad_ref.shape
    hc = hp - 2
    ca = up_ref.shape[-1]

    @pl.when(rt == 0)             # build the per-sample padded, concatenated input once
    def _build_padded_input():
        _zero_border(xpad_ref)
        xpad_ref[1:hc + 1, 1:wc + 1, 0:ca] = up_ref[0]
        xpad_ref[1:hc + 1, 1:wc + 1, ca:cin] = br_ref[0]

    r0 = pl.multiple_of(rt * th, th)
    acc = _im2col_conv3x3_relu(xpad_ref, w_ref, b_ref, r0, th, wc)     # (th*wc, Cout) f32
    y_bf = acc.astype(y_ref.dtype)                                     # bf16 intermediate
    y_ref[0] = y_bf.reshape(th, wc, cout)
    # Stats on the bf16-rounded values actually stored -> the BN1 affine stays consistent.
    _accumulate_bn_stats(st_ref, y_bf.astype(jnp.float32), rt)


def conv2_relu_stats_kernel(y1_ref, s_ref, t_ref, w_ref, b_ref, y2_ref, st_ref, xpad_ref):
    """Block-2 pass 1: BatchNorm1 affine folded into the padded-input build, then the fused
    im2col conv + ReLU.  y2 is emitted channel-major (lane-dense), with the (rows, C)->(C, rows)
    transpose done here where the XLU slot is free filler; BN2 (mean, M2) partials accumulated."""
    rt = pl.program_id(1)
    _, cout, tr = y2_ref.shape
    hp, wp, _ = xpad_ref.shape
    hc, wc = hp - 2, wp - 2
    th = tr // wc

    @pl.when(rt == 0)
    def _build_padded_input():
        _zero_border(xpad_ref)
        xpad_ref[1:hc + 1, 1:wc + 1, :] = (
            y1_ref[0].astype(jnp.float32) * s_ref[...] + t_ref[...]).astype(xpad_ref.dtype)

    r0 = pl.multiple_of(rt * th, th)
    acc = _im2col_conv3x3_relu(xpad_ref, w_ref, b_ref, r0, th, wc)     # (tr, Cout) f32
    y2_ref[0] = jnp.transpose(acc, (1, 0))                             # channel-major (Cout, tr)
    _accumulate_bn_stats(st_ref, acc, rt)


def bn_dropout_kernel(y_ref, s_ref, t_ref, m_ref, o_ref):
    """Pass 2: BatchNorm2 affine + Dropout2d, fully channel-major / lane-dense (no transpose)."""
    z = y_ref[0] * s_ref[...] + t_ref[...]        # (C2, TR) * (C2, 1)
    o_ref[0] = (z * m_ref[0]).astype(o_ref.dtype)


# ----------------------------------------------------------------------------- wrapper

def _bn_scale_shift(stats, gamma, beta, count_per_sample):
    """Chan's parallel-variance combine of per-sample (mean, M2) partials, folded with
    gamma/beta into a single per-channel affine (scale, shift).  Tiny (C,)-sized jnp work."""
    stats = stats.astype(jnp.float32)
    means = stats[:, 0, :]                        # (N, C)
    m2s = stats[:, 1, :]                          # (N, C)
    n_samples = stats.shape[0]
    mean = jnp.mean(means, axis=0)
    m2 = jnp.sum(m2s, axis=0) + count_per_sample * jnp.sum((means - mean) ** 2, axis=0)
    var = jnp.maximum(m2 / (n_samples * count_per_sample), 0.0)
    scale = gamma * jax.lax.rsqrt(var + EPS)
    shift = beta - mean * scale
    return scale, shift


def conv_up_block_forward(x_nchw, bridge_nchw, p, drop_mask_scaled, row_tile=8):
    """ConvUpBlock forward (default _MODE_CONV_BLOCK_), NCHW in / NCHW out, training mode.

    row_tile should be swept per generation: tr = row_tile * Wc >= 256 on v6e/v7x when VMEM
    allows (amortizes per-grid-step overhead, fills the 2x256^2 MXU); 128 on v5e / VMEM-bound.
    """
    f32, bf16 = jnp.float32, jnp.bfloat16
    N, Ci, H0, W0 = x_nchw.shape
    Cu = p["w_up"].shape[1]
    Cbr = bridge_nchw.shape[1]
    Hc, Wc = 2 * H0, 2 * W0
    Cin1 = Cu + Cbr
    C1 = p["w1"].shape[0]
    C2 = p["w2"].shape[0]
    th = row_tile
    assert Hc % th == 0, "row_tile must divide the upsampled height"
    tr = th * Wc
    n_rt = Hc // th
    assert tr % 128 == 0 or n_rt == 1, "row_tile * width should be a multiple of 128"

    # Glue: NCHW -> NHWC + bf16 cast for the two module inputs (module boundary).
    # TODO(synk): drop these transposes if neighbouring layers can produce/consume NHWC.
    x_nhwc = jnp.transpose(x_nchw, (0, 2, 3, 1)).astype(bf16)
    br_nhwc = jnp.transpose(bridge_nchw, (0, 2, 3, 1)).astype(bf16)

    # ---- up = ConvTranspose2d(Ci, Cu, 2, stride=2) ------------------------------------------
    w_up_mat = jnp.transpose(p["w_up"], (0, 2, 3, 1)).reshape(Ci, 4 * Cu).astype(bf16)
    b_up4 = jnp.tile(p["b_up"], 4).reshape(1, 4 * Cu).astype(f32)
    up6 = pl.pallas_call(
        upconv2x2_kernel,
        out_shape=jax.ShapeDtypeStruct((N, H0, 2, W0, 2 * Cu), bf16),
        grid_spec=pltpu.PrefetchScalarGridSpec(
            num_scalar_prefetch=0,
            grid=(N,),
            in_specs=[
                pl.BlockSpec((1, H0, W0, Ci), lambda n: (n, 0, 0, 0)),
                pl.BlockSpec((Ci, 4 * Cu), lambda n: (0, 0)),            # resident params
                pl.BlockSpec((1, 4 * Cu), lambda n: (0, 0)),
            ],
            out_specs=pl.BlockSpec((1, H0, 2, W0, 2 * Cu), lambda n: (n, 0, 0, 0, 0)),
        ),
        compiler_params=_cparams(("parallel",)),
    )(x_nhwc, w_up_mat, b_up4)
    up_nhwc = up6.reshape(N, Hc, Wc, Cu)          # pure reshape (2x2 interleave), no transpose

    # ---- block 1: concat + conv1 + ReLU (+ BN1 mean/M2 partials) -----------------------------
    w1_mat = jnp.transpose(p["w1"], (2, 3, 1, 0)).reshape(9 * Cin1, C1).astype(bf16)
    b1r = p["b1"].reshape(1, C1).astype(f32)
    cost1 = pl.CostEstimate(
        flops=2 * N * Hc * Wc * 9 * Cin1 * C1, transcendentals=0,
        bytes_accessed=N * Hc * Wc * (Cin1 + C1) * 2 + 9 * Cin1 * C1 * 2)
    y1, st1 = pl.pallas_call(
        conv1_relu_stats_kernel,
        out_shape=(jax.ShapeDtypeStruct((N, Hc, Wc, C1), bf16),
                   jax.ShapeDtypeStruct((N, 2, C1), f32)),
        grid_spec=pltpu.PrefetchScalarGridSpec(
            num_scalar_prefetch=0,
            grid=(N, n_rt),
            in_specs=[
                pl.BlockSpec((1, Hc, Wc, Cu), lambda n, r: (n, 0, 0, 0)),   # resident / sample
                pl.BlockSpec((1, Hc, Wc, Cbr), lambda n, r: (n, 0, 0, 0)),  # resident / sample
                pl.BlockSpec((9 * Cin1, C1), lambda n, r: (0, 0)),          # resident params
                pl.BlockSpec((1, C1), lambda n, r: (0, 0)),
            ],
            out_specs=(
                pl.BlockSpec((1, th, Wc, C1), lambda n, r: (n, r, 0, 0)),
                pl.BlockSpec((1, 2, C1), lambda n, r: (n, 0, 0)),   # resident stats accumulator
            ),
            scratch_shapes=[pltpu.VMEM((Hc + 2, Wc + 2, Cin1), bf16)],
        ),
        compiler_params=_cparams(("parallel", "arbitrary")),
        cost_estimate=cost1,
    )(up_nhwc, br_nhwc, w1_mat, b1r)
    s1, t1 = _bn_scale_shift(st1, p["g1"], p["be1"], Hc * Wc)

    # ---- block 2: BN1-affine + conv2 + ReLU (+ BN2 mean/M2 partials), channel-major y2 -------
    w2_mat = jnp.transpose(p["w2"], (2, 3, 1, 0)).reshape(9 * C1, C2).astype(bf16)
    b2r = p["b2"].reshape(1, C2).astype(f32)
    cost2 = pl.CostEstimate(
        flops=2 * N * Hc * Wc * 9 * C1 * C2, transcendentals=0,
        bytes_accessed=N * Hc * Wc * (C1 * 2 + C2 * 4) + 9 * C1 * C2 * 2)
    y2cm, st2 = pl.pallas_call(
        conv2_relu_stats_kernel,
        out_shape=(jax.ShapeDtypeStruct((N, C2, Hc * Wc), f32),
                   jax.ShapeDtypeStruct((N, 2, C2), f32)),
        grid_spec=pltpu.PrefetchScalarGridSpec(
            num_scalar_prefetch=0,
            grid=(N, n_rt),
            in_specs=[
                pl.BlockSpec((1, Hc, Wc, C1), lambda n, r: (n, 0, 0, 0)),   # resident / sample
                pl.BlockSpec((1, C1), lambda n, r: (0, 0)),                 # BN1 scale
                pl.BlockSpec((1, C1), lambda n, r: (0, 0)),                 # BN1 shift
                pl.BlockSpec((9 * C1, C2), lambda n, r: (0, 0)),
                pl.BlockSpec((1, C2), lambda n, r: (0, 0)),
            ],
            out_specs=(
                pl.BlockSpec((1, C2, tr), lambda n, r: (n, 0, r)),          # lane-dense
                pl.BlockSpec((1, 2, C2), lambda n, r: (n, 0, 0)),           # resident stats
            ),
            scratch_shapes=[pltpu.VMEM((Hc + 2, Wc + 2, C1), bf16)],
        ),
        compiler_params=_cparams(("parallel", "arbitrary")),
        cost_estimate=cost2,
    )(y1, s1.reshape(1, C1), t1.reshape(1, C1), w2_mat, b2r)
    s2, t2 = _bn_scale_shift(st2, p["g2"], p["be2"], Hc * Wc)

    # ---- pass 2: BN2 + Dropout2d, channel-major (lane-dense) in and out ----------------------
    mask3 = drop_mask_scaled.astype(f32).reshape(N, C2, 1)
    out_cm = pl.pallas_call(
        bn_dropout_kernel,
        out_shape=jax.ShapeDtypeStruct((N, C2, Hc * Wc), f32),
        grid_spec=pltpu.PrefetchScalarGridSpec(
            num_scalar_prefetch=0,
            grid=(N, n_rt),
            in_specs=[
                pl.BlockSpec((1, C2, tr), lambda n, r: (n, 0, r)),
                pl.BlockSpec((C2, 1), lambda n, r: (0, 0)),
                pl.BlockSpec((C2, 1), lambda n, r: (0, 0)),
                pl.BlockSpec((1, C2, 1), lambda n, r: (n, 0, 0)),
            ],
            out_specs=pl.BlockSpec((1, C2, tr), lambda n, r: (n, 0, r)),
        ),
        compiler_params=_cparams(("parallel", "parallel")),
    )(y2cm, s2.reshape(C2, 1), t2.reshape(C2, 1), mask3)
    return out_cm.reshape(N, C2, Hc, Wc)          # NCHW, no transpose needed


# ----------------------------------------------------------------------------- reference

def reference_forward(x, bridge, p, drop_mask_scaled):
    """Pure-JAX reference mirroring the PyTorch forward (training mode), with the same
    bf16 intermediate-precision choices as the kernel path (f32 accumulation)."""
    f32, bf16 = jnp.float32, jnp.bfloat16
    N, Ci, H0, W0 = x.shape
    Cu = p["w_up"].shape[1]

    # ConvTranspose2d(kernel=2, stride=2): each input pixel produces one 2x2 output patch.
    u = jnp.einsum("nchw,cokl->nohkwl", x.astype(bf16), p["w_up"].astype(bf16),
                   preferred_element_type=f32)
    u = u.reshape(N, Cu, 2 * H0, 2 * W0) + p["b_up"][None, :, None, None]
    u = u.astype(bf16)
    xcat = jnp.concatenate([u, bridge.astype(bf16)], axis=1)

    def conv_relu(inp, w, b):
        y = jax.lax.conv_general_dilated(
            inp, w.astype(bf16), (1, 1), ((1, 1), (1, 1)),
            dimension_numbers=("NCHW", "OIHW", "NCHW"),
            preferred_element_type=f32)
        return jnp.maximum(y + b[None, :, None, None], 0.0)

    def bn(y, g, b):
        mean = jnp.mean(y, axis=(0, 2, 3), keepdims=True)
        var = jnp.mean((y - mean) ** 2, axis=(0, 2, 3), keepdims=True)
        yn = (y - mean) * jax.lax.rsqrt(var + EPS)
        return yn * g[None, :, None, None] + b[None, :, None, None]

    y1 = conv_relu(xcat, p["w1"], p["b1"])
    y1 = y1.astype(bf16).astype(f32)      # kernel stores y1 (and its BN1 stats) in bf16
    y1 = bn(y1, p["g1"], p["be1"]).astype(bf16)
    y2 = bn(conv_relu(y1, p["w2"], p["b2"]), p["g2"], p["be2"])
    return y2 * drop_mask_scaled[:, :, None, None]


if __name__ == "__main__":
    # ConvUpBlock(in_size=8, out_size=4): x is the low-res decoder feature map; bridge is the
    # skip connection at the upsampled resolution with (in_size - out_size) channels so that
    # cat([up(x), bridge], 1) has in_size channels, as conv1 expects.
    N, in_size, out_size = 2, 8, 4
    H0 = W0 = 8                                  # output spatial = 16 x 16
    p_drop = 0.2

    key = jax.random.PRNGKey(0)
    ks = jax.random.split(key, 13)
    x = jax.random.normal(ks[0], (N, in_size, H0, W0), jnp.float32)
    bridge = jax.random.normal(ks[1], (N, in_size - out_size, 2 * H0, 2 * W0), jnp.float32)
    params = dict(
        w_up=0.25 * jax.random.normal(ks[2], (in_size, out_size, 2, 2), jnp.float32),
        b_up=0.1 * jax.random.normal(ks[3], (out_size,), jnp.float32),
        w1=0.25 * jax.random.normal(ks[4], (out_size, in_size, 3, 3), jnp.float32),
        b1=0.1 * jax.random.normal(ks[5], (out_size,), jnp.float32),
        g1=1.0 + 0.1 * jax.random.normal(ks[6], (out_size,), jnp.float32),
        be1=0.1 * jax.random.normal(ks[7], (out_size,), jnp.float32),
        w2=0.25 * jax.random.normal(ks[8], (out_size, out_size, 3, 3), jnp.float32),
        b2=0.1 * jax.random.normal(ks[9], (out_size,), jnp.float32),
        g2=1.0 + 0.1 * jax.random.normal(ks[10], (out_size,), jnp.float32),
        be2=0.1 * jax.random.normal(ks[11], (out_size,), jnp.float32),
    )
    # Dropout2d (training mode): drop whole (sample, channel) planes, scale survivors.
    keep = jax.random.bernoulli(ks[12], 1.0 - p_drop, (N, out_size)).astype(jnp.float32)
    mask_scaled = keep / (1.0 - p_drop)

    fwd = jax.jit(conv_up_block_forward, static_argnames=("row_tile",))
    out = fwd(x, bridge, params, mask_scaled, row_tile=8)
    out = jax.block_until_ready(out)

    ref = reference_forward(x, bridge, params, mask_scaled)
    assert out.shape == (N, out_size, 2 * H0, 2 * W0), out.shape
    max_err = float(jnp.max(jnp.abs(out - ref)))
    # Tolerance covers the intentional bf16 conv inputs / intermediates plus f32
    # accumulation-order differences between the Pallas im2col matmuls and XLA's conv.
    assert jnp.allclose(out, ref, atol=3e-2, rtol=3e-2), f"max abs err {max_err}"
    print("KERNEL_OK")
</pallas_src>

<mosaic_0001>
module attributes {stable_mosaic.version = 11 : i64} {
  func.func @upconv2x2_kernel(%arg0: i32, %arg1: memref<1x8x8x8xbf16, #tpu.memory_space<vmem>>, %arg2: memref<8x16xbf16, #tpu.memory_space<vmem>>, %arg3: memref<1x16xf32, #tpu.memory_space<vmem>>, %arg4: memref<1x8x2x8x8xbf16, #tpu.memory_space<vmem>>) attributes {dimension_semantics = [#tpu.dimension_semantics<parallel>], iteration_bounds = array<i64: 2>, scalar_prefetch = 0 : i64, scratch_operands = 0 : i64, tpu.core_type = #tpu.core_type<tc>, window_params = [{transform_indices = @transform_0, window_bounds = array<i64: 1, 8, 8, 8>}, {pipeline_mode = #tpu.pipeline_mode<synchronous>, transform_indices = @transform_1, window_bounds = array<i64: 8, 16>}, {pipeline_mode = #tpu.pipeline_mode<synchronous>, transform_indices = @transform_2, window_bounds = array<i64: 1, 16>}, {transform_indices = @transform_3, window_bounds = array<i64: 1, 8, 2, 8, 8>}]} {
    %c0 = arith.constant 0 : index
    %c0_0 = arith.constant 0 : index
    %c0_1 = arith.constant 0 : index
    %c0_2 = arith.constant 0 : index
    %0 = vector.load %arg1[%c0, %c0_0, %c0_1, %c0_2] : memref<1x8x8x8xbf16, #tpu.memory_space<vmem>>, vector<1x8x8x8xbf16>
    %1 = vector.shape_cast %0 : vector<1x8x8x8xbf16> to vector<8x8x8xbf16>
    %2 = vector.shape_cast %1 : vector<8x8x8xbf16> to vector<64x8xbf16>
    %c0_3 = arith.constant 0 : index
    %c0_4 = arith.constant 0 : index
    %3 = vector.load %arg2[%c0_3, %c0_4] : memref<8x16xbf16, #tpu.memory_space<vmem>>, vector<8x16xbf16>
    %cst = arith.constant dense<0.000000e+00> : vector<64x16xf32>
    %4 = tpu.matmul %2, %3, %cst {dimension_numbers = #tpu.dot_dimension_numbers<[1], [0], [0], [1], [0, 0, 1, 1], [], []>} : vector<64x8xbf16>, vector<8x16xbf16>, vector<64x16xf32> -> vector<64x16xf32>
    %c0_5 = arith.constant 0 : index
    %c0_6 = arith.constant 0 : index
    %5 = vector.load %arg3[%c0_5, %c0_6] : memref<1x16xf32, #tpu.memory_space<vmem>>, vector<1x16xf32>
    %6 = vector.broadcast %5 : vector<1x16xf32> to vector<64x16xf32>
    %7 = arith.addf %4, %6 : vector<64x16xf32>
    %8 = vector.extract_strided_slice %7 {offsets = [0, 0], sizes = [64, 8], strides = [1, 1]} : vector<64x16xf32> to vector<64x8xf32>
    %9 = vector.shape_cast %8 : vector<64x8xf32> to vector<8x8x8xf32>
    %10 = arith.truncf %9 : vector<8x8x8xf32> to vector<8x8x8xbf16>
    %c0_7 = arith.constant 0 : index
    %c0_8 = arith.constant 0 : index
    %c0_9 = arith.constant 0 : index
    %c0_10 = arith.constant 0 : index
    %c0_11 = arith.constant 0 : index
    %11 = vector.load %arg4[%c0_7, %c0_8, %c0_9, %c0_10, %c0_11] : memref<1x8x2x8x8xbf16, #tpu.memory_space<vmem>>, vector<1x8x1x8x8xbf16>
    %12 = vector.shape_cast %11 : vector<1x8x1x8x8xbf16> to vector<8x8x8xbf16>
    %13 = vector.shape_cast %10 : vector<8x8x8xbf16> to vector<1x8x1x8x8xbf16>
    tpu.vector_store %arg4[%c0_7, %c0_8, %c0_9, %c0_10, %c0_11], %13 {strides = array<i32>} : memref<1x8x2x8x8xbf16, #tpu.memory_space<vmem>>, vector<1x8x1x8x8xbf16>,
    %14 = vector.extract_strided_slice %7 {offsets = [0, 8], sizes = [64, 8], strides = [1, 1]} : vector<64x16xf32> to vector<64x8xf32>
    %15 = vector.shape_cast %14 : vector<64x8xf32> to vector<8x8x8xf32>
    %16 = arith.truncf %15 : vector<8x8x8xf32> to vector<8x8x8xbf16>
    %c0_12 = arith.constant 0 : index
    %c0_13 = arith.constant 0 : index
    %c1 = arith.constant 1 : index
    %c0_14 = arith.constant 0 : index
    %c0_15 = arith.constant 0 : index
    %17 = vector.load %arg4[%c0_12, %c0_13, %c1, %c0_14, %c0_15] : memref<1x8x2x8x8xbf16, #tpu.memory_space<vmem>>, vector<1x8x1x8x8xbf16>
    %18 = vector.shape_cast %17 : vector<1x8x1x8x8xbf16> to vector<8x8x8xbf16>
    %19 = vector.shape_cast %16 : vector<8x8x8xbf16> to vector<1x8x1x8x8xbf16>
    tpu.vector_store %arg4[%c0_12, %c0_13, %c1, %c0_14, %c0_15], %19 {strides = array<i32>} : memref<1x8x2x8x8xbf16, #tpu.memory_space<vmem>>, vector<1x8x1x8x8xbf16>,
    return
  }
  func.func @transform_0(%arg0: i32) -> (i32, i32, i32, i32) {
    %c0_i32 = arith.constant 0 : i32
    %c0_i32_0 = arith.constant 0 : i32
    %c0_i32_1 = arith.constant 0 : i32
    %c0_i32_2 = arith.constant 0 : i32
    return %arg0, %c0_i32, %c0_i32_0, %c0_i32_1 : i32, i32, i32, i32
  }
  func.func @transform_1(%arg0: i32) -> (i32, i32) {
    %c0_i32 = arith.constant 0 : i32
    %c0_i32_0 = arith.constant 0 : i32
    %c0_i32_1 = arith.constant 0 : i32
    return %c0_i32, %c0_i32_0 : i32, i32
  }
  func.func @transform_2(%arg0: i32) -> (i32, i32) {
    %c0_i32 = arith.constant 0 : i32
    %c0_i32_0 = arith.constant 0 : i32
    %c0_i32_1 = arith.constant 0 : i32
    return %c0_i32, %c0_i32_0 : i32, i32
  }
  func.func @transform_3(%arg0: i32) -> (i32, i32, i32, i32, i32) {
    %c0_i32 = arith.constant 0 : i32
    %c0_i32_0 = arith.constant 0 : i32
    %c0_i32_1 = arith.constant 0 : i32
    %c0_i32_2 = arith.constant 0 : i32
    %c0_i32_3 = arith.constant 0 : i32
    return %arg0, %c0_i32, %c0_i32_0, %c0_i32_1, %c0_i32_2 : i32, i32, i32, i32, i32
  }
}

module attributes {stable_mosaic.version = 11 : i64} {
  func.func @conv1_relu_stats_kernel(%arg0: i32, %arg1: i32, %arg2: memref<1x16x16x4xbf16, #tpu.memory_space<vmem>>, %arg3: memref<1x16x16x4xbf16, #tpu.memory_space<vmem>>, %arg4: memref<72x4xbf16, #tpu.memory_space<vmem>>, %arg5: memref<1x4xf32, #tpu.memory_space<vmem>>, %arg6: memref<1x8x16x4xbf16, #tpu.memory_space<vmem>>, %arg7: memref<1x2x4xf32, #tpu.memory_space<vmem>>, %arg8: memref<18x18x8xbf16, #tpu.memory_space<vmem>>) attributes {dimension_semantics = [#tpu.dimension_semantics<parallel>, #tpu.dimension_semantics<arbitrary>], iteration_bounds = array<i64: 2, 2>, scalar_prefetch = 0 : i64, scratch_operands = 1 : i64, tpu.core_type = #tpu.core_type<tc>, window_params = [{transform_indices = @transform_0, window_bounds = array<i64: 1, 16, 16, 4>}, {transform_indices = @transform_1, window_bounds = array<i64: 1, 16, 16, 4>}, {pipeline_mode = #tpu.pipeline_mode<synchronous>, transform_indices = @transform_2, window_bounds = array<i64: 72, 4>}, {pipeline_mode = #tpu.pipeline_mode<synchronous>, transform_indices = @transform_3, window_bounds = array<i64: 1, 4>}, {transform_indices = @transform_4, window_bounds = array<i64: 1, 8, 16, 4>}, {transform_indices = @transform_5, window_bounds = array<i64: 1, 2, 4>}]} {
    %c0_i32 = arith.constant 0 : i32
    %0 = arith.cmpi eq, %arg1, %c0_i32 : i32
    %1 = arith.extui %0 : i1 to i32
    %c0_i32_0 = arith.constant 0 : i32
    %2 = arith.cmpi ne, %1, %c0_i32_0 : i32
    scf.if %2 {
      %cst_39 = arith.constant 0.000000e+00 : bf16
      %62 = vector.broadcast %cst_39 : bf16 to vector<1x18x8xbf16>
      %cst_40 = arith.constant 0.000000e+00 : bf16
      %63 = vector.broadcast %cst_40 : bf16 to vector<18x1x8xbf16>
      %c0_41 = arith.constant 0 : index
      %c0_42 = arith.constant 0 : index
      %c0_43 = arith.constant 0 : index
      %64 = vector.load %arg8[%c0_41, %c0_42, %c0_43] : memref<18x18x8xbf16, #tpu.memory_space<vmem>>, vector<1x18x8xbf16>
      tpu.vector_store %arg8[%c0_41, %c0_42, %c0_43], %62 {strides = array<i32>} : memref<18x18x8xbf16, #tpu.memory_space<vmem>>, vector<1x18x8xbf16>,
      %c17 = arith.constant 17 : index
      %c0_44 = arith.constant 0 : index
      %c0_45 = arith.constant 0 : index
      %65 = vector.load %arg8[%c17, %c0_44, %c0_45] : memref<18x18x8xbf16, #tpu.memory_space<vmem>>, vector<1x18x8xbf16>
      tpu.vector_store %arg8[%c17, %c0_44, %c0_45], %62 {strides = array<i32>} : memref<18x18x8xbf16, #tpu.memory_space<vmem>>, vector<1x18x8xbf16>,
      %c0_46 = arith.constant 0 : index
      %c0_47 = arith.constant 0 : index
      %c0_48 = arith.constant 0 : index
      %66 = vector.load %arg8[%c0_46, %c0_47, %c0_48] : memref<18x18x8xbf16, #tpu.memory_space<vmem>>, vector<18x1x8xbf16>
      tpu.vector_store %arg8[%c0_46, %c0_47, %c0_48], %63 {strides = array<i32>} : memref<18x18x8xbf16, #tpu.memory_space<vmem>>, vector<18x1x8xbf16>,
      %c0_49 = arith.constant 0 : index
      %c17_50 = arith.constant 17 : index
      %c0_51 = arith.constant 0 : index
      %67 = vector.load %arg8[%c0_49, %c17_50, %c0_51] : memref<18x18x8xbf16, #tpu.memory_space<vmem>>, vector<18x1x8xbf16>
      tpu.vector_store %arg8[%c0_49, %c17_50, %c0_51], %63 {strides = array<i32>} : memref<18x18x8xbf16, #tpu.memory_space<vmem>>, vector<18x1x8xbf16>,
      %c0_52 = arith.constant 0 : index
      %c0_53 = arith.constant 0 : index
      %c0_54 = arith.constant 0 : index
      %c0_55 = arith.constant 0 : index
      %68 = vector.load %arg2[%c0_52, %c0_53, %c0_54, %c0_55] : memref<1x16x16x4xbf16, #tpu.memory_space<vmem>>, vector<1x16x16x4xbf16>
      %69 = vector.shape_cast %68 : vector<1x16x16x4xbf16> to vector<16x16x4xbf16>
      %c1_56 = arith.constant 1 : index
      %c1_57 = arith.constant 1 : index
      %c0_58 = arith.constant 0 : index
      %70 = vector.load %arg8[%c1_56, %c1_57, %c0_58] : memref<18x18x8xbf16, #tpu.memory_space<vmem>>, vector<16x16x4xbf16>
      tpu.vector_store %arg8[%c1_56, %c1_57, %c0_58], %69 {strides = array<i32>} : memref<18x18x8xbf16, #tpu.memory_space<vmem>>, vector<16x16x4xbf16>,
      %c0_59 = arith.constant 0 : index
      %c0_60 = arith.constant 0 : index
      %c0_61 = arith.constant 0 : index
      %c0_62 = arith.constant 0 : index
      %71 = vector.load %arg3[%c0_59, %c0_60, %c0_61, %c0_62] : memref<1x16x16x4xbf16, #tpu.memory_space<vmem>>, vector<1x16x16x4xbf16>
      %72 = vector.shape_cast %71 : vector<1x16x16x4xbf16> to vector<16x16x4xbf16>
      %c1_63 = arith.constant 1 : index
      %c1_64 = arith.constant 1 : index
      %c4 = arith.constant 4 : index
      %73 = vector.load %arg8[%c1_63, %c1_64, %c4] : memref<18x18x8xbf16, #tpu.memory_space<vmem>>, vector<16x16x4xbf16>
      tpu.vector_store %arg8[%c1_63, %c1_64, %c4], %72 {strides = array<i32>} : memref<18x18x8xbf16, #tpu.memory_space<vmem>>, vector<16x16x4xbf16>,
    } else {
    }
    %c8_i32 = arith.constant 8 : i32
    %3 = arith.muli %arg1, %c8_i32 : i32
    %4 = tpu.assume_multiple %3, 8 : i32
    %c0_i32_1 = arith.constant 0 : i32
    %5 = arith.addi %4, %c0_i32_1 : i32
    %6 = arith.index_cast %5 : i32 to index
    %c0 = arith.constant 0 : index
    %c0_2 = arith.constant 0 : index
    %7 = vector.load %arg8[%6, %c0, %c0_2] : memref<18x18x8xbf16, #tpu.memory_space<vmem>>, vector<8x16x8xbf16>
    %c0_i32_3 = arith.constant 0 : i32
    %8 = arith.addi %4, %c0_i32_3 : i32
    %9 = arith.index_cast %8 : i32 to index
    %c1 = arith.constant 1 : index
    %c0_4 = arith.constant 0 : index
    %10 = vector.load %arg8[%9, %c1, %c0_4] : memref<18x18x8xbf16, #tpu.memory_space<vmem>>, vector<8x16x8xbf16>
    %c0_i32_5 = arith.constant 0 : i32
    %11 = arith.addi %4, %c0_i32_5 : i32
    %12 = arith.index_cast %11 : i32 to index
    %c2 = arith.constant 2 : index
    %c0_6 = arith.constant 0 : index
    %13 = vector.load %arg8[%12, %c2, %c0_6] : memref<18x18x8xbf16, #tpu.memory_space<vmem>>, vector<8x16x8xbf16>
    %c1_i32 = arith.constant 1 : i32
    %14 = arith.addi %4, %c1_i32 : i32
    %15 = arith.index_cast %14 : i32 to index
    %c0_7 = arith.constant 0 : index
    %c0_8 = arith.constant 0 : index
    %16 = vector.load %arg8[%15, %c0_7, %c0_8] : memref<18x18x8xbf16, #tpu.memory_space<vmem>>, vector<8x16x8xbf16>
    %c1_i32_9 = arith.constant 1 : i32
    %17 = arith.addi %4, %c1_i32_9 : i32
    %18 = arith.index_cast %17 : i32 to index
    %c1_10 = arith.constant 1 : index
    %c0_11 = arith.constant 0 : index
    %19 = vector.load %arg8[%18, %c1_10, %c0_11] : memref<18x18x8xbf16, #tpu.memory_space<vmem>>, vector<8x16x8xbf16>
    %c1_i32_12 = arith.constant 1 : i32
    %20 = arith.addi %4, %c1_i32_12 : i32
    %21 = arith.index_cast %20 : i32 to index
    %c2_13 = arith.constant 2 : index
    %c0_14 = arith.constant 0 : index
    %22 = vector.load %arg8[%21, %c2_13, %c0_14] : memref<18x18x8xbf16, #tpu.memory_space<vmem>>, vector<8x16x8xbf16>
    %c2_i32 = arith.constant 2 : i32
    %23 = arith.addi %4, %c2_i32 : i32
    %24 = arith.index_cast %23 : i32 to index
    %c0_15 = arith.constant 0 : index
    %c0_16 = arith.constant 0 : index
    %25 = vector.load %arg8[%24, %c0_15, %c0_16] : memref<18x18x8xbf16, #tpu.memory_space<vmem>>, vector<8x16x8xbf16>
    %c2_i32_17 = arith.constant 2 : i32
    %26 = arith.addi %4, %c2_i32_17 : i32
    %27 = arith.index_cast %26 : i32 to index
    %c1_18 = arith.constant 1 : index
    %c0_19 = arith.constant 0 : index
    %28 = vector.load %arg8[%27, %c1_18, %c0_19] : memref<18x18x8xbf16, #tpu.memory_space<vmem>>, vector<8x16x8xbf16>
    %c2_i32_20 = arith.constant 2 : i32
    %29 = arith.addi %4, %c2_i32_20 : i32
    %30 = arith.index_cast %29 : i32 to index
    %c2_21 = arith.constant 2 : index
    %c0_22 = arith.constant 0 : index
    %31 = vector.load %arg8[%30, %c2_21, %c0_22] : memref<18x18x8xbf16, #tpu.memory_space<vmem>>, vector<8x16x8xbf16>
    %32 = tpu.concatenate %7, %10, %13, %16, %19, %22, %25, %28, %31 in 2 : vector<8x16x8xbf16>, vector<8x16x8xbf16>, vector<8x16x8xbf16>, vector<8x16x8xbf16>, vector<8x16x8xbf16>, vector<8x16x8xbf16>, vector<8x16x8xbf16>, vector<8x16x8xbf16>, vector<8x16x8xbf16> -> vector<8x16x72xbf16>
    %33 = vector.shape_cast %32 : vector<8x16x72xbf16> to vector<128x72xbf16>
    %c0_23 = arith.constant 0 : index
    %c0_24 = arith.constant 0 : index
    %34 = vector.load %arg4[%c0_23, %c0_24] : memref<72x4xbf16, #tpu.memory_space<vmem>>, vector<72x4xbf16>
    %cst = arith.constant dense<0.000000e+00> : vector<128x4xf32>
    %35 = tpu.matmul %33, %34, %cst {dimension_numbers = #tpu.dot_dimension_numbers<[1], [0], [0], [1], [0, 0, 1, 1], [], []>} : vector<128x72xbf16>, vector<72x4xbf16>, vector<128x4xf32> -> vector<128x4xf32>
    %c0_25 = arith.constant 0 : index
    %c0_26 = arith.constant 0 : index
    %36 = vector.load %arg5[%c0_25, %c0_26] : memref<1x4xf32, #tpu.memory_space<vmem>>, vector<1x4xf32>
    %37 = vector.broadcast %36 : vector<1x4xf32> to vector<128x4xf32>
    %38 = arith.addf %35, %37 : vector<128x4xf32>
    %cst_27 = arith.constant 0.000000e+00 : f32
    %39 = vector.broadcast %cst_27 : f32 to vector<128x4xf32>
    %40 = arith.maximumf %38, %39 : vector<128x4xf32>
    %41 = arith.truncf %40 : vector<128x4xf32> to vector<128x4xbf16>
    %42 = vector.shape_cast %41 : vector<128x4xbf16> to vector<8x16x4xbf16>
    %c0_28 = arith.constant 0 : index
    %c0_29 = arith.constant 0 : index
    %c0_30 = arith.constant 0 : index
    %c0_31 = arith.constant 0 : index
    %43 = vector.load %arg6[%c0_28, %c0_29, %c0_30, %c0_31] : memref<1x8x16x4xbf16, #tpu.memory_space<vmem>>, vector<1x8x16x4xbf16>
    %44 = vector.shape_cast %43 : vector<1x8x16x4xbf16> to vector<8x16x4xbf16>
    %45 = vector.shape_cast %42 : vector<8x16x4xbf16> to vector<1x8x16x4xbf16>
    tpu.vector_store %arg6[%c0_28, %c0_29, %c0_30, %c0_31], %45 {strides = array<i32>} : memref<1x8x16x4xbf16, #tpu.memory_space<vmem>>, vector<1x8x16x4xbf16>,
    %46 = arith.extf %41 : vector<128x4xbf16> to vector<128x4xf32>
    %cst_32 = arith.constant dense<0.000000e+00> : vector<4xf32>
    %47 = vector.multi_reduction <add>, %46, %cst_32 [0] : vector<128x4xf32> to vector<4xf32>
    %48 = vector.shape_cast %47 : vector<4xf32> to vector<1x4xf32>
    %cst_33 = arith.constant 1.280000e+02 : f32
    %49 = vector.broadcast %cst_33 : f32 to vector<1x4xf32>
    %50 = arith.divf %48, %49 : vector<1x4xf32>
    %51 = vector.broadcast %50 : vector<1x4xf32> to vector<128x4xf32>
    %52 = arith.subf %46, %51 : vector<128x4xf32>
    %53 = arith.mulf %52, %52 : vector<128x4xf32>
    %cst_34 = arith.constant dense<0.000000e+00> : vector<4xf32>
    %54 = vector.multi_reduction <add>, %53, %cst_34 [0] : vector<128x4xf32> to vector<4xf32>
    %55 = vector.shape_cast %54 : vector<4xf32> to vector<1x4xf32>
    %c0_i32_35 = arith.constant 0 : i32
    %56 = arith.cmpi eq, %arg1, %c0_i32_35 : i32
    %57 = arith.extui %56 : i1 to i32
    %c0_i32_36 = arith.constant 0 : i32
    %58 = arith.cmpi ne, %57, %c0_i32_36 : i32
    scf.if %58 {
      %c0_39 = arith.constant 0 : index
      %c0_40 = arith.constant 0 : index
      %c0_41 = arith.constant 0 : index
      %62 = vector.load %arg7[%c0_39, %c0_40, %c0_41] : memref<1x2x4xf32, #tpu.memory_space<vmem>>, vector<1x1x4xf32>
      %63 = vector.shape_cast %62 : vector<1x1x4xf32> to vector<1x4xf32>
      %64 = vector.shape_cast %50 : vector<1x4xf32> to vector<1x1x4xf32>
      tpu.vector_store %arg7[%c0_39, %c0_40, %c0_41], %64 {strides = array<i32>} : memref<1x2x4xf32, #tpu.memory_space<vmem>>, vector<1x1x4xf32>,
      %c0_42 = arith.constant 0 : index
      %c1_43 = arith.constant 1 : index
      %c0_44 = arith.constant 0 : index
      %65 = vector.load %arg7[%c0_42, %c1_43, %c0_44] : memref<1x2x4xf32, #tpu.memory_space<vmem>>, vector<1x1x4xf32>
      %66 = vector.shape_cast %65 : vector<1x1x4xf32> to vector<1x4xf32>
      %67 = vector.shape_cast %55 : vector<1x4xf32> to vector<1x1x4xf32>
      tpu.vector_store %arg7[%c0_42, %c1_43, %c0_44], %67 {strides = array<i32>} : memref<1x2x4xf32, #tpu.memory_space<vmem>>, vector<1x1x4xf32>,
    } else {
    }
    %c0_i32_37 = arith.constant 0 : i32
    %59 = arith.cmpi ne, %arg1, %c0_i32_37 : i32
    %60 = arith.extui %59 : i1 to i32
    %c0_i32_38 = arith.constant 0 : i32
    %61 = arith.cmpi ne, %60, %c0_i32_38 : i32
    scf.if %61 {
      %c128_i32 = arith.constant 128 : i32
      %62 = arith.muli %arg1, %c128_i32 : i32
      %63 = arith.sitofp %62 : i32 to f32
      %cst_39 = arith.constant 1.280000e+02 : f32
      %64 = arith.addf %63, %cst_39 : f32
      %c0_40 = arith.constant 0 : index
      %c0_41 = arith.constant 0 : index
      %c0_42 = arith.constant 0 : index
      %65 = vector.load %arg7[%c0_40, %c0_41, %c0_42] : memref<1x2x4xf32, #tpu.memory_space<vmem>>, vector<1x1x4xf32>
      %66 = vector.shape_cast %65 : vector<1x1x4xf32> to vector<1x4xf32>
      %67 = arith.subf %50, %66 : vector<1x4xf32>
      %cst_43 = arith.constant 1.280000e+02 : f32
      %68 = arith.divf %cst_43, %64 : f32
      %69 = vector.broadcast %68 : f32 to vector<1x4xf32>
      %70 = arith.mulf %67, %69 : vector<1x4xf32>
      %71 = arith.addf %66, %70 : vector<1x4xf32>
      %c0_44 = arith.constant 0 : index
      %c0_45 = arith.constant 0 : index
      %c0_46 = arith.constant 0 : index
      %72 = vector.load %arg7[%c0_44, %c0_45, %c0_46] : memref<1x2x4xf32, #tpu.memory_space<vmem>>, vector<1x1x4xf32>
      %73 = vector.shape_cast %72 : vector<1x1x4xf32> to vector<1x4xf32>
      %74 = vector.shape_cast %71 : vector<1x4xf32> to vector<1x1x4xf32>
      tpu.vector_store %arg7[%c0_44, %c0_45, %c0_46], %74 {strides = array<i32>} : memref<1x2x4xf32, #tpu.memory_space<vmem>>, vector<1x1x4xf32>,
      %c0_47 = arith.constant 0 : index
      %c1_48 = arith.constant 1 : index
      %c0_49 = arith.constant 0 : index
      %75 = vector.load %arg7[%c0_47, %c1_48, %c0_49] : memref<1x2x4xf32, #tpu.memory_space<vmem>>, vector<1x1x4xf32>
      %76 = vector.shape_cast %75 : vector<1x1x4xf32> to vector<1x4xf32>
      %77 = arith.addf %76, %55 : vector<1x4xf32>
      %78 = arith.mulf %67, %67 : vector<1x4xf32>
      %cst_50 = arith.constant 1.280000e+02 : f32
      %79 = arith.mulf %63, %cst_50 : f32
      %80 = arith.divf %79, %64 : f32
      %81 = vector.broadcast %80 : f32 to vector<1x4xf32>
      %82 = arith.mulf %78, %81 : vector<1x4xf32>
      %83 = arith.addf %77, %82 : vector<1x4xf32>
      %c0_51 = arith.constant 0 : index
      %c1_52 = arith.constant 1 : index
      %c0_53 = arith.constant 0 : index
      %84 = vector.load %arg7[%c0_51, %c1_52, %c0_53] : memref<1x2x4xf32, #tpu.memory_space<vmem>>, vector<1x1x4xf32>
      %85 = vector.shape_cast %84 : vector<1x1x4xf32> to vector<1x4xf32>
      %86 = vector.shape_cast %83 : vector<1x4xf32> to vector<1x1x4xf32>
      tpu.vector_store %arg7[%c0_51, %c1_52, %c0_53], %86 {strides = array<i32>} : memref<1x2x4xf32, #tpu.memory_space<vmem>>, vector<1x1x4xf32>,
    } else {
    }
    return
  }
  func.func @transform_0(%arg0: i32, %arg1: i32) -> (i32, i32, i32, i32) {
    %c0_i32 = arith.constant 0 : i32
    %c0_i32_0 = arith.constant 0 : i32
    %c0_i32_1 = arith.constant 0 : i32
    %c0_i32_2 = arith.constant 0 : i32
    return %arg0, %c0_i32, %c0_i32_0, %c0_i32_1 : i32, i32, i32, i32
  }
  func.func @transform_1(%arg0: i32, %arg1: i32) -> (i32, i32, i32, i32) {
    %c0_i32 = arith.constant 0 : i32
    %c0_i32_0 = arith.constant 0 : i32
    %c0_i32_1 = arith.constant 0 : i32
    %c0_i32_2 = arith.constant 0 : i32
    return %arg0, %c0_i32, %c0_i32_0, %c0_i32_1 : i32, i32, i32, i32
  }
  func.func @transform_2(%arg0: i32, %arg1: i32) -> (i32, i32) {
    %c0_i32 = arith.constant 0 : i32
    %c0_i32_0 = arith.constant 0 : i32
    %c0_i32_1 = arith.constant 0 : i32
    return %c0_i32, %c0_i32_0 : i32, i32
  }
  func.func @transform_3(%arg0: i32, %arg1: i32) -> (i32, i32) {
    %c0_i32 = arith.constant 0 : i32
    %c0_i32_0 = arith.constant 0 : i32
    %c0_i32_1 = arith.constant 0 : i32
    return %c0_i32, %c0_i32_0 : i32, i32
  }
  func.func @transform_4(%arg0: i32, %arg1: i32) -> (i32, i32, i32, i32) {
    %c0_i32 = arith.constant 0 : i32
    %c0_i32_0 = arith.constant 0 : i32
    %c0_i32_1 = arith.constant 0 : i32
    return %arg0, %arg1, %c0_i32, %c0_i32_0 : i32, i32, i32, i32
  }
  func.func @transform_5(%arg0: i32, %arg1: i32) -> (i32, i32, i32) {
    %c0_i32 = arith.constant 0 : i32
    %c0_i32_0 = arith.constant 0 : i32
    %c0_i32_1 = arith.constant 0 : i32
    return %arg0, %c0_i32, %c0_i32_0 : i32, i32, i32
  }
}

module attributes {stable_mosaic.version = 11 : i64} {
  func.func @conv2_relu_stats_kernel(%arg0: i32, %arg1: i32, %arg2: memref<1x16x16x4xbf16, #tpu.memory_space<vmem>>, %arg3: memref<1x4xf32, #tpu.memory_space<vmem>>, %arg4: memref<1x4xf32, #tpu.memory_space<vmem>>, %arg5: memref<36x4xbf16, #tpu.memory_space<vmem>>, %arg6: memref<1x4xf32, #tpu.memory_space<vmem>>, %arg7: memref<1x4x128xf32, #tpu.memory_space<vmem>>, %arg8: memref<1x2x4xf32, #tpu.memory_space<vmem>>, %arg9: memref<18x18x4xbf16, #tpu.memory_space<vmem>>) attributes {dimension_semantics = [#tpu.dimension_semantics<parallel>, #tpu.dimension_semantics<arbitrary>], iteration_bounds = array<i64: 2, 2>, scalar_prefetch = 0 : i64, scratch_operands = 1 : i64, tpu.core_type = #tpu.core_type<tc>, window_params = [{transform_indices = @transform_0, window_bounds = array<i64: 1, 16, 16, 4>}, {pipeline_mode = #tpu.pipeline_mode<synchronous>, transform_indices = @transform_1, window_bounds = array<i64: 1, 4>}, {pipeline_mode = #tpu.pipeline_mode<synchronous>, transform_indices = @transform_2, window_bounds = array<i64: 1, 4>}, {pipeline_mode = #tpu.pipeline_mode<synchronous>, transform_indices = @transform_3, window_bounds = array<i64: 36, 4>}, {pipeline_mode = #tpu.pipeline_mode<synchronous>, transform_indices = @transform_4, window_bounds = array<i64: 1, 4>}, {transform_indices = @transform_5, window_bounds = array<i64: 1, 4, 128>}, {transform_indices = @transform_6, window_bounds = array<i64: 1, 2, 4>}]} {
    %c0_i32 = arith.constant 0 : i32
    %0 = arith.cmpi eq, %arg1, %c0_i32 : i32
    %1 = arith.extui %0 : i1 to i32
    %c0_i32_0 = arith.constant 0 : i32
    %2 = arith.cmpi ne, %1, %c0_i32_0 : i32
    scf.if %2 {
      %cst_38 = arith.constant 0.000000e+00 : bf16
      %60 = vector.broadcast %cst_38 : bf16 to vector<1x18x4xbf16>
      %cst_39 = arith.constant 0.000000e+00 : bf16
      %61 = vector.broadcast %cst_39 : bf16 to vector<18x1x4xbf16>
      %c0_40 = arith.constant 0 : index
      %c0_41 = arith.constant 0 : index
      %c0_42 = arith.constant 0 : index
      %62 = vector.load %arg9[%c0_40, %c0_41, %c0_42] : memref<18x18x4xbf16, #tpu.memory_space<vmem>>, vector<1x18x4xbf16>
      tpu.vector_store %arg9[%c0_40, %c0_41, %c0_42], %60 {strides = array<i32>} : memref<18x18x4xbf16, #tpu.memory_space<vmem>>, vector<1x18x4xbf16>,
      %c17 = arith.constant 17 : index
      %c0_43 = arith.constant 0 : index
      %c0_44 = arith.constant 0 : index
      %63 = vector.load %arg9[%c17, %c0_43, %c0_44] : memref<18x18x4xbf16, #tpu.memory_space<vmem>>, vector<1x18x4xbf16>
      tpu.vector_store %arg9[%c17, %c0_43, %c0_44], %60 {strides = array<i32>} : memref<18x18x4xbf16, #tpu.memory_space<vmem>>, vector<1x18x4xbf16>,
      %c0_45 = arith.constant 0 : index
      %c0_46 = arith.constant 0 : index
      %c0_47 = arith.constant 0 : index
      %64 = vector.load %arg9[%c0_45, %c0_46, %c0_47] : memref<18x18x4xbf16, #tpu.memory_space<vmem>>, vector<18x1x4xbf16>
      tpu.vector_store %arg9[%c0_45, %c0_46, %c0_47], %61 {strides = array<i32>} : memref<18x18x4xbf16, #tpu.memory_space<vmem>>, vector<18x1x4xbf16>,
      %c0_48 = arith.constant 0 : index
      %c17_49 = arith.constant 17 : index
      %c0_50 = arith.constant 0 : index
      %65 = vector.load %arg9[%c0_48, %c17_49, %c0_50] : memref<18x18x4xbf16, #tpu.memory_space<vmem>>, vector<18x1x4xbf16>
      tpu.vector_store %arg9[%c0_48, %c17_49, %c0_50], %61 {strides = array<i32>} : memref<18x18x4xbf16, #tpu.memory_space<vmem>>, vector<18x1x4xbf16>,
      %c0_51 = arith.constant 0 : index
      %c0_52 = arith.constant 0 : index
      %c0_53 = arith.constant 0 : index
      %c0_54 = arith.constant 0 : index
      %66 = vector.load %arg2[%c0_51, %c0_52, %c0_53, %c0_54] : memref<1x16x16x4xbf16, #tpu.memory_space<vmem>>, vector<1x16x16x4xbf16>
      %67 = vector.shape_cast %66 : vector<1x16x16x4xbf16> to vector<16x16x4xbf16>
      %68 = arith.extf %67 : vector<16x16x4xbf16> to vector<16x16x4xf32>
      %c0_55 = arith.constant 0 : index
      %c0_56 = arith.constant 0 : index
      %69 = vector.load %arg3[%c0_55, %c0_56] : memref<1x4xf32, #tpu.memory_space<vmem>>, vector<1x4xf32>
      %70 = vector.shape_cast %69 : vector<1x4xf32> to vector<1x1x4xf32>
      %71 = vector.broadcast %70 : vector<1x1x4xf32> to vector<16x16x4xf32>
      %72 = arith.mulf %68, %71 : vector<16x16x4xf32>
      %c0_57 = arith.constant 0 : index
      %c0_58 = arith.constant 0 : index
      %73 = vector.load %arg4[%c0_57, %c0_58] : memref<1x4xf32, #tpu.memory_space<vmem>>, vector<1x4xf32>
      %74 = vector.shape_cast %73 : vector<1x4xf32> to vector<1x1x4xf32>
      %75 = vector.broadcast %74 : vector<1x1x4xf32> to vector<16x16x4xf32>
      %76 = arith.addf %72, %75 : vector<16x16x4xf32>
      %77 = arith.truncf %76 : vector<16x16x4xf32> to vector<16x16x4xbf16>
      %c1_59 = arith.constant 1 : index
      %c1_60 = arith.constant 1 : index
      %c0_61 = arith.constant 0 : index
      %78 = vector.load %arg9[%c1_59, %c1_60, %c0_61] : memref<18x18x4xbf16, #tpu.memory_space<vmem>>, vector<16x16x4xbf16>
      tpu.vector_store %arg9[%c1_59, %c1_60, %c0_61], %77 {strides = array<i32>} : memref<18x18x4xbf16, #tpu.memory_space<vmem>>, vector<16x16x4xbf16>,
    } else {
    }
    %c8_i32 = arith.constant 8 : i32
    %3 = arith.muli %arg1, %c8_i32 : i32
    %4 = tpu.assume_multiple %3, 8 : i32
    %c0_i32_1 = arith.constant 0 : i32
    %5 = arith.addi %4, %c0_i32_1 : i32
    %6 = arith.index_cast %5 : i32 to index
    %c0 = arith.constant 0 : index
    %c0_2 = arith.constant 0 : index
    %7 = vector.load %arg9[%6, %c0, %c0_2] : memref<18x18x4xbf16, #tpu.memory_space<vmem>>, vector<8x16x4xbf16>
    %c0_i32_3 = arith.constant 0 : i32
    %8 = arith.addi %4, %c0_i32_3 : i32
    %9 = arith.index_cast %8 : i32 to index
    %c1 = arith.constant 1 : index
    %c0_4 = arith.constant 0 : index
    %10 = vector.load %arg9[%9, %c1, %c0_4] : memref<18x18x4xbf16, #tpu.memory_space<vmem>>, vector<8x16x4xbf16>
    %c0_i32_5 = arith.constant 0 : i32
    %11 = arith.addi %4, %c0_i32_5 : i32
    %12 = arith.index_cast %11 : i32 to index
    %c2 = arith.constant 2 : index
    %c0_6 = arith.constant 0 : index
    %13 = vector.load %arg9[%12, %c2, %c0_6] : memref<18x18x4xbf16, #tpu.memory_space<vmem>>, vector<8x16x4xbf16>
    %c1_i32 = arith.constant 1 : i32
    %14 = arith.addi %4, %c1_i32 : i32
    %15 = arith.index_cast %14 : i32 to index
    %c0_7 = arith.constant 0 : index
    %c0_8 = arith.constant 0 : index
    %16 = vector.load %arg9[%15, %c0_7, %c0_8] : memref<18x18x4xbf16, #tpu.memory_space<vmem>>, vector<8x16x4xbf16>
    %c1_i32_9 = arith.constant 1 : i32
    %17 = arith.addi %4, %c1_i32_9 : i32
    %18 = arith.index_cast %17 : i32 to index
    %c1_10 = arith.constant 1 : index
    %c0_11 = arith.constant 0 : index
    %19 = vector.load %arg9[%18, %c1_10, %c0_11] : memref<18x18x4xbf16, #tpu.memory_space<vmem>>, vector<8x16x4xbf16>
    %c1_i32_12 = arith.constant 1 : i32
    %20 = arith.addi %4, %c1_i32_12 : i32
    %21 = arith.index_cast %20 : i32 to index
    %c2_13 = arith.constant 2 : index
    %c0_14 = arith.constant 0 : index
    %22 = vector.load %arg9[%21, %c2_13, %c0_14] : memref<18x18x4xbf16, #tpu.memory_space<vmem>>, vector<8x16x4xbf16>
    %c2_i32 = arith.constant 2 : i32
    %23 = arith.addi %4, %c2_i32 : i32
    %24 = arith.index_cast %23 : i32 to index
    %c0_15 = arith.constant 0 : index
    %c0_16 = arith.constant 0 : index
    %25 = vector.load %arg9[%24, %c0_15, %c0_16] : memref<18x18x4xbf16, #tpu.memory_space<vmem>>, vector<8x16x4xbf16>
    %c2_i32_17 = arith.constant 2 : i32
    %26 = arith.addi %4, %c2_i32_17 : i32
    %27 = arith.index_cast %26 : i32 to index
    %c1_18 = arith.constant 1 : index
    %c0_19 = arith.constant 0 : index
    %28 = vector.load %arg9[%27, %c1_18, %c0_19] : memref<18x18x4xbf16, #tpu.memory_space<vmem>>, vector<8x16x4xbf16>
    %c2_i32_20 = arith.constant 2 : i32
    %29 = arith.addi %4, %c2_i32_20 : i32
    %30 = arith.index_cast %29 : i32 to index
    %c2_21 = arith.constant 2 : index
    %c0_22 = arith.constant 0 : index
    %31 = vector.load %arg9[%30, %c2_21, %c0_22] : memref<18x18x4xbf16, #tpu.memory_space<vmem>>, vector<8x16x4xbf16>
    %32 = tpu.concatenate %7, %10, %13, %16, %19, %22, %25, %28, %31 in 2 : vector<8x16x4xbf16>, vector<8x16x4xbf16>, vector<8x16x4xbf16>, vector<8x16x4xbf16>, vector<8x16x4xbf16>, vector<8x16x4xbf16>, vector<8x16x4xbf16>, vector<8x16x4xbf16>, vector<8x16x4xbf16> -> vector<8x16x36xbf16>
    %33 = vector.shape_cast %32 : vector<8x16x36xbf16> to vector<128x36xbf16>
    %c0_23 = arith.constant 0 : index
    %c0_24 = arith.constant 0 : index
    %34 = vector.load %arg5[%c0_23, %c0_24] : memref<36x4xbf16, #tpu.memory_space<vmem>>, vector<36x4xbf16>
    %cst = arith.constant dense<0.000000e+00> : vector<128x4xf32>
    %35 = tpu.matmul %33, %34, %cst {dimension_numbers = #tpu.dot_dimension_numbers<[1], [0], [0], [1], [0, 0, 1, 1], [], []>} : vector<128x36xbf16>, vector<36x4xbf16>, vector<128x4xf32> -> vector<128x4xf32>
    %c0_25 = arith.constant 0 : index
    %c0_26 = arith.constant 0 : index
    %36 = vector.load %arg6[%c0_25, %c0_26] : memref<1x4xf32, #tpu.memory_space<vmem>>, vector<1x4xf32>
    %37 = vector.broadcast %36 : vector<1x4xf32> to vector<128x4xf32>
    %38 = arith.addf %35, %37 : vector<128x4xf32>
    %cst_27 = arith.constant 0.000000e+00 : f32
    %39 = vector.broadcast %cst_27 : f32 to vector<128x4xf32>
    %40 = arith.maximumf %38, %39 : vector<128x4xf32>
    %41 = tpu.transpose %40, [1, 0] : vector<128x4xf32> -> vector<4x128xf32>
    %c0_28 = arith.constant 0 : index
    %c0_29 = arith.constant 0 : index
    %c0_30 = arith.constant 0 : index
    %42 = vector.load %arg7[%c0_28, %c0_29, %c0_30] : memref<1x4x128xf32, #tpu.memory_space<vmem>>, vector<1x4x128xf32>
    %43 = vector.shape_cast %42 : vector<1x4x128xf32> to vector<4x128xf32>
    %44 = vector.shape_cast %41 : vector<4x128xf32> to vector<1x4x128xf32>
    tpu.vector_store %arg7[%c0_28, %c0_29, %c0_30], %44 {strides = array<i32>} : memref<1x4x128xf32, #tpu.memory_space<vmem>>, vector<1x4x128xf32>,
    %cst_31 = arith.constant dense<0.000000e+00> : vector<4xf32>
    %45 = vector.multi_reduction <add>, %40, %cst_31 [0] : vector<128x4xf32> to vector<4xf32>
    %46 = vector.shape_cast %45 : vector<4xf32> to vector<1x4xf32>
    %cst_32 = arith.constant 1.280000e+02 : f32
    %47 = vector.broadcast %cst_32 : f32 to vector<1x4xf32>
    %48 = arith.divf %46, %47 : vector<1x4xf32>
    %49 = vector.broadcast %48 : vector<1x4xf32> to vector<128x4xf32>
    %50 = arith.subf %40, %49 : vector<128x4xf32>
    %51 = arith.mulf %50, %50 : vector<128x4xf32>
    %cst_33 = arith.constant dense<0.000000e+00> : vector<4xf32>
    %52 = vector.multi_reduction <add>, %51, %cst_33 [0] : vector<128x4xf32> to vector<4xf32>
    %53 = vector.shape_cast %52 : vector<4xf32> to vector<1x4xf32>
    %c0_i32_34 = arith.constant 0 : i32
    %54 = arith.cmpi eq, %arg1, %c0_i32_34 : i32
    %55 = arith.extui %54 : i1 to i32
    %c0_i32_35 = arith.constant 0 : i32
    %56 = arith.cmpi ne, %55, %c0_i32_35 : i32
    scf.if %56 {
      %c0_38 = arith.constant 0 : index
      %c0_39 = arith.constant 0 : index
      %c0_40 = arith.constant 0 : index
      %60 = vector.load %arg8[%c0_38, %c0_39, %c0_40] : memref<1x2x4xf32, #tpu.memory_space<vmem>>, vector<1x1x4xf32>
      %61 = vector.shape_cast %60 : vector<1x1x4xf32> to vector<1x4xf32>
      %62 = vector.shape_cast %48 : vector<1x4xf32> to vector<1x1x4xf32>
      tpu.vector_store %arg8[%c0_38, %c0_39, %c0_40], %62 {strides = array<i32>} : memref<1x2x4xf32, #tpu.memory_space<vmem>>, vector<1x1x4xf32>,
      %c0_41 = arith.constant 0 : index
      %c1_42 = arith.constant 1 : index
      %c0_43 = arith.constant 0 : index
      %63 = vector.load %arg8[%c0_41, %c1_42, %c0_43] : memref<1x2x4xf32, #tpu.memory_space<vmem>>, vector<1x1x4xf32>
      %64 = vector.shape_cast %63 : vector<1x1x4xf32> to vector<1x4xf32>
      %65 = vector.shape_cast %53 : vector<1x4xf32> to vector<1x1x4xf32>
      tpu.vector_store %arg8[%c0_41, %c1_42, %c0_43], %65 {strides = array<i32>} : memref<1x2x4xf32, #tpu.memory_space<vmem>>, vector<1x1x4xf32>,
    } else {
    }
    %c0_i32_36 = arith.constant 0 : i32
    %57 = arith.cmpi ne, %arg1, %c0_i32_36 : i32
    %58 = arith.extui %57 : i1 to i32
    %c0_i32_37 = arith.constant 0 : i32
    %59 = arith.cmpi ne, %58, %c0_i32_37 : i32
    scf.if %59 {
      %c128_i32 = arith.constant 128 : i32
      %60 = arith.muli %arg1, %c128_i32 : i32
      %61 = arith.sitofp %60 : i32 to f32
      %cst_38 = arith.constant 1.280000e+02 : f32
      %62 = arith.addf %61, %cst_38 : f32
      %c0_39 = arith.constant 0 : index
      %c0_40 = arith.constant 0 : index
      %c0_41 = arith.constant 0 : index
      %63 = vector.load %arg8[%c0_39, %c0_40, %c0_41] : memref<1x2x4xf32, #tpu.memory_space<vmem>>, vector<1x1x4xf32>
      %64 = vector.shape_cast %63 : vector<1x1x4xf32> to vector<1x4xf32>
      %65 = arith.subf %48, %64 : vector<1x4xf32>
      %cst_42 = arith.constant 1.280000e+02 : f32
      %66 = arith.divf %cst_42, %62 : f32
      %67 = vector.broadcast %66 : f32 to vector<1x4xf32>
      %68 = arith.mulf %65, %67 : vector<1x4xf32>
      %69 = arith.addf %64, %68 : vector<1x4xf32>
      %c0_43 = arith.constant 0 : index
      %c0_44 = arith.constant 0 : index
      %c0_45 = arith.constant 0 : index
      %70 = vector.load %arg8[%c0_43, %c0_44, %c0_45] : memref<1x2x4xf32, #tpu.memory_space<vmem>>, vector<1x1x4xf32>
      %71 = vector.shape_cast %70 : vector<1x1x4xf32> to vector<1x4xf32>
      %72 = vector.shape_cast %69 : vector<1x4xf32> to vector<1x1x4xf32>
      tpu.vector_store %arg8[%c0_43, %c0_44, %c0_45], %72 {strides = array<i32>} : memref<1x2x4xf32, #tpu.memory_space<vmem>>, vector<1x1x4xf32>,
      %c0_46 = arith.constant 0 : index
      %c1_47 = arith.constant 1 : index
      %c0_48 = arith.constant 0 : index
      %73 = vector.load %arg8[%c0_46, %c1_47, %c0_48] : memref<1x2x4xf32, #tpu.memory_space<vmem>>, vector<1x1x4xf32>
      %74 = vector.shape_cast %73 : vector<1x1x4xf32> to vector<1x4xf32>
      %75 = arith.addf %74, %53 : vector<1x4xf32>
      %76 = arith.mulf %65, %65 : vector<1x4xf32>
      %cst_49 = arith.constant 1.280000e+02 : f32
      %77 = arith.mulf %61, %cst_49 : f32
      %78 = arith.divf %77, %62 : f32
      %79 = vector.broadcast %78 : f32 to vector<1x4xf32>
      %80 = arith.mulf %76, %79 : vector<1x4xf32>
      %81 = arith.addf %75, %80 : vector<1x4xf32>
      %c0_50 = arith.constant 0 : index
      %c1_51 = arith.constant 1 : index
      %c0_52 = arith.constant 0 : index
      %82 = vector.load %arg8[%c0_50, %c1_51, %c0_52] : memref<1x2x4xf32, #tpu.memory_space<vmem>>, vector<1x1x4xf32>
      %83 = vector.shape_cast %82 : vector<1x1x4xf32> to vector<1x4xf32>
      %84 = vector.shape_cast %81 : vector<1x4xf32> to vector<1x1x4xf32>
      tpu.vector_store %arg8[%c0_50, %c1_51, %c0_52], %84 {strides = array<i32>} : memref<1x2x4xf32, #tpu.memory_space<vmem>>, vector<1x1x4xf32>,
    } else {
    }
    return
  }
  func.func @transform_0(%arg0: i32, %arg1: i32) -> (i32, i32, i32, i32) {
    %c0_i32 = arith.constant 0 : i32
    %c0_i32_0 = arith.constant 0 : i32
    %c0_i32_1 = arith.constant 0 : i32
    %c0_i32_2 = arith.constant 0 : i32
    return %arg0, %c0_i32, %c0_i32_0, %c0_i32_1 : i32, i32, i32, i32
  }
  func.func @transform_1(%arg0: i32, %arg1: i32) -> (i32, i32) {
    %c0_i32 = arith.constant 0 : i32
    %c0_i32_0 = arith.constant 0 : i32
    %c0_i32_1 = arith.constant 0 : i32
    return %c0_i32, %c0_i32_0 : i32, i32
  }
  func.func @transform_2(%arg0: i32, %arg1: i32) -> (i32, i32) {
    %c0_i32 = arith.constant 0 : i32
    %c0_i32_0 = arith.constant 0 : i32
    %c0_i32_1 = arith.constant 0 : i32
    return %c0_i32, %c0_i32_0 : i32, i32
  }
  func.func @transform_3(%arg0: i32, %arg1: i32) -> (i32, i32) {
    %c0_i32 = arith.constant 0 : i32
    %c0_i32_0 = arith.constant 0 : i32
    %c0_i32_1 = arith.constant 0 : i32
    return %c0_i32, %c0_i32_0 : i32, i32
  }
  func.func @transform_4(%arg0: i32, %arg1: i32) -> (i32, i32) {
    %c0_i32 = arith.constant 0 : i32
    %c0_i32_0 = arith.constant 0 : i32
    %c0_i32_1 = arith.constant 0 : i32
    return %c0_i32, %c0_i32_0 : i32, i32
  }
  func.func @transform_5(%arg0: i32, %arg1: i32) -> (i32, i32, i32) {
    %c0_i32 = arith.constant 0 : i32
    %c0_i32_0 = arith.constant 0 : i32
    return %arg0, %c0_i32, %arg1 : i32, i32, i32
  }
  func.func @transform_6(%arg0: i32, %arg1: i32) -> (i32, i32, i32) {
    %c0_i32 = arith.constant 0 : i32
    %c0_i32_0 = arith.constant 0 : i32
    %c0_i32_1 = arith.constant 0 : i32
    return %arg0, %c0_i32, %c0_i32_0 : i32, i32, i32
  }
}

module attributes {stable_mosaic.version = 11 : i64} {
  func.func @bn_dropout_kernel(%arg0: i32, %arg1: i32, %arg2: memref<1x4x128xf32, #tpu.memory_space<vmem>>, %arg3: memref<4x1xf32, #tpu.memory_space<vmem>>, %arg4: memref<4x1xf32, #tpu.memory_space<vmem>>, %arg5: memref<1x4x1xf32, #tpu.memory_space<vmem>>, %arg6: memref<1x4x128xf32, #tpu.memory_space<vmem>>) attributes {dimension_semantics = [#tpu.dimension_semantics<parallel>, #tpu.dimension_semantics<parallel>], iteration_bounds = array<i64: 2, 2>, scalar_prefetch = 0 : i64, scratch_operands = 0 : i64, tpu.core_type = #tpu.core_type<tc>, window_params = [{transform_indices = @transform_0, window_bounds = array<i64: 1, 4, 128>}, {pipeline_mode = #tpu.pipeline_mode<synchronous>, transform_indices = @transform_1, window_bounds = array<i64: 4, 1>}, {pipeline_mode = #tpu.pipeline_mode<synchronous>, transform_indices = @transform_2, window_bounds = array<i64: 4, 1>}, {transform_indices = @transform_3, window_bounds = array<i64: 1, 4, 1>}, {transform_indices = @transform_4, window_bounds = array<i64: 1, 4, 128>}]} {
    %c0 = arith.constant 0 : index
    %c0_0 = arith.constant 0 : index
    %c0_1 = arith.constant 0 : index
    %0 = vector.load %arg2[%c0, %c0_0, %c0_1] : memref<1x4x128xf32, #tpu.memory_space<vmem>>, vector<1x4x128xf32>
    %1 = vector.shape_cast %0 : vector<1x4x128xf32> to vector<4x128xf32>
    %c0_2 = arith.constant 0 : index
    %c0_3 = arith.constant 0 : index
    %2 = vector.load %arg3[%c0_2, %c0_3] : memref<4x1xf32, #tpu.memory_space<vmem>>, vector<4x1xf32>
    %3 = vector.broadcast %2 : vector<4x1xf32> to vector<4x128xf32>
    %4 = arith.mulf %1, %3 : vector<4x128xf32>
    %c0_4 = arith.constant 0 : index
    %c0_5 = arith.constant 0 : index
    %5 = vector.load %arg4[%c0_4, %c0_5] : memref<4x1xf32, #tpu.memory_space<vmem>>, vector<4x1xf32>
    %6 = vector.broadcast %5 : vector<4x1xf32> to vector<4x128xf32>
    %7 = arith.addf %4, %6 : vector<4x128xf32>
    %c0_6 = arith.constant 0 : index
    %c0_7 = arith.constant 0 : index
    %c0_8 = arith.constant 0 : index
    %8 = vector.load %arg5[%c0_6, %c0_7, %c0_8] : memref<1x4x1xf32, #tpu.memory_space<vmem>>, vector<1x4x1xf32>
    %9 = vector.shape_cast %8 : vector<1x4x1xf32> to vector<4x1xf32>
    %10 = vector.broadcast %9 : vector<4x1xf32> to vector<4x128xf32>
    %11 = arith.mulf %7, %10 : vector<4x128xf32>
    %c0_9 = arith.constant 0 : index
    %c0_10 = arith.constant 0 : index
    %c0_11 = arith.constant 0 : index
    %12 = vector.load %arg6[%c0_9, %c0_10, %c0_11] : memref<1x4x128xf32, #tpu.memory_space<vmem>>, vector<1x4x128xf32>
    %13 = vector.shape_cast %12 : vector<1x4x128xf32> to vector<4x128xf32>
    %14 = vector.shape_cast %11 : vector<4x128xf32> to vector<1x4x128xf32>
    tpu.vector_store %arg6[%c0_9, %c0_10, %c0_11], %14 {strides = array<i32>} : memref<1x4x128xf32, #tpu.memory_space<vmem>>, vector<1x4x128xf32>,
    return
  }
  func.func @transform_0(%arg0: i32, %arg1: i32) -> (i32, i32, i32) {
    %c0_i32 = arith.constant 0 : i32
    %c0_i32_0 = arith.constant 0 : i32
    return %arg0, %c0_i32, %arg1 : i32, i32, i32
  }
  func.func @transform_1(%arg0: i32, %arg1: i32) -> (i32, i32) {
    %c0_i32 = arith.constant 0 : i32
    %c0_i32_0 = arith.constant 0 : i32
    %c0_i32_1 = arith.constant 0 : i32
    return %c0_i32, %c0_i32_0 : i32, i32
  }
  func.func @transform_2(%arg0: i32, %arg1: i32) -> (i32, i32) {
    %c0_i32 = arith.constant 0 : i32
    %c0_i32_0 = arith.constant 0 : i32
    %c0_i32_1 = arith.constant 0 : i32
    return %c0_i32, %c0_i32_0 : i32, i32
  }
  func.func @transform_3(%arg0: i32, %arg1: i32) -> (i32, i32, i32) {
    %c0_i32 = arith.constant 0 : i32
    %c0_i32_0 = arith.constant 0 : i32
    %c0_i32_1 = arith.constant 0 : i32
    return %arg0, %c0_i32, %c0_i32_0 : i32, i32, i32
  }
  func.func @transform_4(%arg0: i32, %arg1: i32) -> (i32, i32, i32) {
    %c0_i32 = arith.constant 0 : i32
    %c0_i32_0 = arith.constant 0 : i32
    return %arg0, %c0_i32, %arg1 : i32, i32, i32
  }
}

</mosaic_0001>

<bundles_post_ra>
// kernel: tile.8
= control target key start
LH: loop header
LB: loop body
LE: loop exit
PB: predicated region body
PF: predicated region fallthrough
CT: control target
= control target key end

     0   :  { %s22_s0 = inlined_call_operand.vmem [shape: f32[4], index: 0, kind: input, shape index: {}]   ;;  %s23_s1 = inlined_call_operand.vmem [shape: f32[4,4], index: 1, kind: output, shape index: {}]  }
   0x1   :  { %v4_v0 = vld [vmem:[%s22_s0] ss:$0 sm:$0xff] }
   0x2   :  { %5 = vst [vmem:[%s23_s1] sm:$0xf] %v4_v0 }

// kernel: tile.9
= control target key start
LH: loop header
LB: loop body
LE: loop exit
PB: predicated region body
PF: predicated region fallthrough
CT: control target
= control target key end

     0   :  { %vm7_vm0 = vcmask 31744   ;;  %s37_s8 = smov 4   ;;  %s38_s9 = smov 8   ;;  %vm13_vm1 = vcmask 130144   ;;  %vm19_vm2 = vcmask 97344   ;;  %vm25_vm3 = vcmask 64544   ;;  %s55_s0 = inlined_call_operand.vmem [shape: f32[4,4], index: 0, kind: input, shape index: {}]   ;;  %s56_s1 = inlined_call_operand.vmem [shape: f32[1,16], index: 1, kind: output, shape index: {}]  }
   0x1   :  { %v4_v0 = vld [vmem:[%s55_s0] sm:$0xf]  ;;  %s36_s0 = smov 12  }
   0x2   :  { %5 = vst [vmem:[#allocation1] sm:$0xf] %v4_v0 }
   0x9   :  { %v10_v1 = vld [vmem:[#allocation1 + $0x3] sm:$0x1]   ;;  %v22_v2 = vld [vmem:[#allocation1 + $0x1] sm:$0x1]   ;;  %v6_v3 = vld [vmem:[#allocation1] sm:$0x1]  }
   0xa   :  { %11 = vrot.lane.b32.xlu0 %v10_v1, %s36_s0  ;;  %23 = vrot.lane.b32.xlu1 %v22_v2, %s37_s8  ;;  %v16_v4 = vld [vmem:[#allocation1 + $0x2] sm:$0x1]   ;;  %8 = vst.msk [vmem:[#allocation0] sm:$0x1] %vm7_vm0, %v6_v3  }
   0xe   :  { %17 = vrot.lane.b32.xlu0 %v16_v4, %s38_s9 }
  0x7c   :  { %v12_v5 = vpop.permute.xlu0 %11   ;;  %v24_v6 = vpop.permute.xlu1 %23  }
  0x7d   :  { %14 = vst.msk [vmem:[#allocation0] sm:$0x1] %vm13_vm1, %v12_v5  }
  0x80   :  { %v18_v7 = vpop.permute.xlu0 %17  }
  0x81   :  { %20 = vst.msk [vmem:[#allocation0] sm:$0x1] %vm19_vm2, %v18_v7  }
  0x82   :  { %26 = vst.msk [vmem:[#allocation0] sm:$0x1] %vm25_vm3, %v24_v6  }
  0x89   :  { %v30_v8 = vld [vmem:[#allocation0] sm:$0x1] }
  0x8a   :  { %32 = vst [vmem:[%s56_s1] sm:$0x1] %v30_v8 }

// kernel: conv_up_block_forward.7
= control target key start
LH: loop header
LB: loop body
LE: loop exit
PB: predicated region body
PF: predicated region fallthrough
CT: control target
= control target key end

     0   :  { %s488_s15 = smov 0   ;;  %s490_s16 = smov 0   ;;  %s552_s0 = inlined_call_operand.vmem [shape: f32[2,4,256], index: 0, kind: input, shape index: {}]   ;;  %s553_s1 = inlined_call_operand.vmem [shape: f32[4,1], index: 1, kind: input, shape index: {}]   ;;  %s554_s2 = inlined_call_operand.vmem [shape: f32[4,1], index: 2, kind: input, shape index: {}]   ;;  %s555_s3 = inlined_call_operand.vmem [shape: f32[2,4,1], index: 3, kind: input, shape index: {}]   ;;  %s556_s4 = inlined_call_operand.vmem [shape: f32[2,4,256], index: 4, kind: output, shape index: {}]  }
   0x1   :  { %s492_s17 = smov 0   ;;  %s494_s18 = smov 0  }
   0x2   :  { %s496_s19 = smov 0  }
   0x3 LB: > { %s23_s20 = sadd.s32 1, %s452_s17  ;;  %s26_s21 = sadd.s32 1, %s456_s18  ;;  %s460_s19 = sphi %s496_s19, %s14_s19   ;;  %s456_s18 = sphi %s494_s18, %s560_s18   ;;  %s452_s17 = sphi %s492_s17, %s559_s17   ;;  %s448_s16 = sphi %s490_s16, %s558_s16   ;;  %s444_s15 = sphi %s488_s15, %s557_s15  }
   0x4   : > { %p24_p0 = scmp.ge.s32.totalorder %s23_s20, 2  ;;  %p371_p1 = scmp.ge.s32.totalorder %s460_s19, 1 }
   0x5   : > { %p190_p2 = scmp.lt.s32.totalorder %s460_s19, 5 }
   0x6   : > { %s562_s20 = smov (%p24_p0, %s23_s20), 0  ;;  %s564_s21 = smov (!%p24_p0, %s26_s21), %s456_s18 }
   0x7   : > { %p191_p3 = pnand %p371_p1, %p190_p2  ;;  %p28_p4 = scmp.ge.s32.totalorder %s564_s21, 2 }
   0x8   : > { %v247_v0 = vld [vmem:[%s553_s1] sm:$0xf] (!%p191_p3)  ;;  %p226_p5 = scmp.lt.s32.totalorder (!%p191_p3), %s448_s16, 1  ;;  %v462_v1 = vmov (!%p191_p3), 0   ;;  %p228_p6 = scmp.lt.s32.totalorder (!%p191_p3), %s444_s15, 1 }
   0x9   : > { %s566_s21 = smov (%p28_p4, %s564_s21), 0  ;;  %194 = sbr.rel (%p191_p3) target bundleno = 151 (0x97), region = 36 }
   0xa   : > { %420 = vset.pattern.permute.xlu0 (!%p191_p3), %v462_v1  ;;  %421 = vset.pattern.permute.xlu1 (!%p191_p3), %v462_v1  ;;  %v254_v2 = vld [vmem:[%s554_s2] sm:$0xf] (!%p191_p3) }
   0xb   : > { %250 = vperm.xlu0 (!%p191_p3), %420, %v247_v0  }
   0xf   : > { %257 = vperm.xlu0 (!%p191_p3), %420, %v254_v2  }
  0x10   : > { %s568_s16 = smov (!%p226_p5, %s448_s16), 1  ;;  %s570_s15 = smov (!%p228_p6, %s444_s15), 1 }
  0x11   : > { %s374_s26 = sshll.u32 %s568_s16, 2  ;;  %s372_s30 = sshll.u32 %s568_s16, 1 }
  0x12   : > { %s237_s29 = scalar_lea.vmem %s555_s3, %s374_s26  ;;  %s231_s5 = sadd.s32 %s372_s30, %s570_s15 }
  0x13   : > { %v261_v3 = vld [vmem:[%s237_s29] sm:$0xf]  ;;  %s373_s6 = sshll.u32 %s231_s5, 2 }
  0x14   : > { %264 = vperm.xlu1 %421, %v261_v3   ;;  %s233_s9 = scalar_lea.vmem %s552_s0, %s373_s6  ;;  %s245_s12 = scalar_lea.vmem %s556_s4, %s373_s6 }
  0x15   : > { %v246_v5 = vld [vmem:[%s233_s9] sm:$0xf] }
  0x8a   : > { %v251_v4 = vpop.permute.xlu0 %250 }
  0x8b   : > { %v253_v6 = vmul.f32 %v251_v4, %v246_v5 }
  0x8e   : > { %v258_v7 = vpop.permute.xlu0 %257 }
  0x8f   : > { %v260_v8 = vadd.f32 %v258_v7, %v253_v6 }
  0x93   : > { %v265_v9 = vpop.permute.xlu1 %264 }
  0x94   : > { %v267_v10 = vmul.f32 %v265_v9, %v260_v8 }
  0x96   : > { %268 = vst [vmem:[%s245_s12] sm:$0xf] %v267_v10 }
  0x97 PF: > { %s14_s19 = sadd.s32 1, %s460_s19   ;;  %s557_s15 = smov %s452_s17 }
  0x98   : > { %p11_p7 = scmp.ge.s32.totalorder %s14_s19, 6   ;;  %s558_s16 = smov %s456_s18 }
  0x99   : > { %s559_s17 = smov %s562_s20  ;;  %s560_s18 = smov %s566_s21 }
  0x9a   :  { %13 = sbr.rel (!%p11_p7) target bundleno = 3 (0x3), region = 69 }

// kernel: conv_up_block_forward.4
= control target key start
LH: loop header
LB: loop body
LE: loop exit
PB: predicated region body
PF: predicated region fallthrough
CT: control target
= control target key end

     0   :  { %s526_s12 = smov 0   ;;  %s583_s0 = inlined_call_operand.vmem [shape: bf16[2,8,8,8], index: 0, kind: input, shape index: {}]   ;;  %s584_s1 = inlined_call_operand.vmem [shape: bf16[8,16], index: 1, kind: input, shape index: {}]   ;;  %s585_s2 = inlined_call_operand.vmem [shape: f32[1,16], index: 2, kind: input, shape index: {}]   ;;  %s586_s3 = inlined_call_operand.vmem [shape: bf16[2,8,2,8,8], index: 3, kind: output, shape index: {}]  }
   0x1 LB: > { %s419_s13 = sadd.s32 4294967295, %s503_s12   ;;  %p423_p0 = scmp.ge.s32.totalorder %s503_s12, 1  ;;  %s503_s12 = sphi %s526_s12, %s13_s12  }
   0x2   : > { %p137_p1 = scmp.lt.s32.totalorder %s503_s12, 3 }
   0x4   : > { %p138_p2 = pnand %p423_p0, %p137_p1 }
   0x5   : > { %v180_v0 = vld [vmem:[%s584_s1] sm:$0xf] (!%p138_p2)  ;;  %vm221_vm0 = vcmask (!%p138_p2), 1043456   ;;  %p161_p3 = scmp.lt.s32.totalorder (!%p138_p2), %s419_s13, 1  ;;  %vm208_vm1 = vcmask (!%p138_p2), 64512   ;;  %vm298_vm2 = vcmask (!%p138_p2), 60416  }
   0x6   : > { %141 = sbr.rel (%p138_p2) target bundleno = 363 (0x16b), region = 32  ;;  %482 = vmatprep.subr.msk.bf16.mxu0 (!%p138_p2), %vm221_vm0, %v180_v0  ;;  %483 = vmatprep.subr.msk.bf16.mxu1 (!%p138_p2), %vm221_vm0, %v180_v0  ;;  %v223_v1 = vsel (!%p138_p2), %vm221_vm0, %v180_v0, 0  ;;  %v428_v6 = vld [vmem:[%s585_s2] ss:$0 sm:$0xff] (!%p138_p2)  ;;  %s505_s26 = smov (!%p138_p2), 120  }
   0x7   : > { %471 = vmatpush3.bf16.msra.mxu0 (!%p138_p2), %v223_v1  ;;  %481 = vmatpush3.bf16.msra.mxu1 (!%p138_p2), %v223_v1 }
   0xd   : > { %s588_s13 = smov (!%p161_p3, %s419_s13), 1 }
   0xe   : > { %s455_s16 = sshll.u32 %s588_s13, 5  ;;  %s456_s22 = sshll.u32 %s588_s13, 6 }
   0xf   : > { %s165_s19 = scalar_lea.vmem %s583_s0, %s455_s16  ;;  %s546_s25 = scalar_lea.vmem %s586_s3, %s456_s22 }
  0x10   : > { %v493_v2 = vld [vmem:[%s165_s19] sm:$0xff]   ;;  %v494_v3 = vld [vmem:[%s165_s19 + $0x8] sm:$0xff]   ;;  %v495_v4 = vld [vmem:[%s165_s19 + $0x10] sm:$0xff]  }
  0x11   : > { %472 = vmatprep.mubr.msk.bf16.mxu0 %vm208_vm1, %v493_v2  ;;  %v496_v5 = vld [vmem:[%s165_s19 + $0x18] sm:$0xff]   ;;  %476 = vmatprep.mubr.msk.bf16.mxu1 %vm208_vm1, %v495_v4 }
  0x12   : > { %473 = vmatmul.mubr.msk.bf16.vlgmr.msra.gmra.mrb[0].mxu0 %vm208_vm1, %v494_v3  ;;  %477 = vmatmul.mubr.msk.bf16.vlgmr.msra.gmra.mrb[0].mxu1 %vm208_vm1, %v496_v5 }
  0xe5   : > { %v474_v7 = vpop.f32.mrb[0].mxu0  ;;  %v478_v11 = vpop.f32.mrb[0].mxu1 }
  0xe6   : > { %v268_v8 = vadd.f32 %v474_v7, %v428_v6  ;;  %v259_v9 = vpop.f32.mrb[1].mxu0  ;;  %v284_v14 = vadd.f32 %v478_v11, %v428_v6  ;;  %v275_v16 = vpop.f32.mrb[1].mxu1 }
  0xe7   : > { %v260_v10 = vadd.f32 %v428_v6, %v259_v9  ;;  %v475_v12 = vpop.f32.mrb[2].mxu0  ;;  %v276_v19 = vadd.f32 %v428_v6, %v275_v16  ;;  %v479_v21 = vpop.f32.mrb[2].mxu1 }
  0xe8   : > { %v292_v13 = vpack.c.bf16 %v268_v8, %v268_v8  ;;  %v271_v15 = vadd.f32 %v475_v12, %v428_v6  ;;  %v262_v17 = vpop.f32.mrb[3].mxu0  ;;  %v296_v22 = vpack.c.bf16 %v284_v14, %v284_v14  ;;  %v287_v24 = vadd.f32 %v479_v21, %v428_v6  ;;  %v278_v25 = vpop.f32.mrb[3].mxu1 }
  0xe9   : > { %v290_v18 = vpack.c.bf16 %v260_v10, %v260_v10  ;;  %v263_v20 = vadd.f32 %v428_v6, %v262_v17  ;;  %v294_v26 = vpack.c.bf16 %v276_v19, %v276_v19  ;;  %v279_v28 = vadd.f32 %v428_v6, %v278_v25 }
  0xea   : > { %301 = vst.msk [vmem:[%s546_s25 + $0x10] sm:$0xf] %vm298_vm2, %v292_v13  ;;  %v293_v23 = vpack.c.bf16 %v271_v15, %v271_v15  ;;  %335 = vrot.lane.b32.xlu1 %v292_v13, %s505_s26  ;;  %305 = vst.msk [vmem:[%s546_s25 + $0x30] sm:$0xf] %vm298_vm2, %v296_v22  ;;  %v297_v29 = vpack.c.bf16 %v287_v24, %v287_v24 }
  0xeb   : > { %299 = vst.msk [vmem:[%s546_s25] sm:$0xf] %vm298_vm2, %v290_v18  ;;  %v291_v27 = vpack.c.bf16 %v263_v20, %v263_v20  ;;  %331 = vrot.lane.b32.xlu0 %v290_v18, %s505_s26  ;;  %303 = vst.msk [vmem:[%s546_s25 + $0x20] sm:$0xf] %vm298_vm2, %v294_v26  ;;  %v295_v30 = vpack.c.bf16 %v279_v28, %v279_v28 }
  0xec   : > { %302 = vst.msk [vmem:[%s546_s25 + $0x18] sm:$0xf] %vm298_vm2, %v293_v23  ;;  %306 = vst.msk [vmem:[%s546_s25 + $0x38] sm:$0xf] %vm298_vm2, %v297_v29 }
  0xed   : > { %300 = vst.msk [vmem:[%s546_s25 + $0x8] sm:$0xf] %vm298_vm2, %v291_v27  ;;  %304 = vst.msk [vmem:[%s546_s25 + $0x28] sm:$0xf] %vm298_vm2, %v295_v30 }
  0xee   : > { %337 = vrot.lane.b32.xlu1 %v293_v23, %s505_s26 }
  0xef   : > { %339 = vrot.lane.b32.xlu0 %v294_v26, %s505_s26 }
  0xf2   : > { %341 = vrot.lane.b32.xlu1 %v295_v30, %s505_s26 }
  0xf3   : > { %333 = vrot.lane.b32.xlu0 %v291_v27, %s505_s26 }
  0xf6   : > { %345 = vrot.lane.b32.xlu1 %v297_v29, %s505_s26 }
  0xf7   : > { %343 = vrot.lane.b32.xlu0 %v296_v22, %s505_s26 }
 0x15c   : > { %v336_v31 = vpop.permute.xlu1 %335 }
 0x15d   : > { %447 = vst.msk [vmem:[%s546_s25 + $0x14] sm:$0xf] %vm298_vm2, %v336_v31  ;;  %v332_v32 = vpop.permute.xlu0 %331 }
 0x15e   : > { %445 = vst.msk [vmem:[%s546_s25 + $0x4] sm:$0xf] %vm298_vm2, %v332_v32 }
 0x160   : > { %v338_v33 = vpop.permute.xlu1 %337 }
 0x161   : > { %448 = vst.msk [vmem:[%s546_s25 + $0x1c] sm:$0xf] %vm298_vm2, %v338_v33  ;;  %v340_v34 = vpop.permute.xlu0 %339 }
 0x162   : > { %449 = vst.msk [vmem:[%s546_s25 + $0x24] sm:$0xf] %vm298_vm2, %v340_v34 }
 0x164   : > { %v342_v35 = vpop.permute.xlu1 %341 }
 0x165   : > { %450 = vst.msk [vmem:[%s546_s25 + $0x2c] sm:$0xf] %vm298_vm2, %v342_v35  ;;  %v334_v36 = vpop.permute.xlu0 %333 }
 0x166   : > { %446 = vst.msk [vmem:[%s546_s25 + $0xc] sm:$0xf] %vm298_vm2, %v334_v36 }
 0x168   : > { %v346_v37 = vpop.permute.xlu1 %345 }
 0x169   : > { %452 = vst.msk [vmem:[%s546_s25 + $0x3c] sm:$0xf] %vm298_vm2, %v346_v37  ;;  %v344_v38 = vpop.permute.xlu0 %343 }
 0x16a   : > { %451 = vst.msk [vmem:[%s546_s25 + $0x34] sm:$0xf] %vm298_vm2, %v344_v38 }
 0x16b PF: > { %s13_s12 = sadd.s32 1, %s503_s12  }
 0x16c   : > { %p10_p4 = scmp.ge.s32.totalorder %s13_s12, 4  }
 0x16e   :  { %12 = sbr.rel (!%p10_p4) target bundleno = 1 (0x1), region = 63 }

// kernel: conv_up_block_forward.6
= control target key start
LH: loop header
LB: loop body
LE: loop exit
PB: predicated region body
PF: predicated region fallthrough
CT: control target
= control target key end

     0   :  { %s3113_s21 = smov 0   ;;  %s3115_s22 = smov 0   ;;  %s4054_s0 = inlined_call_operand.vmem [shape: bf16[2,16,16,4], index: 0, kind: input, shape index: {}]   ;;  %s4055_s1 = inlined_call_operand.vmem [shape: f32[1,4], index: 1, kind: input, shape index: {}]   ;;  %s4056_s2 = inlined_call_operand.vmem [shape: f32[1,4], index: 2, kind: input, shape index: {}]   ;;  %s4057_s3 = inlined_call_operand.vmem [shape: bf16[36,4], index: 3, kind: input, shape index: {}]   ;;  %s4058_s4 = inlined_call_operand.vmem [shape: f32[1,4], index: 4, kind: input, shape index: {}]   ;;  %s4059_s5 = inlined_call_operand.vmem [shape: f32[2,4,256], index: 5, kind: output, shape index: {0}]   ;;  %s4060_s6 = inlined_call_operand.vmem [shape: f32[2,2,4], index: 6, kind: output, shape index: {1}]  }
   0x1   :  { %s3117_s23 = smov 0   ;;  %s3119_s24 = smov 0  }
   0x2   :  { %s3121_s25 = smov 0  }
   0x3 LB: > { %s26_s26 = sadd.s32 1, %s3059_s23  ;;  %s29_s27 = sadd.s32 1, %s3063_s24  ;;  %s3067_s25 = sphi %s3121_s25, %s17_s25   ;;  %s3063_s24 = sphi %s3119_s24, %s4072_s24   ;;  %s3059_s23 = sphi %s3117_s23, %s4071_s23   ;;  %s3055_s22 = sphi %s3115_s22, %s4070_s22   ;;  %s3051_s21 = sphi %s3113_s21, %s4069_s21  }
   0x4   : > { %p27_p0 = scmp.ge.s32.totalorder %s26_s26, 2  ;;  %p2546_p1 = scmp.ge.s32.totalorder %s3067_s25, 1 }
   0x5   : > { %p229_p2 = scmp.lt.s32.totalorder %s3067_s25, 5 }
   0x6   : > { %s4074_s26 = smov (%p27_p0, %s26_s26), 0  ;;  %s4076_s27 = smov (!%p27_p0, %s29_s27), %s3063_s24 }
   0x7   : > { %p230_p3 = pnand %p2546_p1, %p229_p2  ;;  %p31_p4 = scmp.ge.s32.totalorder %s4076_s27, 2 }
   0x8   : > { %p266_p5 = scmp.lt.s32.totalorder (!%p230_p3), %s3055_s22, 1  ;;  %p273_p6 = scmp.lt.s32.totalorder (!%p230_p3), %s3051_s21, 1 }
   0x9   : > { %s4078_s27 = smov (%p31_p4, %s4076_s27), 0  ;;  %233 = sbr.rel (%p230_p3) target bundleno = 772 (0x304), region = 40 }
   0xa   : > { %p2552_p7 = scmp.ne.s32.totalorder (!%p230_p3), %s3051_s21, 0 }
  0x10   : > { %s4080_s22 = smov (!%p266_p5, %s3055_s22), 1  ;;  %287 = sbr.rel (%p2552_p7) target bundleno = 140 (0x8c), region = 44 }
  0x11   : > { %s274_s28 = scalar_select %p273_p6, %s3051_s21, 1 }
  0x12   : > { %s2747_s29 = sshll.u32 %s4080_s22, 7  ;;  %s2549_s30 = sshll.u32 %s4080_s22, 1  ;;  %vm288_vm0 = vcmask (!%p2552_p7), 27648   ;;  %vm291_vm1 = vcmask (!%p2552_p7), 24576   ;;  %vm298_vm2 = vsmask.f32 (!%p2552_p7), 256 }
  0x13   : > { %s3150_s9 = scalar_lea.vmem %s4054_s0, %s2747_s29  ;;  %s276_s10 = sadd.s32 %s2549_s30, %s274_s28  ;;  %v3069_v0 = vmov (!%p2552_p7), 0   ;;  %vm3172_vm3 = vmand (!%p2552_p7), %vm291_vm1, %vm298_vm2  ;;  %vm354_vm4 = vsmask.f32 (!%p2552_p7), 7938  ;;  %v303_v2 = vld [vmem:[#allocation2 + $0xc] sm:$0x1] (!%p2552_p7) }
  0x14   : > { %s2550_s11 = sshll.u32 %s276_s10, 2  ;;  %s3155_s14 = scalar_lea.vmem %s4060_s6, %s2549_s30  ;;  %289 = vst.msk [vmem:[#allocation2] sm:$0xf] (!%p2552_p7), %vm288_vm0, %v3069_v0  ;;  %290 = vst.msk [vmem:[#allocation2 + $0x4] sm:$0xf] (!%p2552_p7), %vm288_vm0, %v3069_v0  ;;  %v304_v4 = vsel (!%p2552_p7), %vm3172_vm3, 0, %v303_v2 }
  0x15   : > { %s3160_s17 = scalar_lea.vmem %s4059_s5, %s2550_s11  ;;  %294 = vst.msk [vmem:[#allocation2 + $0xcc] sm:$0xf] (!%p2552_p7), %vm288_vm0, %v3069_v0  ;;  %295 = vst.msk [vmem:[#allocation2 + $0xd0] sm:$0xf] (!%p2552_p7), %vm288_vm0, %v3069_v0  ;;  %v306_v3 = vld [vmem:[#allocation2 + $0x18] sm:$0x1] (!%p2552_p7) }
  0x16   : > { %292 = vst.msk [vmem:[#allocation2 + $0x8] sm:$0x1] (!%p2552_p7), %vm291_vm1, %v3069_v0  ;;  %296 = vst.msk [vmem:[#allocation2 + $0xd4] sm:$0x1] (!%p2552_p7), %vm291_vm1, %v3069_v0  ;;  %v307_v5 = vsel (!%p2552_p7), %vm3172_vm3, 0, %v306_v3  ;;  %v2782_v45 = vld [vmem:[%s3150_s9] sm:$0xff] (!%p2552_p7)  }
  0x17   : > { %v309_v6 = vld [vmem:[#allocation2 + $0x24] sm:$0x1]  ;;  %v312_v7 = vld [vmem:[#allocation2 + $0x30] sm:$0x1]  ;;  %305 = vst [vmem:[#allocation2 + $0xc] sm:$0x1] %v304_v4  ;;  %vm3199_vm5 = vmand %vm291_vm1, %vm354_vm4  ;;  %v2783_v3 = vunpack.c.l.bf16 %v2782_v45  ;;  %v2784_v4 = vunpack.c.h.bf16 %v2782_v45 }
  0x18   : > { %308 = vst [vmem:[#allocation2 + $0x18] sm:$0x1] %v307_v5  ;;  %v310_v8 = vsel %vm3172_vm3, 0, %v309_v6  ;;  %v313_v9 = vsel %vm3172_vm3, 0, %v312_v7  ;;  %v315_v10 = vld [vmem:[#allocation2 + $0x3c] sm:$0x1]  ;;  %vm3283_vm7 = vmand %vm288_vm0, %vm354_vm4 }
  0x19   : > { %v318_v11 = vld [vmem:[#allocation2 + $0x48] sm:$0x1]  ;;  %311 = vst [vmem:[#allocation2 + $0x24] sm:$0x1] %v310_v8  ;;  %314 = vst [vmem:[#allocation2 + $0x30] sm:$0x1] %v313_v9 }
  0x1a   : > { %v316_v12 = vsel %vm3172_vm3, 0, %v315_v10  ;;  %v319_v13 = vsel %vm3172_vm3, 0, %v318_v11  ;;  %v321_v14 = vld [vmem:[#allocation2 + $0x54] sm:$0x1]  ;;  %v324_v15 = vld [vmem:[#allocation2 + $0x60] sm:$0x1] }
  0x1b   : > { %317 = vst [vmem:[#allocation2 + $0x3c] sm:$0x1] %v316_v12  ;;  %320 = vst [vmem:[#allocation2 + $0x48] sm:$0x1] %v319_v13  ;;  %v322_v16 = vsel %vm3172_vm3, 0, %v321_v14  ;;  %v325_v17 = vsel %vm3172_vm3, 0, %v324_v15 }
  0x1c   : > { %v327_v18 = vld [vmem:[#allocation2 + $0x6c] sm:$0x1]  ;;  %v330_v19 = vld [vmem:[#allocation2 + $0x78] sm:$0x1]  ;;  %323 = vst [vmem:[#allocation2 + $0x54] sm:$0x1] %v322_v16 }
  0x1d   : > { %326 = vst [vmem:[#allocation2 + $0x60] sm:$0x1] %v325_v17  ;;  %v328_v20 = vsel %vm3172_vm3, 0, %v327_v18  ;;  %v331_v21 = vsel %vm3172_vm3, 0, %v330_v19  ;;  %v333_v22 = vld [vmem:[#allocation2 + $0x84] sm:$0x1] }
  0x1e   : > { %v336_v23 = vld [vmem:[#allocation2 + $0x90] sm:$0x1]  ;;  %329 = vst [vmem:[#allocation2 + $0x6c] sm:$0x1] %v328_v20  ;;  %332 = vst [vmem:[#allocation2 + $0x78] sm:$0x1] %v331_v21 }
  0x1f   : > { %v334_v25 = vsel %vm3172_vm3, 0, %v333_v22  ;;  %v337_v26 = vsel %vm3172_vm3, 0, %v336_v23  ;;  %v339_v27 = vld [vmem:[#allocation2 + $0x9c] sm:$0x1]  ;;  %v342_v28 = vld [vmem:[#allocation2 + $0xa8] sm:$0x1] }
  0x20   : > { %335 = vst [vmem:[#allocation2 + $0x84] sm:$0x1] %v334_v25  ;;  %338 = vst [vmem:[#allocation2 + $0x90] sm:$0x1] %v337_v26  ;;  %v340_v29 = vsel %vm3172_vm3, 0, %v339_v27  ;;  %v343_v30 = vsel %vm3172_vm3, 0, %v342_v28 }
  0x21   : > { %v345_v31 = vld [vmem:[#allocation2 + $0xb4] sm:$0x1]  ;;  %v348_v32 = vld [vmem:[#allocation2 + $0xc0] sm:$0x1]  ;;  %341 = vst [vmem:[#allocation2 + $0x9c] sm:$0x1] %v340_v29 }
  0x22   : > { %344 = vst [vmem:[#allocation2 + $0xa8] sm:$0x1] %v343_v30  ;;  %v346_v33 = vsel %vm3172_vm3, 0, %v345_v31  ;;  %v349_v34 = vsel %vm3172_vm3, 0, %v348_v32  ;;  %v359_v35 = vld [vmem:[#allocation2 + $0x14] sm:$0x1] }
  0x23   : > { %v362_v36 = vld [vmem:[#allocation2 + $0x20] sm:$0x1]  ;;  %347 = vst [vmem:[#allocation2 + $0xb4] sm:$0x1] %v346_v33  ;;  %350 = vst [vmem:[#allocation2 + $0xc0] sm:$0x1] %v349_v34 }
  0x24   : > { %v360_v37 = vsel %vm3199_vm5, 0, %v359_v35  ;;  %v363_v38 = vsel %vm3199_vm5, 0, %v362_v36  ;;  %v365_v39 = vld [vmem:[#allocation2 + $0x2c] sm:$0x1]  ;;  %v368_v40 = vld [vmem:[#allocation2 + $0x38] sm:$0x1] }
  0x25   : > { %361 = vst [vmem:[#allocation2 + $0x14] sm:$0x1] %v360_v37  ;;  %364 = vst [vmem:[#allocation2 + $0x20] sm:$0x1] %v363_v38  ;;  %v366_v41 = vsel %vm3199_vm5, 0, %v365_v39  ;;  %v369_v42 = vsel %vm3199_vm5, 0, %v368_v40 }
  0x26   : > { %v371_v43 = vld [vmem:[#allocation2 + $0x44] sm:$0x1]  ;;  %v374_v44 = vld [vmem:[#allocation2 + $0x50] sm:$0x1]  ;;  %367 = vst [vmem:[#allocation2 + $0x2c] sm:$0x1] %v366_v41 }
  0x27   : > { %370 = vst [vmem:[#allocation2 + $0x38] sm:$0x1] %v369_v42  ;;  %v372_v46 = vsel %vm3199_vm5, 0, %v371_v43  ;;  %v375_v47 = vsel %vm3199_vm5, 0, %v374_v44  ;;  %v377_v48 = vld [vmem:[#allocation2 + $0x5c] sm:$0x1] }
  0x28   : > { %v380_v49 = vld [vmem:[#allocation2 + $0x68] sm:$0x1]  ;;  %373 = vst [vmem:[#allocation2 + $0x44] sm:$0x1] %v372_v46  ;;  %376 = vst [vmem:[#allocation2 + $0x50] sm:$0x1] %v375_v47 }
  0x29   : > { %v378_v50 = vsel %vm3199_vm5, 0, %v377_v48  ;;  %v381_v51 = vsel %vm3199_vm5, 0, %v380_v49  ;;  %v383_v52 = vld [vmem:[#allocation2 + $0x74] sm:$0x1]  ;;  %v386_v53 = vld [vmem:[#allocation2 + $0x80] sm:$0x1] }
  0x2a   : > { %379 = vst [vmem:[#allocation2 + $0x5c] sm:$0x1] %v378_v50  ;;  %382 = vst [vmem:[#allocation2 + $0x68] sm:$0x1] %v381_v51  ;;  %v384_v54 = vsel %vm3199_vm5, 0, %v383_v52  ;;  %v387_v55 = vsel %vm3199_vm5, 0, %v386_v53 }
  0x2b   : > { %v389_v56 = vld [vmem:[#allocation2 + $0x8c] sm:$0x1]  ;;  %v392_v57 = vld [vmem:[#allocation2 + $0x98] sm:$0x1]  ;;  %385 = vst [vmem:[#allocation2 + $0x74] sm:$0x1] %v384_v54 }
  0x2c   : > { %388 = vst [vmem:[#allocation2 + $0x80] sm:$0x1] %v387_v55  ;;  %v390_v58 = vsel %vm3199_vm5, 0, %v389_v56  ;;  %v393_v59 = vsel %vm3199_vm5, 0, %v392_v57  ;;  %v395_v60 = vld [vmem:[#allocation2 + $0xa4] sm:$0x1] }
  0x2d   : > { %v398_v61 = vld [vmem:[#allocation2 + $0xb0] sm:$0x1]  ;;  %391 = vst [vmem:[#allocation2 + $0x8c] sm:$0x1] %v390_v58  ;;  %394 = vst [vmem:[#allocation2 + $0x98] sm:$0x1] %v393_v59 }
  0x2e   : > { %v396_v62 = vsel %vm3199_vm5, 0, %v395_v60  ;;  %v399_v63 = vsel %vm3199_vm5, 0, %v398_v61  ;;  %v401_v0 = vld [vmem:[#allocation2 + $0xbc] sm:$0x1]  ;;  %v404_v2 = vld [vmem:[#allocation2 + $0xc8] sm:$0x1] }
  0x2f   : > { %397 = vst [vmem:[#allocation2 + $0xa4] sm:$0x1] %v396_v62  ;;  %400 = vst [vmem:[#allocation2 + $0xb0] sm:$0x1] %v399_v63  ;;  %v402_v5 = vsel %vm3199_vm5, 0, %v401_v0  ;;  %v405_v6 = vsel %vm3199_vm5, 0, %v404_v2 }
  0x30   : > { %v300_v7 = vld [vmem:[#allocation2] sm:$0x1]  ;;  %v351_v8 = vld [vmem:[#allocation2 + $0xcc] sm:$0x1]  ;;  %403 = vst [vmem:[#allocation2 + $0xbc] sm:$0x1] %v402_v5 }
  0x31   : > { %406 = vst [vmem:[#allocation2 + $0xc8] sm:$0x1] %v405_v6  ;;  %v301_v9 = vsel %vm3172_vm3, 0, %v300_v7  ;;  %v352_v10 = vsel %vm3172_vm3, 0, %v351_v8  ;;  %v356_v11 = vld [vmem:[#allocation2 + $0x8] sm:$0x1] }
  0x32   : > { %v407_v12 = vld [vmem:[#allocation2 + $0xd4] sm:$0x1]  ;;  %302 = vst [vmem:[#allocation2] sm:$0x1] %v301_v9  ;;  %353 = vst [vmem:[#allocation2 + $0xcc] sm:$0x1] %v352_v10 }
  0x33   : > { %v357_v13 = vsel %vm3199_vm5, 0, %v356_v11  ;;  %v408_v14 = vsel %vm3199_vm5, 0, %v407_v12  ;;  %v3259_v15 = vld [vmem:[%s4055_s1] ss:$0 sm:$0xff]  ;;  %v2845_v19 = vld [vmem:[%s3150_s9 + $0x8] sm:$0xff]   ;;  %v2846_v24 = vld [vmem:[%s3150_s9 + $0x10] sm:$0xff]  }
  0x34   : > { %v3264_v16 = vld [vmem:[%s4056_s2] ss:$0 sm:$0xff]  ;;  %358 = vst [vmem:[#allocation2 + $0x8] sm:$0x1] %v357_v13  ;;  %409 = vst [vmem:[#allocation2 + $0xd4] sm:$0x1] %v408_v14  ;;  %v481_v17 = vmul.f32 %v2783_v3, %v3259_v15  ;;  %v482_v18 = vmul.f32 %v2784_v4, %v3259_v15  ;;  %v2787_v22 = vunpack.c.l.bf16 %v2845_v19  ;;  %v2788_v23 = vunpack.c.h.bf16 %v2845_v19 }
  0x35   : > { %vm648_vm6 = vsmask.f32 4368  ;;  %v2791_v25 = vunpack.c.l.bf16 %v2846_v24  ;;  %v2792_v26 = vunpack.c.h.bf16 %v2846_v24  ;;  %v2847_v27 = vld [vmem:[%s3150_s9 + $0x18] sm:$0xff]   ;;  %v973_v49 = vld [vmem:[#allocation2 + $0xc] sm:$0xf] }
  0x36   : > { %v520_v20 = vadd.f32 %v3264_v16, %v481_v17  ;;  %v521_v21 = vadd.f32 %v3264_v16, %v482_v18  ;;  %v483_v30 = vmul.f32 %v2787_v22, %v3259_v15  ;;  %v484_v31 = vmul.f32 %v2788_v23, %v3259_v15  ;;  %vm3291_vm8 = vmor %vm298_vm2, %vm648_vm6  ;;  %v977_v51 = vld [vmem:[#allocation2 + $0x14] sm:$0x1]  ;;  %v980_v9 = vld [vmem:[#allocation2 + $0x18] sm:$0xf] }
  0x37   : > { %v485_v32 = vmul.f32 %v2791_v25, %v3259_v15  ;;  %v486_v33 = vmul.f32 %v2792_v26, %v3259_v15  ;;  %v2795_v34 = vunpack.c.l.bf16 %v2847_v27  ;;  %v2796_v35 = vunpack.c.h.bf16 %v2847_v27  ;;  %v984_v10 = vld [vmem:[#allocation2 + $0x20] sm:$0x1] }
  0x38   : > { %v2748_v28 = vpack.c.bf16 %v520_v20, %v520_v20  ;;  %v2749_v29 = vpack.c.bf16 %v521_v21, %v521_v21  ;;  %v522_v40 = vadd.f32 %v3264_v16, %v483_v30  ;;  %v523_v41 = vadd.f32 %v3264_v16, %v484_v31  ;;  %v987_v21 = vld [vmem:[#allocation2 + $0x24] sm:$0xf]  ;;  %v991_v30 = vld [vmem:[#allocation2 + $0x2c] sm:$0x1] }
  0x39   : > { %v524_v42 = vadd.f32 %v3264_v16, %v485_v32  ;;  %v525_v43 = vadd.f32 %v3264_v16, %v486_v33  ;;  %v487_v47 = vmul.f32 %v2795_v34, %v3259_v15  ;;  %v488_v48 = vmul.f32 %v2796_v35, %v3259_v15  ;;  %v2848_v26 = vld [vmem:[%s3150_s9 + $0x20] sm:$0xff]  }
  0x3a   : > { %v651_v36 = vshrl.u32 %v2748_v28, 16  ;;  %v654_v37 = vshll.u32 %v2748_v28, 16  ;;  %v659_v38 = vshrl.u32 %v2749_v29, 16  ;;  %v662_v39 = vshll.u32 %v2749_v29, 16 }
  0x3b   : > { %v2750_v52 = vpack.c.bf16 %v522_v40, %v522_v40  ;;  %v2751_v53 = vpack.c.bf16 %v523_v41, %v523_v41  ;;  %v2752_v54 = vpack.c.bf16 %v524_v42, %v524_v42  ;;  %v2753_v55 = vpack.c.bf16 %v525_v43, %v525_v43  ;;  %v2850_v41 = vld [vmem:[%s3150_s9 + $0x30] sm:$0xff]  }
  0x3c   : > { %v653_v45 = vrot.slane %v651_v36, 7  ;;  %v661_v46 = vrot.slane %v659_v38, 7  ;;  %v526_v13 = vadd.f32 %v3264_v16, %v487_v47  ;;  %v527_v14 = vadd.f32 %v3264_v16, %v488_v48  ;;  %v2849_v36 = vld [vmem:[%s3150_s9 + $0x28] sm:$0xff]   ;;  %v994_v47 = vld [vmem:[#allocation2 + $0x30] sm:$0xf] }
  0x3d   : > { %v668_v60 = vshrl.u32 %v2750_v52, 16  ;;  %v671_v61 = vshll.u32 %v2750_v52, 16  ;;  %v676_v62 = vshrl.u32 %v2751_v53, 16  ;;  %v679_v63 = vshll.u32 %v2751_v53, 16 }
  0x3e   : > { %v656_v56 = vor.u32 %v654_v37, %v653_v45  ;;  %v657_v57 = vrot.slane %v653_v45, 4  ;;  %v664_v58 = vor.u32 %v662_v39, %v661_v46  ;;  %v666_v59 = vrot.slane %v661_v46, 4 }
  0x3f   : > { %v685_v4 = vshrl.u32 %v2752_v54, 16  ;;  %v670_v5 = vrot.slane %v668_v60, 7  ;;  %v678_v6 = vrot.slane %v676_v62, 7  ;;  %v688_v7 = vshll.u32 %v2752_v54, 16 }
  0x40   : > { %v974_v0 = vsel %vm3283_vm7, %v656_v56, %v973_v49  ;;  %v665_v2 = vsel %vm3291_vm8, %v657_v57, %v664_v58  ;;  %v978_v3 = vsel %vm3172_vm3, %v666_v59, %v977_v51  ;;  %v693_v8 = vshrl.u32 %v2753_v55, 16 }
  0x41   : > { %975 = vst [vmem:[#allocation2 + $0xc] sm:$0xf] %v974_v0  ;;  %976 = vst.msk [vmem:[#allocation2 + $0x10] sm:$0xf] %vm288_vm0, %v665_v2  ;;  %v687_v11 = vrot.slane %v685_v4, 7  ;;  %v696_v12 = vshll.u32 %v2753_v55, 16  ;;  %v673_v17 = vor.u32 %v671_v61, %v670_v5  ;;  %v681_v19 = vor.u32 %v679_v63, %v678_v6 }
  0x42   : > { %979 = vst [vmem:[#allocation2 + $0x14] sm:$0x1] %v978_v3  ;;  %v674_v18 = vrot.slane %v670_v5, 4  ;;  %v683_v20 = vrot.slane %v678_v6, 4  ;;  %v695_v24 = vrot.slane %v693_v8, 7  ;;  %v2754_v25 = vpack.c.bf16 %v526_v13, %v526_v13  ;;  %v3331_v3 = vld [vmem:[%s3150_s9 + $0x38] sm:$0xff]  }
  0x43   : > { %v690_v22 = vor.u32 %v688_v7, %v687_v11  ;;  %v691_v23 = vrot.slane %v687_v11, 4  ;;  %v981_v27 = vsel %vm3283_vm7, %v673_v17, %v980_v9  ;;  %v2755_v31 = vpack.c.bf16 %v527_v14, %v527_v14  ;;  %v998_v55 = vld [vmem:[#allocation2 + $0x38] sm:$0x1] }
  0x44   : > { %v682_v28 = vsel %vm3291_vm8, %v674_v18, %v681_v19  ;;  %v985_v29 = vsel %vm3172_vm3, %v683_v20, %v984_v10  ;;  %982 = vst [vmem:[#allocation2 + $0x18] sm:$0xf] %v981_v27  ;;  %v698_v33 = vor.u32 %v696_v12, %v695_v24  ;;  %v700_v34 = vrot.slane %v695_v24, 4 }
  0x45   : > { %983 = vst.msk [vmem:[#allocation2 + $0x1c] sm:$0xf] %vm288_vm0, %v682_v28  ;;  %986 = vst [vmem:[#allocation2 + $0x20] sm:$0x1] %v985_v29  ;;  %v988_v32 = vsel %vm3283_vm7, %v690_v22, %v987_v21  ;;  %v702_v35 = vshrl.u32 %v2754_v25, 16  ;;  %v705_v37 = vshll.u32 %v2754_v25, 16  ;;  %v2799_v40 = vunpack.c.l.bf16 %v2848_v26 }
  0x46   : > { %989 = vst [vmem:[#allocation2 + $0x24] sm:$0xf] %v988_v32  ;;  %v710_v38 = vshrl.u32 %v2755_v31, 16  ;;  %v713_v39 = vshll.u32 %v2755_v31, 16  ;;  %v699_v42 = vsel %vm3291_vm8, %v691_v23, %v698_v33  ;;  %v992_v43 = vsel %vm3172_vm3, %v700_v34, %v991_v30  ;;  %v1005_v33 = vld [vmem:[#allocation2 + $0x44] sm:$0x1] }
  0x47   : > { %v704_v45 = vrot.slane %v702_v35, 7  ;;  %v2800_v46 = vunpack.c.h.bf16 %v2848_v26  ;;  %990 = vst.msk [vmem:[#allocation2 + $0x28] sm:$0xf] %vm288_vm0, %v699_v42  ;;  %993 = vst [vmem:[#allocation2 + $0x2c] sm:$0x1] %v992_v43  ;;  %v489_v49 = vmul.f32 %v2799_v40, %v3259_v15  ;;  %v2803_v51 = vunpack.c.l.bf16 %v2849_v36 }
  0x48   : > { %v712_v48 = vrot.slane %v710_v38, 7  ;;  %v2804_v52 = vunpack.c.h.bf16 %v2849_v36  ;;  %v2807_v57 = vunpack.c.l.bf16 %v2850_v41  ;;  %v2808_v11 = vunpack.c.h.bf16 %v2850_v41  ;;  %v1001_v26 = vld [vmem:[#allocation2 + $0x3c] sm:$0xf]  ;;  %v1008_v38 = vld [vmem:[#allocation2 + $0x48] sm:$0xf] }
  0x49   : > { %v707_v53 = vor.u32 %v705_v37, %v704_v45  ;;  %v708_v54 = vrot.slane %v704_v45, 4  ;;  %v490_v56 = vmul.f32 %v2800_v46, %v3259_v15  ;;  %v528_v60 = vadd.f32 %v3264_v16, %v489_v49  ;;  %v1012_v45 = vld [vmem:[#allocation2 + $0x50] sm:$0x1] }
  0x4a   : > { %v715_v58 = vor.u32 %v713_v39, %v712_v48  ;;  %v717_v59 = vrot.slane %v712_v48, 4  ;;  %v491_v61 = vmul.f32 %v2803_v51, %v3259_v15  ;;  %v492_v0 = vmul.f32 %v2804_v52, %v3259_v15  ;;  %v1015_v52 = vld [vmem:[#allocation2 + $0x54] sm:$0xf] }
  0x4b   : > { %v995_v62 = vsel %vm3283_vm7, %v707_v53, %v994_v47  ;;  %v529_v63 = vadd.f32 %v3264_v16, %v490_v56  ;;  %v493_v2 = vmul.f32 %v2807_v57, %v3259_v15  ;;  %v2756_v6 = vpack.c.bf16 %v528_v60, %v528_v60  ;;  %v2852_v53 = vld [vmem:[%s3150_s9 + $0x40] sm:$0xff]  }
  0x4c   : > { %996 = vst [vmem:[#allocation2 + $0x30] sm:$0xf] %v995_v62  ;;  %v716_v4 = vsel %vm3291_vm8, %v708_v54, %v715_v58  ;;  %v999_v5 = vsel %vm3172_vm3, %v717_v59, %v998_v55  ;;  %v530_v7 = vadd.f32 %v3264_v16, %v491_v61  ;;  %v531_v9 = vadd.f32 %v3264_v16, %v492_v0  ;;  %v2853_v58 = vld [vmem:[%s3150_s9 + $0x48] sm:$0xff]  }
  0x4d   : > { %997 = vst.msk [vmem:[#allocation2 + $0x34] sm:$0xf] %vm288_vm0, %v716_v4  ;;  %1000 = vst [vmem:[#allocation2 + $0x38] sm:$0x1] %v999_v5  ;;  %v2757_v8 = vpack.c.bf16 %v529_v63, %v529_v63  ;;  %v532_v10 = vadd.f32 %v3264_v16, %v493_v2  ;;  %v719_v12 = vshrl.u32 %v2756_v6, 16  ;;  %v722_v13 = vshll.u32 %v2756_v6, 16 }
  0x4e   : > { %v2758_v14 = vpack.c.bf16 %v530_v7, %v530_v7  ;;  %v2811_v17 = vunpack.c.l.bf16 %v3331_v3  ;;  %v2759_v20 = vpack.c.bf16 %v531_v9, %v531_v9  ;;  %v494_v25 = vmul.f32 %v2808_v11, %v3259_v15  ;;  %v3362_v63 = vld [vmem:[%s3150_s9 + $0x50] sm:$0xff]  }
  0x4f   : > { %v727_v18 = vshrl.u32 %v2757_v8, 16  ;;  %v730_v19 = vshll.u32 %v2757_v8, 16  ;;  %v2760_v21 = vpack.c.bf16 %v532_v10, %v532_v10  ;;  %v721_v22 = vrot.slane %v719_v12, 7 }
  0x50   : > { %v736_v23 = vshrl.u32 %v2758_v14, 16  ;;  %v739_v24 = vshll.u32 %v2758_v14, 16  ;;  %v744_v28 = vshrl.u32 %v2759_v20, 16  ;;  %v747_v29 = vshll.u32 %v2759_v20, 16 }
  0x51   : > { %v729_v27 = vrot.slane %v727_v18, 7  ;;  %v753_v30 = vshrl.u32 %v2760_v21, 16  ;;  %v724_v31 = vor.u32 %v722_v13, %v721_v22  ;;  %v725_v32 = vrot.slane %v721_v22, 4  ;;  %v1019_v13 = vld [vmem:[#allocation2 + $0x5c] sm:$0x1] }
  0x52   : > { %v738_v34 = vrot.slane %v736_v23, 7  ;;  %v756_v35 = vshll.u32 %v2760_v21, 16  ;;  %v746_v39 = vrot.slane %v744_v28, 7  ;;  %v533_v46 = vadd.f32 %v3264_v16, %v494_v25 }
  0x53   : > { %v732_v36 = vor.u32 %v730_v19, %v729_v27  ;;  %v734_v37 = vrot.slane %v729_v27, 4  ;;  %v755_v40 = vrot.slane %v753_v30, 7  ;;  %v1002_v41 = vsel %vm3283_vm7, %v724_v31, %v1001_v26 }
  0x54   : > { %v741_v42 = vor.u32 %v739_v24, %v738_v34  ;;  %v742_v43 = vrot.slane %v738_v34, 4  ;;  %1003 = vst [vmem:[#allocation2 + $0x3c] sm:$0xf] %v1002_v41  ;;  %v749_v49 = vor.u32 %v747_v29, %v746_v39  ;;  %v751_v51 = vrot.slane %v746_v39, 4 }
  0x55   : > { %v733_v47 = vsel %vm3291_vm8, %v725_v32, %v732_v36  ;;  %v1006_v48 = vsel %vm3172_vm3, %v734_v37, %v1005_v33  ;;  %v758_v55 = vor.u32 %v756_v35, %v755_v40  ;;  %v2761_v56 = vpack.c.bf16 %v533_v46, %v533_v46  ;;  %v1022_v36 = vld [vmem:[#allocation2 + $0x60] sm:$0xf]  ;;  %v1026_v46 = vld [vmem:[#allocation2 + $0x68] sm:$0x1] }
  0x56   : > { %1004 = vst.msk [vmem:[#allocation2 + $0x40] sm:$0xf] %vm288_vm0, %v733_v47  ;;  %1007 = vst [vmem:[#allocation2 + $0x44] sm:$0x1] %v1006_v48  ;;  %v1009_v54 = vsel %vm3283_vm7, %v741_v42, %v1008_v38  ;;  %v759_v57 = vrot.slane %v755_v40, 4  ;;  %v750_v59 = vsel %vm3291_vm8, %v742_v43, %v749_v49  ;;  %v1013_v60 = vsel %vm3172_vm3, %v751_v51, %v1012_v45 }
  0x57   : > { %1010 = vst [vmem:[#allocation2 + $0x48] sm:$0xf] %v1009_v54  ;;  %v495_v61 = vmul.f32 %v2811_v17, %v3259_v15  ;;  %v2812_v62 = vunpack.c.h.bf16 %v3331_v3  ;;  %1011 = vst.msk [vmem:[#allocation2 + $0x4c] sm:$0xf] %vm288_vm0, %v750_v59  ;;  %v1016_v0 = vsel %vm3283_vm7, %v758_v55, %v1015_v52  ;;  %v761_v2 = vshrl.u32 %v2761_v56, 16 }
  0x58   : > { %1014 = vst [vmem:[#allocation2 + $0x50] sm:$0x1] %v1013_v60  ;;  %v764_v4 = vshll.u32 %v2761_v56, 16  ;;  %v2815_v5 = vunpack.c.l.bf16 %v2852_v53  ;;  %1017 = vst [vmem:[#allocation2 + $0x54] sm:$0xf] %v1016_v0  ;;  %v2816_v8 = vunpack.c.h.bf16 %v2852_v53  ;;  %v2819_v9 = vunpack.c.l.bf16 %v2853_v58 }
  0x59   : > { %v534_v6 = vadd.f32 %v3264_v16, %v495_v61  ;;  %v496_v7 = vmul.f32 %v2812_v62, %v3259_v15  ;;  %v763_v10 = vrot.slane %v761_v2, 7  ;;  %v2820_v11 = vunpack.c.h.bf16 %v2853_v58  ;;  %v1029_v55 = vld [vmem:[#allocation2 + $0x6c] sm:$0xf]  ;;  %v1033_v59 = vld [vmem:[#allocation2 + $0x74] sm:$0x1] }
  0x5a   : > { %v497_v3 = vmul.f32 %v2815_v5, %v3259_v15  ;;  %v2823_v12 = vunpack.c.l.bf16 %v3362_v63  ;;  %v498_v18 = vmul.f32 %v2816_v8, %v3259_v15  ;;  %v499_v19 = vmul.f32 %v2819_v9, %v3259_v15  ;;  %v1036_v5 = vld [vmem:[#allocation2 + $0x78] sm:$0xf] }
  0x5b   : > { %v2762_v14 = vpack.c.bf16 %v534_v6, %v534_v6  ;;  %v535_v17 = vadd.f32 %v3264_v16, %v496_v7  ;;  %v766_v20 = vor.u32 %v764_v4, %v763_v10  ;;  %v768_v21 = vrot.slane %v763_v10, 4  ;;  %v2855_v6 = vld [vmem:[%s3150_s9 + $0x58] sm:$0xff]  }
  0x5c   : > { %v536_v22 = vadd.f32 %v3264_v16, %v497_v3  ;;  %v500_v23 = vmul.f32 %v2820_v11, %v3259_v15  ;;  %v537_v27 = vadd.f32 %v3264_v16, %v498_v18  ;;  %v538_v31 = vadd.f32 %v3264_v16, %v499_v19  ;;  %v2856_v3 = vld [vmem:[%s3150_s9 + $0x60] sm:$0xff]  }
  0x5d   : > { %v770_v24 = vshrl.u32 %v2762_v14, 16  ;;  %v773_v25 = vshll.u32 %v2762_v14, 16  ;;  %v2763_v26 = vpack.c.bf16 %v535_v17, %v535_v17  ;;  %v767_v28 = vsel %vm3291_vm8, %v759_v57, %v766_v20 }
  0x5e   : > { %v1020_v29 = vsel %vm3172_vm3, %v768_v21, %v1019_v13  ;;  %v2764_v30 = vpack.c.bf16 %v536_v22, %v536_v22  ;;  %1018 = vst.msk [vmem:[#allocation2 + $0x58] sm:$0xf] %vm288_vm0, %v767_v28  ;;  %v2765_v35 = vpack.c.bf16 %v537_v27, %v537_v27  ;;  %v2766_v39 = vpack.c.bf16 %v538_v31, %v538_v31  ;;  %v1040_v22 = vld [vmem:[#allocation2 + $0x80] sm:$0x1] }
  0x5f   : > { %1021 = vst [vmem:[#allocation2 + $0x5c] sm:$0x1] %v1020_v29  ;;  %v772_v32 = vrot.slane %v770_v24, 7  ;;  %v778_v33 = vshrl.u32 %v2763_v26, 16  ;;  %v781_v34 = vshll.u32 %v2763_v26, 16  ;;  %v539_v40 = vadd.f32 %v3264_v16, %v500_v23 }
  0x60   : > { %v787_v37 = vshrl.u32 %v2764_v30, 16  ;;  %v790_v38 = vshll.u32 %v2764_v30, 16  ;;  %v795_v45 = vshrl.u32 %v2765_v35, 16  ;;  %v798_v48 = vshll.u32 %v2765_v35, 16 }
  0x61   : > { %v775_v41 = vor.u32 %v773_v25, %v772_v32  ;;  %v776_v42 = vrot.slane %v772_v32, 4  ;;  %v780_v43 = vrot.slane %v778_v33, 7  ;;  %v804_v49 = vshrl.u32 %v2766_v39, 16  ;;  %v3413_v33 = vld [vmem:[%s3150_s9 + $0x68] sm:$0xff]  }
  0x62   : > { %v789_v47 = vrot.slane %v787_v37, 7  ;;  %v807_v51 = vshll.u32 %v2766_v39, 16  ;;  %v797_v56 = vrot.slane %v795_v45, 7  ;;  %v2767_v61 = vpack.c.bf16 %v539_v40, %v539_v40 }
  0x63   : > { %v1023_v52 = vsel %vm3283_vm7, %v775_v41, %v1022_v36  ;;  %v783_v53 = vor.u32 %v781_v34, %v780_v43  ;;  %v785_v54 = vrot.slane %v780_v43, 4  ;;  %v806_v60 = vrot.slane %v804_v49, 7 }
  0x64   : > { %1024 = vst [vmem:[#allocation2 + $0x60] sm:$0xf] %v1023_v52  ;;  %v792_v57 = vor.u32 %v790_v38, %v789_v47  ;;  %v793_v58 = vrot.slane %v789_v47, 4  ;;  %v800_v2 = vor.u32 %v798_v48, %v797_v56  ;;  %v802_v4 = vrot.slane %v797_v56, 4  ;;  %v1043_v52 = vld [vmem:[#allocation2 + $0x84] sm:$0xf] }
  0x65   : > { %v784_v62 = vsel %vm3291_vm8, %v776_v42, %v783_v53  ;;  %v1027_v0 = vsel %vm3172_vm3, %v785_v54, %v1026_v46  ;;  %v809_v8 = vor.u32 %v807_v51, %v806_v60  ;;  %v810_v9 = vrot.slane %v806_v60, 4 }
  0x66   : > { %1025 = vst.msk [vmem:[#allocation2 + $0x64] sm:$0xf] %vm288_vm0, %v784_v62  ;;  %1028 = vst [vmem:[#allocation2 + $0x68] sm:$0x1] %v1027_v0  ;;  %v1030_v7 = vsel %vm3283_vm7, %v792_v57, %v1029_v55  ;;  %v812_v10 = vshrl.u32 %v2767_v61, 16  ;;  %v801_v11 = vsel %vm3291_vm8, %v793_v58, %v800_v2  ;;  %v1034_v13 = vsel %vm3172_vm3, %v802_v4, %v1033_v59 }
  0x67   : > { %1031 = vst [vmem:[#allocation2 + $0x6c] sm:$0xf] %v1030_v7  ;;  %v815_v14 = vshll.u32 %v2767_v61, 16  ;;  %v501_v17 = vmul.f32 %v2823_v12, %v3259_v15  ;;  %1032 = vst.msk [vmem:[#allocation2 + $0x70] sm:$0xf] %vm288_vm0, %v801_v11  ;;  %v1037_v18 = vsel %vm3283_vm7, %v809_v8, %v1036_v5  ;;  %v2824_v20 = vunpack.c.h.bf16 %v3362_v63 }
  0x68   : > { %1035 = vst [vmem:[#allocation2 + $0x74] sm:$0x1] %v1034_v13  ;;  %v814_v19 = vrot.slane %v812_v10, 7  ;;  %v2827_v21 = vunpack.c.l.bf16 %v2855_v6  ;;  %1038 = vst [vmem:[#allocation2 + $0x78] sm:$0xf] %v1037_v18  ;;  %v2828_v24 = vunpack.c.h.bf16 %v2855_v6  ;;  %v2831_v25 = vunpack.c.l.bf16 %v2856_v3 }
  0x69   : > { %v540_v23 = vadd.f32 %v3264_v16, %v501_v17  ;;  %v2832_v26 = vunpack.c.h.bf16 %v2856_v3  ;;  %v502_v28 = vmul.f32 %v2824_v20, %v3259_v15  ;;  %v2835_v46 = vunpack.c.l.bf16 %v3413_v33  ;;  %v1047_v5 = vld [vmem:[#allocation2 + $0x8c] sm:$0x1]  ;;  %v1050_v6 = vld [vmem:[#allocation2 + $0x90] sm:$0xf] }
  0x6a   : > { %v817_v27 = vor.u32 %v815_v14, %v814_v19  ;;  %v819_v12 = vrot.slane %v814_v19, 4  ;;  %v503_v29 = vmul.f32 %v2827_v21, %v3259_v15  ;;  %v504_v31 = vmul.f32 %v2828_v24, %v3259_v15  ;;  %v1054_v14 = vld [vmem:[#allocation2 + $0x98] sm:$0x1]  ;;  %v2858_v21 = vld [vmem:[%s3150_s9 + $0x70] sm:$0xff]  }
  0x6b   : > { %v2768_v30 = vpack.c.bf16 %v540_v23, %v540_v23  ;;  %v505_v63 = vmul.f32 %v2831_v25, %v3259_v15  ;;  %v506_v32 = vmul.f32 %v2832_v26, %v3259_v15  ;;  %v541_v36 = vadd.f32 %v3264_v16, %v502_v28  ;;  %v1057_v25 = vld [vmem:[#allocation2 + $0x9c] sm:$0xf] }
  0x6c   : > { %v818_v34 = vsel %vm3291_vm8, %v810_v9, %v817_v27  ;;  %v1041_v35 = vsel %vm3172_vm3, %v819_v12, %v1040_v22  ;;  %v542_v37 = vadd.f32 %v3264_v16, %v503_v29  ;;  %v543_v40 = vadd.f32 %v3264_v16, %v504_v31  ;;  %v2859_v27 = vld [vmem:[%s3150_s9 + $0x78] sm:$0xff]  }
  0x6d   : > { %1039 = vst.msk [vmem:[#allocation2 + $0x7c] sm:$0xf] %vm288_vm0, %v818_v34  ;;  %1042 = vst [vmem:[#allocation2 + $0x80] sm:$0x1] %v1041_v35  ;;  %v821_v38 = vshrl.u32 %v2768_v30, 16  ;;  %v824_v39 = vshll.u32 %v2768_v30, 16  ;;  %v544_v41 = vadd.f32 %v3264_v16, %v505_v63  ;;  %v2769_v42 = vpack.c.bf16 %v541_v36, %v541_v36 }
  0x6e   : > { %v2770_v43 = vpack.c.bf16 %v542_v37, %v542_v37  ;;  %v545_v45 = vadd.f32 %v3264_v16, %v506_v32  ;;  %v2771_v48 = vpack.c.bf16 %v543_v40, %v543_v40  ;;  %v2836_v51 = vunpack.c.h.bf16 %v3413_v33  ;;  %v1061_v35 = vld [vmem:[#allocation2 + $0xa4] sm:$0x1] }
  0x6f   : > { %v823_v47 = vrot.slane %v821_v38, 7  ;;  %v2772_v49 = vpack.c.bf16 %v544_v41, %v544_v41  ;;  %v829_v53 = vshrl.u32 %v2769_v42, 16  ;;  %v832_v54 = vshll.u32 %v2769_v42, 16 }
  0x70   : > { %v838_v55 = vshrl.u32 %v2770_v43, 16  ;;  %v841_v56 = vshll.u32 %v2770_v43, 16  ;;  %v846_v59 = vshrl.u32 %v2771_v48, 16  ;;  %v849_v60 = vshll.u32 %v2771_v48, 16 }
  0x71   : > { %v826_v57 = vor.u32 %v824_v39, %v823_v47  ;;  %v827_v58 = vrot.slane %v823_v47, 4  ;;  %v831_v61 = vrot.slane %v829_v53, 7  ;;  %v855_v0 = vshrl.u32 %v2772_v49, 16 }
  0x72   : > { %v840_v62 = vrot.slane %v838_v55, 7  ;;  %v858_v2 = vshll.u32 %v2772_v49, 16  ;;  %v848_v7 = vrot.slane %v846_v59, 7  ;;  %v2773_v8 = vpack.c.bf16 %v545_v45, %v545_v45 }
  0x73   : > { %v1044_v4 = vsel %vm3283_vm7, %v826_v57, %v1043_v52  ;;  %v507_v9 = vmul.f32 %v2835_v46, %v3259_v15  ;;  %v834_v10 = vor.u32 %v832_v54, %v831_v61  ;;  %v836_v3 = vrot.slane %v831_v61, 4 }
  0x74   : > { %1045 = vst [vmem:[#allocation2 + $0x84] sm:$0xf] %v1044_v4  ;;  %v843_v11 = vor.u32 %v841_v56, %v840_v62  ;;  %v844_v13 = vrot.slane %v840_v62, 4  ;;  %v851_v17 = vor.u32 %v849_v60, %v848_v7  ;;  %v853_v18 = vrot.slane %v848_v7, 4 }
  0x75   : > { %v857_v19 = vrot.slane %v855_v0, 7  ;;  %v863_v20 = vshrl.u32 %v2773_v8, 16  ;;  %v835_v22 = vsel %vm3291_vm8, %v827_v58, %v834_v10  ;;  %v1048_v23 = vsel %vm3172_vm3, %v836_v3, %v1047_v5  ;;  %v1064_v58 = vld [vmem:[#allocation2 + $0xa8] sm:$0xf]  ;;  %v1068_v3 = vld [vmem:[#allocation2 + $0xb0] sm:$0x1] }
  0x76   : > { %v1051_v24 = vsel %vm3283_vm7, %v843_v11, %v1050_v6  ;;  %v866_v26 = vshll.u32 %v2773_v8, 16  ;;  %1046 = vst.msk [vmem:[#allocation2 + $0x88] sm:$0xf] %vm288_vm0, %v835_v22  ;;  %1049 = vst [vmem:[#allocation2 + $0x8c] sm:$0x1] %v1048_v23  ;;  %v852_v12 = vsel %vm3291_vm8, %v844_v13, %v851_v17  ;;  %v1055_v28 = vsel %vm3172_vm3, %v853_v18, %v1054_v14 }
  0x77   : > { %1052 = vst [vmem:[#allocation2 + $0x90] sm:$0xf] %v1051_v24  ;;  %v860_v29 = vor.u32 %v858_v2, %v857_v19  ;;  %v861_v30 = vrot.slane %v857_v19, 4  ;;  %1053 = vst.msk [vmem:[#allocation2 + $0x94] sm:$0xf] %vm288_vm0, %v852_v12  ;;  %v865_v31 = vrot.slane %v863_v20, 7  ;;  %v546_v63 = vadd.f32 %v3264_v16, %v507_v9 }
  0x78   : > { %1056 = vst [vmem:[#allocation2 + $0x98] sm:$0x1] %v1055_v28  ;;  %v508_v32 = vmul.f32 %v2836_v51, %v3259_v15  ;;  %v2839_v33 = vunpack.c.l.bf16 %v2858_v21  ;;  %v2840_v36 = vunpack.c.h.bf16 %v2858_v21  ;;  %v2843_v37 = vunpack.c.l.bf16 %v2859_v27  ;;  %v1071_v20 = vld [vmem:[#allocation2 + $0xb4] sm:$0xf]  ;;  %v1075_v12 = vld [vmem:[#allocation2 + $0xbc] sm:$0x1] }
  0x79   : > { %v1058_v34 = vsel %vm3283_vm7, %v860_v29, %v1057_v25  ;;  %v2844_v38 = vunpack.c.h.bf16 %v2859_v27  ;;  %v868_v39 = vor.u32 %v866_v26, %v865_v31  ;;  %v870_v40 = vrot.slane %v865_v31, 4  ;;  %v1078_v28 = vld [vmem:[#allocation2 + $0xc0] sm:$0xf] }
  0x7a   : > { %1059 = vst [vmem:[#allocation2 + $0x9c] sm:$0xf] %v1058_v34  ;;  %v2774_v41 = vpack.c.bf16 %v546_v63, %v546_v63  ;;  %v547_v42 = vadd.f32 %v3264_v16, %v508_v32  ;;  %v509_v43 = vmul.f32 %v2839_v33, %v3259_v15  ;;  %v510_v45 = vmul.f32 %v2840_v36, %v3259_v15 }
  0x7b   : > { %v511_v46 = vmul.f32 %v2843_v37, %v3259_v15  ;;  %v512_v47 = vmul.f32 %v2844_v38, %v3259_v15  ;;  %v869_v48 = vsel %vm3291_vm8, %v861_v30, %v868_v39  ;;  %v1062_v49 = vsel %vm3172_vm3, %v870_v40, %v1061_v35  ;;  %v1082_v37 = vld [vmem:[#allocation2 + $0xc8] sm:$0x1] }
  0x7c   : > { %v872_v51 = vshrl.u32 %v2774_v41, 16  ;;  %v875_v52 = vshll.u32 %v2774_v41, 16  ;;  %1060 = vst.msk [vmem:[#allocation2 + $0xa0] sm:$0xf] %vm288_vm0, %v869_v48  ;;  %1063 = vst [vmem:[#allocation2 + $0xa4] sm:$0x1] %v1062_v49  ;;  %v2775_v53 = vpack.c.bf16 %v547_v42, %v547_v42  ;;  %v548_v54 = vadd.f32 %v3264_v16, %v509_v43 }
  0x7d   : > { %v549_v55 = vadd.f32 %v3264_v16, %v510_v45  ;;  %v550_v56 = vadd.f32 %v3264_v16, %v511_v46  ;;  %v551_v15 = vadd.f32 %v3264_v16, %v512_v47 }
  0x7e   : > { %v874_v57 = vrot.slane %v872_v51, 7  ;;  %v880_v59 = vshrl.u32 %v2775_v53, 16  ;;  %v883_v60 = vshll.u32 %v2775_v53, 16  ;;  %v2776_v61 = vpack.c.bf16 %v548_v54, %v548_v54 }
  0x7f   : > { %v2777_v62 = vpack.c.bf16 %v549_v55, %v549_v55  ;;  %v2778_v4 = vpack.c.bf16 %v550_v56, %v550_v56  ;;  %v2779_v5 = vpack.c.bf16 %v551_v15, %v551_v15 }
  0x80   : > { %v877_v0 = vor.u32 %v875_v52, %v874_v57  ;;  %v878_v2 = vrot.slane %v874_v57, 4  ;;  %v882_v6 = vrot.slane %v880_v59, 7  ;;  %v889_v7 = vshrl.u32 %v2776_v61, 16 }
  0x81   : > { %v892_v8 = vshll.u32 %v2776_v61, 16  ;;  %v897_v9 = vshrl.u32 %v2777_v62, 16  ;;  %v900_v11 = vshll.u32 %v2777_v62, 16  ;;  %v906_v13 = vshrl.u32 %v2778_v4, 16 }
  0x82   : > { %v1065_v10 = vsel %vm3283_vm7, %v877_v0, %v1064_v58  ;;  %v909_v16 = vshll.u32 %v2778_v4, 16  ;;  %v885_v14 = vor.u32 %v883_v60, %v882_v6  ;;  %v887_v17 = vrot.slane %v882_v6, 4 }
  0x83   : > { %1066 = vst [vmem:[#allocation2 + $0xa8] sm:$0xf] %v1065_v10  ;;  %v891_v18 = vrot.slane %v889_v7, 7  ;;  %v899_v19 = vrot.slane %v897_v9, 7  ;;  %v908_v21 = vrot.slane %v906_v13, 7  ;;  %v914_v22 = vshrl.u32 %v2779_v5, 16 }
  0x84   : > { %v917_v23 = vshll.u32 %v2779_v5, 16  ;;  %v886_v24 = vsel %vm3291_vm8, %v878_v2, %v885_v14  ;;  %v1069_v25 = vsel %vm3172_vm3, %v887_v17, %v1068_v3 }
  0x85   : > { %v894_v26 = vor.u32 %v892_v8, %v891_v18  ;;  %v895_v27 = vrot.slane %v891_v18, 4  ;;  %1067 = vst.msk [vmem:[#allocation2 + $0xac] sm:$0xf] %vm288_vm0, %v886_v24  ;;  %1070 = vst [vmem:[#allocation2 + $0xb0] sm:$0x1] %v1069_v25  ;;  %v902_v29 = vor.u32 %v900_v11, %v899_v19  ;;  %v904_v30 = vrot.slane %v899_v19, 4 }
  0x86   : > { %v911_v31 = vor.u32 %v909_v16, %v908_v21  ;;  %v912_v32 = vrot.slane %v908_v21, 4  ;;  %v916_v33 = vrot.slane %v914_v22, 7 }
  0x87   : > { %v1072_v63 = vsel %vm3283_vm7, %v894_v26, %v1071_v20  ;;  %v903_v34 = vsel %vm3291_vm8, %v895_v27, %v902_v29  ;;  %v1076_v35 = vsel %vm3172_vm3, %v904_v30, %v1075_v12 }
  0x88   : > { %1073 = vst [vmem:[#allocation2 + $0xb4] sm:$0xf] %v1072_v63  ;;  %v1079_v36 = vsel %vm3283_vm7, %v911_v31, %v1078_v28  ;;  %1074 = vst.msk [vmem:[#allocation2 + $0xb8] sm:$0xf] %vm288_vm0, %v903_v34  ;;  %v919_v38 = vor.u32 %v917_v23, %v916_v33  ;;  %v921_v39 = vrot.slane %v916_v33, 4 }
  0x89   : > { %1077 = vst [vmem:[#allocation2 + $0xbc] sm:$0x1] %v1076_v35  ;;  %1080 = vst [vmem:[#allocation2 + $0xc0] sm:$0xf] %v1079_v36 }
  0x8a   : > { %v920_v40 = vsel %vm3291_vm8, %v912_v32, %v919_v38  ;;  %v1083_v41 = vsel %vm3172_vm3, %v921_v39, %v1082_v37 }
  0x8b   : > { %1081 = vst.msk [vmem:[#allocation2 + $0xc4] sm:$0xf] %vm288_vm0, %v920_v40  ;;  %1084 = vst [vmem:[#allocation2 + $0xc8] sm:$0x1] %v1083_v41 }
  0x8c PF: > { %s2780_s28 = smul.u32 96, %s3051_s21  ;;  %vm1394_vm9 = vcmask 1046528   ;;  %vm1257_vm10 = vsmask.f32 7424  ;;  %s3070_s30 = smov 12   ;;  %vm2127_vm11 = vcmask 1041408  }
  0x8d   : > { %s3071_s7 = smov 8   ;;  %s3072_s8 = smov 4   ;;  %vm1947_vm12 = vcmask 31744   ;;  %vm1964_vm13 = vcmask 64512   ;;  %vm1981_vm14 = vcmask 97280   ;;  %vm1998_vm15 = vcmask 130048  }
  0x8e   : > { %s3484_s29 = scalar_lea.vmem [#allocation2], %s2780_s28  ;;  %s3073_s11 = smov 16   ;;  %vm2015_vm0 = vcmask 162816   ;;  %vm2032_vm1 = vcmask 195584   ;;  %vm2066_vm2 = vcmask 261120   ;;  %vm2049_vm3 = vcmask 228352  }
  0x8f   : > { %s3074_s12 = smov 20   ;;  %s3075_s16 = smov 24   ;;  %vm2110_vm4 = vcmask 293888   ;;  %vm2388_vm5 = vcmask (!%p2552_p7), 24576  }
  0x90   : > { %s3076_s18 = smov 28   ;;  %s3077_s19 = smov 32  }
  0x92   : > { %v2594_v44 = vld [vmem:[%s3484_s29 + $0x18] sm:$0xf]  ;;  %v3488_v1 = vld [vmem:[%s3484_s29 + $0x1c] sm:$0xf]  ;;  %v2592_v42 = vld [vmem:[%s3484_s29 + $0xc] sm:$0xf] }
  0x93   : > { %v2683_v50 = vcombine.low %v2594_v44, %v3488_v1  ;;  %v3493_v43 = vld [vmem:[%s3484_s29 + $0x10] sm:$0xf]  ;;  %v1090_v46 = vld [vmem:[%s3484_s29 + $0x4] sm:$0xf]  ;;  %v1113_v47 = vld [vmem:[%s3484_s29] sm:$0xe] }
  0x94   : > { %v2682_v45 = vcombine.low %v2592_v42, %v3493_v43  ;;  %v2617_v48 = vld [vmem:[%s3484_s29 + $0x18] sm:$0xe]  ;;  %v2956_v51 = vld [vmem:[%s3484_s29 + $0x8] ss:$0 sps:$4 sm:$0x11]   ;;  %v2674_v52 = vcombine.low %v1113_v47, %v1090_v46 }
  0x95   : > { %1477 = vrot.lane.b32.xlu1 %v2683_v50, %s3070_s30  ;;  %v1530_v49 = vshll.u32 %v2683_v50, 16  ;;  %v1089_v53 = vld [vmem:[%s3484_s29] sm:$0xf]  ;;  %v1091_v56 = vld [vmem:[%s3484_s29 + $0xc] sm:$0xf]  ;;  %v1528_v15 = vshrl.u32 %v2683_v50, 16  ;;  %v2699_v9 = vcombine.low %v2617_v48, %v3488_v1 }
  0x96   : > { %1475 = vrot.lane.b32.xlu0 %v2682_v45, %s3070_s30  ;;  %v1518_v54 = vshll.u32 %v2682_v45, 16  ;;  %v3503_v55 = vcombine.low %v1089_v53, %v1090_v46  ;;  %v1092_v57 = vld [vmem:[%s3484_s29 + $0x10] sm:$0xf]  ;;  %v1395_v58 = vrot.slane %v2674_v52, 1  ;;  %v1396_v59 = vrot.slane %v2956_v51, 1  ;;  %v3024_v50 = vld [vmem:[%s4057_s3] sm:$0xff]  }
  0x97   : > { %v1266_v60 = vshll.u32 %v2956_v51, 16  ;;  %v3507_v61 = vcombine.low %v1091_v56, %v1092_v57  ;;  %v1114_v2 = vld [vmem:[%s3484_s29 + $0xc] sm:$0xe]  ;;  %v2960_v6 = vld [vmem:[%s3484_s29 + $0x14] ss:$0 sps:$4 sm:$0x11]   ;;  %2871 = vmatprep.subr.bf16.mxu0 %v3024_v50  ;;  %2893 = vmatprep.subr.bf16.mxu1 %v3024_v50 }
  0x98   : > { %v1259_v62 = vshrl.u32 %v3503_v55, 16  ;;  %v1261_v0 = vshll.u32 %v3503_v55, 16  ;;  %v1397_v4 = vsel %vm1394_vm9, %v1395_v58, %v1396_v59  ;;  %v2675_v7 = vcombine.low %v1114_v2, %v1092_v57  ;;  %v2616_v10 = vld [vmem:[%s3484_s29 + $0xc] sm:$0xe]  ;;  %v2628_v12 = vld [vmem:[%s3484_s29 + $0x24] sm:$0xf]  ;;  %2872 = vmatpush3.bf16.msra.mxu0 %v3024_v50  ;;  %2896 = vmatpush3.bf16.msra.mxu1 %v3024_v50 }
  0x99   : > { %v1268_v5 = vrot.slane %v1266_v60, 1  ;;  %v1271_v8 = vshrl.u32 %v3507_v61, 16  ;;  %1419 = vrot.lane.b32.xlu1 %v1397_v4, %s3071_s7  ;;  %v1273_v11 = vshll.u32 %v3507_v61, 16  ;;  %v2962_v13 = vld [vmem:[%s3484_s29 + $0x20] ss:$0 sps:$4 sm:$0x11]   ;;  %v2698_v32 = vcombine.low %v2616_v10, %v3493_v43 }
  0x9a   : > { %v1263_v3 = vrot.slane %v1261_v0, 1  ;;  %v1532_v16 = vrot.slane %v1530_v49, 1  ;;  %v1398_v14 = vrot.slane %v2675_v7, 1  ;;  %v1399_v17 = vrot.slane %v2960_v6, 1  ;;  %v3526_v63 = vld [vmem:[%s3484_s29 + $0x28] sm:$0xf] }
  0x9b   : > { %v1278_v18 = vshll.u32 %v2960_v6, 16  ;;  %v1516_v19 = vshrl.u32 %v2682_v45, 16  ;;  %v1275_v21 = vrot.slane %v1273_v11, 1  ;;  %v1535_v23 = vshll.u32 %v2962_v13, 16  ;;  %v2626_v36 = vld [vmem:[%s3484_s29 + $0x18] sm:$0xf] }
  0x9c   : > { %v1264_v20 = vor.u32 %v1263_v3, %v1259_v62  ;;  %v1533_v22 = vor.u32 %v1532_v16, %v1528_v15  ;;  %v2963_v24 = vld [vmem:[%s3484_s29 + $0x14] ss:$0 sps:$4 sm:$0x11]   ;;  %v1400_v25 = vsel %vm1394_vm9, %v1398_v14, %v1399_v17  ;;  %v1520_v27 = vrot.slane %v1518_v54, 1  ;;  %v3535_v41 = vld [vmem:[%s3484_s29 + $0x1c] sm:$0xf] }
  0x9d   : > { %v1280_v26 = vrot.slane %v1278_v18, 1  ;;  %1421 = vrot.lane.b32.xlu1 %v1400_v25, %s3071_s7  ;;  %v1276_v29 = vor.u32 %v1275_v21, %v1271_v8  ;;  %v1537_v30 = vrot.slane %v1535_v23, 1  ;;  %v1523_v31 = vshll.u32 %v2963_v24, 16  ;;  %v3541_v1 = vld [vmem:[%s3484_s29 + $0x2c] ss:$0 sps:$4 sm:$0x11]  }
  0x9e   : > { %v1269_v28 = vsel %vm1257_vm10, %v1264_v20, %v1268_v5  ;;  %v1521_v33 = vor.u32 %v1520_v27, %v1516_v19  ;;  %v1654_v34 = vrot.slane %v2699_v9, 1  ;;  %v1655_v35 = vrot.slane %v2962_v13, 1  ;;  %v1093_v45 = vld [vmem:[%s3484_s29 + $0x18] sm:$0xf]  ;;  %v3557_v56 = vld [vmem:[%s3484_s29 + $0x1c] sm:$0xf] }
  0x9f   : > { %1354 = vrot.lane.b32.xlu0 %v1269_v28, %s3072_s8  ;;  %v1281_v37 = vsel %vm1257_vm10, %v1276_v29, %v1280_v26  ;;  %v1538_v38 = vsel %vm1257_vm10, %v1533_v22, %v1537_v30  ;;  %v1525_v39 = vrot.slane %v1523_v31, 1  ;;  %v2707_v40 = vcombine.low %v2628_v12, %v3526_v63  ;;  %v3552_v51 = vld [vmem:[%s3484_s29 + $0x20] ss:$0 sps:$4 sm:$0x11]   ;;  %v1095_v60 = vld [vmem:[%s3484_s29 + $0x24] sm:$0xf] }
  0xa0   : > { %v3538_v44 = vcombine.low %v2626_v36, %v3535_v41  ;;  %v1656_v46 = vsel %vm1394_vm9, %v1654_v34, %v1655_v35  ;;  %v1651_v47 = vrot.slane %v2698_v32, 1  ;;  %v1652_v48 = vrot.slane %v2963_v24, 1  ;;  %v3563_v15 = vld [vmem:[%s3484_s29 + $0x20] ss:$0 sps:$4 sm:$0x11]   ;;  %v3025_v6 = vld [vmem:[%s4057_s3 + $0x8] sm:$0xff]  }
  0xa1   : > { %1613 = vrot.lane.b32.xlu1 %v1538_v38, %s3073_s11  ;;  %v1786_v42 = vshll.u32 %v2707_v40, 16  ;;  %v1784_v43 = vshrl.u32 %v2707_v40, 16  ;;  %v1791_v49 = vshll.u32 %v3541_v1, 16  ;;  %v1526_v52 = vsel %vm1257_vm10, %v1521_v33, %v1525_v39  ;;  %v1096_v62 = vld [vmem:[%s3484_s29 + $0x28] sm:$0xf]  ;;  %2873 = vmatprep.subr.bf16.mxu0 %v3025_v6 }
  0xa2   : > { %v1774_v53 = vshll.u32 %v3538_v44, 16  ;;  %v3560_v57 = vcombine.low %v1093_v45, %v3557_v56  ;;  %v1653_v0 = vsel %vm1394_vm9, %v1651_v47, %v1652_v48  ;;  %v1772_v2 = vshrl.u32 %v3538_v44, 16  ;;  %v2973_v3 = vld [vmem:[%s3484_s29 + $0x2c] ss:$0 sps:$4 sm:$0x11]   ;;  %2894 = vmatprep.subr.bf16.mxu1 %v3025_v6  ;;  %2874 = vmatpush3.bf16.msra.mxu0 %v3025_v6 }
  0xa3   : > { %1356 = vrot.lane.b32.xlu0 %v1281_v37, %s3072_s8  ;;  %v1788_v54 = vrot.slane %v1786_v42, 1  ;;  %v1793_v59 = vrot.slane %v1791_v49, 1  ;;  %v1779_v8 = vshll.u32 %v3552_v51, 16  ;;  %v1290_v9 = vshll.u32 %v3563_v15, 16  ;;  %v2650_v11 = vld [vmem:[%s3484_s29 + $0x18] sm:$0xe]  ;;  %2897 = vmatpush3.bf16.msra.mxu1 %v3025_v6 }
  0xa4   : > { %v1283_v4 = vshrl.u32 %v3560_v57, 16  ;;  %v1285_v5 = vshll.u32 %v3560_v57, 16  ;;  %v1776_v7 = vrot.slane %v1774_v53, 1  ;;  %v3578_v10 = vcombine.low %v1095_v60, %v1096_v62  ;;  %v2651_v16 = vld [vmem:[%s3484_s29 + $0x24] sm:$0xe] }
  0xa5   : > { %1677 = vrot.lane.b32.xlu1 %v1656_v46, %s3074_s12  ;;  %v1789_v58 = vor.u32 %v1788_v54, %v1784_v43  ;;  %v1292_v19 = vrot.slane %v1290_v9, 1  ;;  %v1302_v21 = vshll.u32 %v2973_v3, 16  ;;  %v1116_v22 = vld [vmem:[%s3484_s29 + $0x24] sm:$0xe]  ;;  %v2722_v23 = vcombine.low %v2650_v11, %v3535_v41  ;;  %v2598_v27 = vld [vmem:[%s3484_s29 + $0x30] sm:$0xf] }
  0xa6   : > { %v1287_v13 = vrot.slane %v1285_v5, 1  ;;  %v1297_v17 = vshll.u32 %v3578_v10, 16  ;;  %v1295_v20 = vshrl.u32 %v3578_v10, 16  ;;  %v1777_v24 = vor.u32 %v1776_v7, %v1772_v2  ;;  %v3592_v12 = vld [vmem:[%s3484_s29 + $0x34] sm:$0xf] }
  0xa7   : > { %1611 = vrot.lane.b32.xlu0 %v1526_v52, %s3073_s11  ;;  %v1794_v14 = vsel %vm1257_vm10, %v1789_v58, %v1793_v59  ;;  %v1781_v25 = vrot.slane %v1779_v8, 1  ;;  %v2723_v28 = vcombine.low %v2651_v16, %v3526_v63  ;;  %v2677_v29 = vcombine.low %v1116_v22, %v1096_v62  ;;  %v1115_v63 = vld [vmem:[%s3484_s29 + $0x18] sm:$0xe]  ;;  %v2596_v37 = vld [vmem:[%s3484_s29 + $0x24] sm:$0xf] }
  0xa8   : > { %v1288_v18 = vor.u32 %v1287_v13, %v1283_v4  ;;  %v1299_v26 = vrot.slane %v1297_v17, 1  ;;  %v1304_v32 = vrot.slane %v1302_v21, 1  ;;  %v2685_v33 = vcombine.low %v2598_v27, %v3592_v12  ;;  %v3605_v38 = vld [vmem:[%s3484_s29 + $0x28] sm:$0xf]  ;;  %v2619_v48 = vld [vmem:[%s3484_s29 + $0x30] sm:$0xe] }
  0xa9   : > { %1733 = vrot.lane.b32.xlu1 %v2707_v40, %s3075_s16  ;;  %v1782_v34 = vsel %vm1257_vm10, %v1777_v24, %v1781_v25  ;;  %v1907_v35 = vrot.slane %v2722_v23, 1  ;;  %v1908_v36 = vrot.slane %v3552_v51, 1  ;;  %v1910_v39 = vrot.slane %v2723_v28, 1  ;;  %v2980_v42 = vld [vmem:[%s3484_s29 + $0x38] ss:$0 sps:$4 sm:$0x11]  }
  0xaa   : > { %v1293_v30 = vsel %vm1257_vm10, %v1288_v18, %v1292_v19  ;;  %v1300_v31 = vor.u32 %v1299_v26, %v1295_v20  ;;  %v1404_v40 = vrot.slane %v2677_v29, 1  ;;  %v1405_v41 = vrot.slane %v2973_v3, 1  ;;  %v2632_v51 = vld [vmem:[%s3484_s29 + $0x3c] sm:$0xf]  ;;  %v2618_v4 = vld [vmem:[%s3484_s29 + $0x24] sm:$0xe] }
  0xab   : > { %1675 = vrot.lane.b32.xlu0 %v1653_v0, %s3074_s12  ;;  %v1554_v50 = vshll.u32 %v2685_v33, 16  ;;  %v1909_v43 = vsel %vm1394_vm9, %v1907_v35, %v1908_v36  ;;  %v1911_v45 = vrot.slane %v3541_v1, 1  ;;  %v2676_v46 = vcombine.low %v1115_v63, %v3557_v56  ;;  %v3621_v1 = vld [vmem:[%s3484_s29 + $0x40] sm:$0xf]  ;;  %v2630_v8 = vld [vmem:[%s3484_s29 + $0x30] sm:$0xf] }
  0xac   : > { %v2684_v47 = vcombine.low %v2596_v37, %v3605_v38  ;;  %v1552_v49 = vshrl.u32 %v2685_v33, 16  ;;  %v1406_v52 = vsel %vm1394_vm9, %v1404_v40, %v1405_v41  ;;  %v1559_v54 = vshll.u32 %v2980_v42, 16  ;;  %v2981_v62 = vld [vmem:[%s3484_s29 + $0x2c] ss:$0 sps:$4 sm:$0x11]  }
  0xad   : > { %1869 = vrot.lane.b32.xlu1 %v1794_v14, %s3076_s18  ;;  %v1556_v53 = vrot.slane %v1554_v50, 1  ;;  %v1912_v56 = vsel %vm1394_vm9, %v1910_v39, %v1911_v45  ;;  %v1401_v58 = vrot.slane %v2676_v46, 1  ;;  %v1402_v59 = vrot.slane %v3563_v15, 1  ;;  %v1097_v11 = vld [vmem:[%s3484_s29 + $0x30] sm:$0xf] }
  0xae   : > { %v1542_v60 = vshll.u32 %v2684_v47, 16  ;;  %v2709_v0 = vcombine.low %v2632_v51, %v3621_v1  ;;  %v2701_v2 = vcombine.low %v2619_v48, %v3592_v12  ;;  %v1561_v6 = vrot.slane %v1559_v54, 1  ;;  %v3635_v13 = vld [vmem:[%s3484_s29 + $0x34] sm:$0xf]  ;;  %v1099_v26 = vld [vmem:[%s3484_s29 + $0x3c] sm:$0xf] }
  0xaf   : > { %1731 = vrot.lane.b32.xlu0 %v3538_v44, %s3075_s16  ;;  %v1305_v44 = vsel %vm1257_vm10, %v1300_v31, %v1304_v32  ;;  %v1557_v5 = vor.u32 %v1556_v53, %v1552_v49  ;;  %v1540_v7 = vshrl.u32 %v2684_v47, 16  ;;  %v1403_v15 = vsel %vm1394_vm9, %v1401_v58, %v1402_v59  ;;  %v2631_v16 = vld [vmem:[%s3484_s29 + $0x34] sm:$0xf]  ;;  %v3639_v14 = vld [vmem:[%s3484_s29 + $0x44] ss:$0 sps:$4 sm:$0x11]  }
  0xb0   : > { %v1544_v9 = vrot.slane %v1542_v60, 1  ;;  %v1547_v3 = vshll.u32 %v2981_v62, 16  ;;  %v1810_v17 = vshll.u32 %v2709_v0, 16  ;;  %v1660_v19 = vrot.slane %v2701_v2, 1  ;;  %v3650_v27 = vld [vmem:[%s3484_s29 + $0x40] sm:$0xf] }
  0xb1   : > { %1358 = vrot.lane.b32.xlu1 %v1293_v30, %s3072_s8  ;;  %v1562_v18 = vsel %vm1257_vm10, %v1557_v5, %v1561_v6  ;;  %v1661_v20 = vrot.slane %v2980_v42, 1  ;;  %v3645_v21 = vcombine.low %v1097_v11, %v3635_v13  ;;  %v2700_v22 = vcombine.low %v2618_v4, %v3605_v38  ;;  %v3655_v30 = vld [vmem:[%s3484_s29 + $0x38] ss:$0 sps:$4 sm:$0x11]   ;;  %v2652_v38 = vld [vmem:[%s3484_s29 + $0x30] sm:$0xe] }
  0xb2   : > { %v1545_v23 = vor.u32 %v1544_v9, %v1540_v7  ;;  %v1549_v24 = vrot.slane %v1547_v3, 1  ;;  %v2708_v25 = vcombine.low %v2630_v8, %v2631_v16  ;;  %v1808_v12 = vshrl.u32 %v2709_v0, 16  ;;  %v2987_v37 = vld [vmem:[%s3484_s29 + $0x38] ss:$0 sps:$4 sm:$0x11]  }
  0xb3   : > { %1867 = vrot.lane.b32.xlu0 %v1782_v34, %s3076_s18  ;;  %v1815_v28 = vshll.u32 %v3639_v14, 16  ;;  %v1812_v29 = vrot.slane %v1810_v17, 1  ;;  %v1662_v31 = vsel %vm1394_vm9, %v1660_v19, %v1661_v20  ;;  %v1309_v32 = vshll.u32 %v3645_v21, 16  ;;  %v1118_v53 = vld [vmem:[%s3484_s29 + $0x3c] sm:$0xe] }
  0xb4   : > { %v1550_v34 = vsel %vm1257_vm10, %v1545_v23, %v1549_v24  ;;  %v1657_v35 = vrot.slane %v2700_v22, 1  ;;  %v1658_v36 = vrot.slane %v2981_v62, 1  ;;  %v1798_v63 = vshll.u32 %v2708_v25, 16  ;;  %v2602_v2 = vld [vmem:[%s3484_s29 + $0x48] sm:$0xf] }
  0xb5   : > { %1360 = vrot.lane.b32.xlu1 %v1305_v44, %s3072_s8  ;;  %v1813_v39 = vor.u32 %v1812_v29, %v1808_v12  ;;  %v1817_v40 = vrot.slane %v1815_v28, 1  ;;  %v1314_v41 = vshll.u32 %v3655_v30, 16  ;;  %v2991_v44 = vld [vmem:[%s3484_s29 + $0x44] ss:$0 sps:$4 sm:$0x11]   ;;  %v1307_v50 = vshrl.u32 %v3645_v21, 16 }
  0xb6   : > { %v1311_v42 = vrot.slane %v1309_v32, 1  ;;  %v1659_v45 = vsel %vm1394_vm9, %v1657_v35, %v1658_v36  ;;  %v1796_v46 = vshrl.u32 %v2708_v25, 16  ;;  %v1803_v48 = vshll.u32 %v2987_v37, 16  ;;  %v3680_v4 = vld [vmem:[%s3484_s29 + $0x4c] sm:$0xf] }
  0xb7   : > { %1931 = vrot.lane.b32.xlu0 %v1909_v43, %s3077_s19  ;;  %v2724_v49 = vcombine.low %v2652_v38, %v2631_v16  ;;  %v1818_v51 = vsel %vm1257_vm10, %v1813_v39, %v1817_v40  ;;  %v1326_v59 = vshll.u32 %v2991_v44, 16  ;;  %v1914_v6 = vrot.slane %v2987_v37, 1  ;;  %v1117_v17 = vld [vmem:[%s3484_s29 + $0x30] sm:$0xe]  ;;  %v3693_v19 = vld [vmem:[%s3484_s29 + $0x40] sm:$0xf] }
  0xb8   : > { %v1312_v54 = vor.u32 %v1311_v42, %v1307_v50  ;;  %v1805_v62 = vrot.slane %v1803_v48, 1  ;;  %v2679_v7 = vcombine.low %v1118_v53, %v3650_v27  ;;  %v2687_v3 = vcombine.low %v2602_v2, %v3680_v4  ;;  %v2621_v29 = vld [vmem:[%s3484_s29 + $0x48] sm:$0xe]  ;;  %v2636_v36 = vld [vmem:[%s3484_s29 + $0x54] sm:$0xf] }
  0xb9   : > { %1425 = vrot.lane.b32.xlu1 %v1406_v52, %s3071_s7  ;;  %v1316_v52 = vrot.slane %v1314_v41, 1  ;;  %v1913_v5 = vrot.slane %v2724_v49, 1  ;;  %v1328_v9 = vrot.slane %v1326_v59, 1  ;;  %v1411_v24 = vrot.slane %v2991_v44, 1  ;;  %v2620_v44 = vld [vmem:[%s3484_s29 + $0x3c] sm:$0xe] }
  0xba   : > { %v1410_v23 = vrot.slane %v2679_v7, 1  ;;  %v2678_v12 = vcombine.low %v1117_v17, %v3635_v13  ;;  %v1408_v37 = vrot.slane %v3655_v30, 1  ;;  %v2999_v39 = vld [vmem:[%s3484_s29 + $0x44] ss:$0 sps:$4 sm:$0x11]   ;;  %v2703_v41 = vcombine.low %v2621_v29, %v3680_v4 }
  0xbb   : > { %1933 = vrot.lane.b32.xlu0 %v1912_v56, %s3077_s19  ;;  %v1317_v8 = vsel %vm1257_vm10, %v1312_v54, %v1316_v52  ;;  %v1915_v20 = vsel %vm1394_vm9, %v1913_v5, %v1914_v6  ;;  %v3722_v48 = vld [vmem:[%s3484_s29 + $0x4c] sm:$0xf]  ;;  %v2634_v49 = vld [vmem:[%s3484_s29 + $0x48] sm:$0xf]  ;;  %v1103_v5 = vld [vmem:[%s3484_s29 + $0x54] sm:$0xf] }
  0xbc   : > { %v1412_v32 = vsel %vm1394_vm9, %v1410_v23, %v1411_v24  ;;  %v1407_v13 = vrot.slane %v2678_v12, 1  ;;  %v3730_v53 = vld [vmem:[%s3484_s29 + $0x5c] ss:$0 sps:$4 sm:$0x11]   ;;  %v3744_v6 = vld [vmem:[%s3484_s29 + $0x58] sm:$0xf] }
  0xbd   : > { %1481 = vrot.lane.b32.xlu1 %v2685_v33, %s3070_s30  ;;  %v3661_v33 = vcombine.low %v1099_v26, %v3650_v27  ;;  %v1917_v27 = vrot.slane %v3639_v14, 1  ;;  %v3757_v17 = vcombine.low %v1103_v5, %v3744_v6  ;;  %v3005_v23 = vld [vmem:[%s3484_s29 + $0x50] ss:$0 sps:$4 sm:$0x11]  }
  0xbe   : > { %v3009_v12 = vld [vmem:[%s3484_s29 + $0x5c] ss:$0 sps:$4 sm:$0x11]  }
  0xbf   : > { %1423 = vrot.lane.b32.xlu0 %v1403_v15, %s3071_s7  ;;  %v1321_v43 = vshll.u32 %v3661_v33, 16  ;;  %v1319_v56 = vshrl.u32 %v3661_v33, 16 }
  0xc1   : > { %1617 = vrot.lane.b32.xlu1 %v1562_v18, %s3073_s11  ;;  %v1323_v58 = vrot.slane %v1321_v43, 1  ;;  %v2600_v18 = vld [vmem:[%s3484_s29 + $0x3c] sm:$0xf] }
  0xc2   : > { %v2686_v28 = vcombine.low %v2600_v18, %v3693_v19 }
  0xc3   : > { %1479 = vrot.lane.b32.xlu0 %v2684_v47, %s3070_s30  ;;  %v1800_v47 = vrot.slane %v1798_v63, 1  ;;  %v1324_v15 = vor.u32 %v1323_v58, %v1319_v56  ;;  %v3709_v63 = vld [vmem:[%s3484_s29 + $0x58] sm:$0xf]  ;;  %v1666_v56 = vrot.slane %v2703_v41, 1  ;;  %v1120_v41 = vld [vmem:[%s3484_s29 + $0x54] sm:$0xe] }
  0xc4   : > { %v1566_v38 = vshll.u32 %v2686_v28, 16  ;;  %v2711_v40 = vcombine.low %v2636_v36, %v3709_v63  ;;  %v1564_v43 = vshrl.u32 %v2686_v28, 16 }
  0xc5   : > { %1681 = vrot.lane.b32.xlu1 %v1662_v31, %s3074_s12  ;;  %v1801_v60 = vor.u32 %v1800_v47, %v1796_v46  ;;  %v1329_v22 = vsel %vm1257_vm10, %v1324_v15, %v1328_v9  ;;  %v1576_v31 = vshrl.u32 %v2687_v3, 16  ;;  %v1571_v46 = vshll.u32 %v2999_v39, 16  ;;  %v1101_v47 = vld [vmem:[%s3484_s29 + $0x48] sm:$0xf] }
  0xc6   : > { %v1568_v30 = vrot.slane %v1566_v38, 1  ;;  %v1834_v52 = vshll.u32 %v2711_v40, 16  ;;  %v3735_v59 = vcombine.low %v1101_v47, %v3722_v48  ;;  %v1832_v7 = vshrl.u32 %v2711_v40, 16  ;;  %v3749_v9 = vld [vmem:[%s3484_s29 + $0x50] ss:$0 sps:$4 sm:$0x11]  }
  0xc7   : > { %1615 = vrot.lane.b32.xlu0 %v1550_v34, %s3073_s11  ;;  %v1806_v16 = vsel %vm1257_vm10, %v1801_v60, %v1805_v62  ;;  %v3026_v60 = vld [vmem:[%s4057_s3 + $0x10] ss:$0 sps:$4 sm:$0x33]   ;;  %v2702_v62 = vcombine.low %v2620_v44, %v3693_v19  ;;  %v1573_v4 = vrot.slane %v1571_v46, 1  ;;  %v1839_v15 = vshll.u32 %v3730_v53, 16 }
  0xc8   : > { %v1569_v2 = vor.u32 %v1568_v30, %v1564_v43  ;;  %2899 = vmatprep.subr.msk.bf16.mxu0 %vm2127_vm11, %v3026_v60  ;;  %2900 = vmatprep.subr.msk.bf16.mxu1 %vm2127_vm11, %v3026_v60  ;;  %v2606_v43 = vld [vmem:[%s3484_s29 + $0x60] sm:$0xf]  ;;  %v2681_v30 = vcombine.low %v1120_v41, %v3744_v6  ;;  %v1417_v6 = vrot.slane %v3009_v12, 1  ;;  %v3022_v41 = vld [vmem:[%s3484_s29 + $0x74] ss:$0 sps:$4 sm:$0x11]  }
  0xc9   : > { %1737 = vrot.lane.b32.xlu1 %v2709_v0, %s3075_s16  ;;  %v2653_v0 = vld [vmem:[%s3484_s29 + $0x3c] sm:$0xe]  ;;  %v1663_v19 = vrot.slane %v2702_v62, 1  ;;  %v2604_v62 = vld [vmem:[%s3484_s29 + $0x54] sm:$0xf] }
  0xca   : > { %v2725_v11 = vcombine.low %v2653_v0, %v3621_v1  ;;  %v1578_v1 = vshll.u32 %v2687_v3, 16  ;;  %v1574_v18 = vsel %vm1257_vm10, %v1569_v2, %v1573_v4  ;;  %v2605_v2 = vld [vmem:[%s3484_s29 + $0x58] sm:$0xf]  ;;  %v1416_v5 = vrot.slane %v2681_v30, 1 }
  0xcb   : > { %1679 = vrot.lane.b32.xlu0 %v1659_v45, %s3074_s12  ;;  %v1409_v45 = vsel %vm1394_vm9, %v1407_v13, %v1408_v37  ;;  %v1343_v37 = vshrl.u32 %v3757_v17, 16 }
  0xcc   : > { %v1916_v26 = vrot.slane %v2725_v11, 1  ;;  %v1580_v34 = vrot.slane %v1578_v1, 1  ;;  %v1841_v1 = vrot.slane %v1839_v15, 1 }
  0xcd   : > { %1873 = vrot.lane.b32.xlu1 %v1818_v51, %s3076_s18  ;;  %v3726_v51 = vld [vmem:[%s3484_s29 + $0x4c] sm:$0xf] }
  0xce   : > { %v1918_v14 = vsel %vm1394_vm9, %v1916_v26, %v1917_v27  ;;  %v1581_v50 = vor.u32 %v1580_v34, %v1576_v31  ;;  %v2710_v0 = vcombine.low %v2634_v49, %v3726_v51  ;;  %v1331_v26 = vshrl.u32 %v3735_v59, 16 }
  0xcf   : > { %1735 = vrot.lane.b32.xlu0 %v2708_v25, %s3075_s16  ;;  %v2998_v25 = vld [vmem:[%s3484_s29 + $0x50] ss:$0 sps:$4 sm:$0x11]   ;;  %v1827_v34 = vshll.u32 %v3005_v23, 16 }
  0xd0   : > { %v1583_v35 = vshll.u32 %v2998_v25, 16  ;;  %v1667_v58 = vrot.slane %v2998_v25, 1  ;;  %v1338_v25 = vshll.u32 %v3749_v9, 16  ;;  %v1820_v31 = vshrl.u32 %v2710_v0, 16 }
  0xd1   : > { %1362 = vrot.lane.b32.xlu1 %v1317_v8, %s3072_s8  ;;  %v1836_v8 = vrot.slane %v1834_v52, 1  ;;  %v1119_v52 = vld [vmem:[%s3484_s29 + $0x48] sm:$0xe] }
  0xd2   : > { %v1585_v42 = vrot.slane %v1583_v35, 1  ;;  %v1668_v11 = vsel %vm1394_vm9, %v1666_v56, %v1667_v58  ;;  %v2654_v35 = vld [vmem:[%s3484_s29 + $0x48] sm:$0xe]  ;;  %v2680_v4 = vcombine.low %v1119_v52, %v3722_v48 }
  0xd3   : > { %1871 = vrot.lane.b32.xlu0 %v1806_v16, %s3076_s18  ;;  %v1333_v16 = vshll.u32 %v3735_v59, 16  ;;  %v1837_v24 = vor.u32 %v1836_v8, %v1832_v7  ;;  %v2726_v44 = vcombine.low %v2654_v35, %v3726_v51  ;;  %v2622_v35 = vld [vmem:[%s3484_s29 + $0x54] sm:$0xe] }
  0xd4   : > { %v1586_v54 = vsel %vm1257_vm10, %v1581_v50, %v1585_v42  ;;  %v1829_v42 = vrot.slane %v1827_v34, 1  ;;  %v1413_v48 = vrot.slane %v2680_v4, 1 }
  0xd5   : > { %1364 = vrot.lane.b32.xlu1 %v1329_v22, %s3072_s8  ;;  %v1822_v22 = vshll.u32 %v2710_v0, 16  ;;  %v1335_v27 = vrot.slane %v1333_v16, 1  ;;  %v1842_v36 = vsel %vm1257_vm10, %v1837_v24, %v1841_v1  ;;  %v1919_v58 = vrot.slane %v2726_v44, 1  ;;  %v2640_v24 = vld [vmem:[%s3484_s29 + $0x6c] sm:$0xf] }
  0xd6   : > { %v1414_v16 = vrot.slane %v3749_v9, 1  ;;  %v2704_v44 = vcombine.low %v2622_v35, %v2605_v2 }
  0xd7   : > { %1935 = vrot.lane.b32.xlu0 %v1915_v20, %s3077_s19  ;;  %v1664_v20 = vrot.slane %v2999_v39, 1  ;;  %v1336_v13 = vor.u32 %v1335_v27, %v1331_v26  ;;  %v1350_v39 = vshll.u32 %v3009_v12, 16  ;;  %v2641_v26 = vld [vmem:[%s3484_s29 + $0x70] sm:$0xf] }
  0xd8   : > { %v1669_v52 = vrot.slane %v2704_v44, 1 }
  0xd9   : > { %1429 = vrot.lane.b32.xlu1 %v1412_v32, %s3071_s7  ;;  %v1665_v29 = vsel %vm1394_vm9, %v1663_v19, %v1664_v20  ;;  %v1824_v32 = vrot.slane %v1822_v22, 1  ;;  %v1352_v49 = vrot.slane %v1350_v39, 1  ;;  %v1418_v19 = vsel %vm1394_vm9, %v1416_v5, %v1417_v6 }
  0xdb   : > { %1937 = vrot.lane.b32.xlu0 %v1918_v14, %s3077_s19  ;;  %v1340_v14 = vrot.slane %v1338_v25, 1  ;;  %v1825_v50 = vor.u32 %v1824_v32, %v1820_v31  ;;  %v3017_v25 = vld [vmem:[%s3484_s29 + $0x5c] ss:$0 sps:$4 sm:$0x11]  }
  0xdc   : > { %v1595_v34 = vshll.u32 %v3017_v25, 16 }
  0xdd   : > { %1485 = vrot.lane.b32.xlu1 %v2687_v3, %s3070_s30  ;;  %v2129_v3 = vsel %vm2127_vm11, %v3026_v60, 0  ;;  %v1341_v46 = vsel %vm1257_vm10, %v1336_v13, %v1340_v14  ;;  %v1830_v56 = vsel %vm1257_vm10, %v1825_v50, %v1829_v42  ;;  %v1920_v60 = vrot.slane %v3005_v23, 1  ;;  %v2639_v14 = vld [vmem:[%s3484_s29 + $0x64] sm:$0xf] }
  0xde   : > { %2876 = vmatpush3.bf16.msra.mxu0 %v2129_v3  ;;  %2898 = vmatpush3.bf16.msra.mxu1 %v2129_v3  ;;  %v1923_v3 = vrot.slane %v3730_v53, 1  ;;  %v1597_v42 = vrot.slane %v1595_v34, 1 }
  0xdf   : > { %1427 = vrot.lane.b32.xlu0 %v1409_v45, %s3071_s7  ;;  %v2655_v45 = vld [vmem:[%s3484_s29 + $0x54] sm:$0xe]  ;;  %v1921_v8 = vsel %vm1394_vm9, %v1919_v58, %v1920_v60 }
  0xe1   : > { %1621 = vrot.lane.b32.xlu1 %v1586_v54, %s3073_s11  ;;  %v2727_v54 = vcombine.low %v2655_v45, %v3709_v63  ;;  %v3016_v63 = vld [vmem:[%s3484_s29 + $0x68] ss:$0 sps:$4 sm:$0x11]   ;;  %v2657_v45 = vld [vmem:[%s3484_s29 + $0x6c] sm:$0xe] }
  0xe2   : > { %v1607_v23 = vshll.u32 %v3016_v63, 16  ;;  %v2729_v60 = vcombine.low %v2657_v45, %v2641_v26 }
  0xe3   : > { %1483 = vrot.lane.b32.xlu0 %v2686_v28, %s3070_s30  ;;  %v1345_v28 = vshll.u32 %v3757_v17, 16  ;;  %v1922_v15 = vrot.slane %v2727_v54, 1 }
  0xe4   : > { %v1609_v12 = vrot.slane %v1607_v23, 1 }
  0xe5   : > { %1685 = vrot.lane.b32.xlu1 %v1668_v11, %s3074_s12  ;;  %v1347_v38 = vrot.slane %v1345_v28, 1  ;;  %v2688_v11 = vcombine.low %v2604_v62, %v2605_v2  ;;  %v1924_v1 = vsel %vm1394_vm9, %v1922_v15, %v1923_v3  ;;  %v2713_v28 = vcombine.low %v2640_v24, %v2641_v26 }
  0xe6   : > { %v1928_v15 = vrot.slane %v2729_v60, 1  ;;  %v1929_v3 = vrot.slane %v3022_v41, 1 }
  0xe7   : > { %1619 = vrot.lane.b32.xlu0 %v1574_v18, %s3073_s11  ;;  %v1348_v47 = vor.u32 %v1347_v38, %v1343_v37  ;;  %v2623_v18 = vld [vmem:[%s3484_s29 + $0x60] sm:$0xe]  ;;  %v1590_v53 = vshll.u32 %v2688_v11, 16  ;;  %v1588_v31 = vshrl.u32 %v2688_v11, 16  ;;  %v1673_v38 = vrot.slane %v3016_v63, 1 }
  0xe8   : > { %v1858_v39 = vshll.u32 %v2713_v28, 16  ;;  %v1856_v30 = vshrl.u32 %v2713_v28, 16 }
  0xe9   : > { %1741 = vrot.lane.b32.xlu1 %v2711_v40, %s3075_s16  ;;  %v2607_v40 = vld [vmem:[%s3484_s29 + $0x64] sm:$0xf]  ;;  %v1592_v32 = vrot.slane %v1590_v53, 1 }
  0xea   : > { %v2689_v51 = vcombine.low %v2606_v43, %v2607_v40  ;;  %v2705_v9 = vcombine.low %v2623_v18, %v2607_v40 }
  0xeb   : > { %1683 = vrot.lane.b32.xlu0 %v1665_v29, %s3074_s12  ;;  %v1415_v29 = vsel %vm1394_vm9, %v1413_v48, %v1414_v16  ;;  %v1593_v50 = vor.u32 %v1592_v32, %v1588_v31 }
  0xec   : > { %v1602_v7 = vshll.u32 %v2689_v51, 16  ;;  %v1600_v20 = vshrl.u32 %v2689_v51, 16  ;;  %v1672_v37 = vrot.slane %v2705_v9, 1 }
  0xed   : > { %1877 = vrot.lane.b32.xlu1 %v1842_v36, %s3076_s18  ;;  %v2638_v36 = vld [vmem:[%s3484_s29 + $0x60] sm:$0xf] }
  0xee   : > { %v1604_v22 = vrot.slane %v1602_v7, 1  ;;  %v2712_v43 = vcombine.low %v2638_v36, %v2639_v14  ;;  %v1674_v40 = vsel %vm1394_vm9, %v1672_v37, %v1673_v38  ;;  %v2656_v7 = vld [vmem:[%s3484_s29 + $0x60] sm:$0xe] }
  0xef   : > { %1739 = vrot.lane.b32.xlu0 %v2710_v0, %s3075_s16  ;;  %v1353_v0 = vsel %vm1257_vm10, %v1348_v47, %v1352_v49  ;;  %v1863_v47 = vshll.u32 %v3022_v41, 16  ;;  %v1598_v49 = vsel %vm1257_vm10, %v1593_v50, %v1597_v42  ;;  %v2728_v48 = vcombine.low %v2656_v7, %v2639_v14 }
  0xf0   : > { %v1605_v27 = vor.u32 %v1604_v22, %v1600_v20  ;;  %v1846_v54 = vshll.u32 %v2712_v43, 16 }
  0xf1   : > { %1366 = vrot.lane.b32.xlu1 %v1341_v46, %s3072_s8  ;;  %v1860_v46 = vrot.slane %v1858_v39, 1  ;;  %v1865_v2 = vrot.slane %v1863_v47, 1  ;;  %v1925_v23 = vrot.slane %v2728_v48, 1 }
  0xf2   : > { %v1610_v13 = vsel %vm1257_vm10, %v1605_v27, %v1609_v12  ;;  %v1848_v5 = vrot.slane %v1846_v54, 1 }
  0xf3   : > { %1875 = vrot.lane.b32.xlu0 %v1830_v56, %s3076_s18  ;;  %v3023_v56 = vld [vmem:[%s3484_s29 + $0x68] ss:$0 sps:$4 sm:$0x11]   ;;  %v1861_v62 = vor.u32 %v1860_v46, %v1856_v30 }
  0xf4   : > { %v1851_v6 = vshll.u32 %v3023_v56, 16  ;;  %v1926_v24 = vrot.slane %v3023_v56, 1 }
  0xf5   : > { %1368 = vrot.lane.b32.xlu1 %v1353_v0, %s3072_s8  ;;  %v1844_v0 = vshrl.u32 %v2712_v43, 16 }
  0xf6   : > { %v1853_v18 = vrot.slane %v1851_v6, 1 }
  0xf7   : > { %1939 = vrot.lane.b32.xlu0 %v1921_v8, %s3077_s19  ;;  %v1866_v8 = vsel %vm1257_vm10, %v1861_v62, %v1865_v2  ;;  %v1849_v16 = vor.u32 %v1848_v5, %v1844_v0 }
  0xf9   : > { %1433 = vrot.lane.b32.xlu1 %v1418_v19, %s3071_s7  ;;  %v1930_v19 = vsel %vm1394_vm9, %v1928_v15, %v1929_v3  ;;  %v1854_v22 = vsel %vm1257_vm10, %v1849_v16, %v1853_v18 }
  0xfb   : > { %1941 = vrot.lane.b32.xlu0 %v1924_v1, %s3077_s19 }
  0xfd   : > { %1489 = vrot.lane.b32.xlu1 %v2689_v51, %s3070_s30  ;;  %v1670_v51 = vrot.slane %v3017_v25, 1  ;;  %v1927_v25 = vsel %vm1394_vm9, %v1925_v23, %v1926_v24 }
  0xff   : > { %1431 = vrot.lane.b32.xlu0 %v1415_v29, %s3071_s7  ;;  %v1671_v4 = vsel %vm1394_vm9, %v1669_v52, %v1670_v51 }
 0x101   : > { %1625 = vrot.lane.b32.xlu1 %v1610_v13, %s3073_s11 }
 0x103   : > { %1487 = vrot.lane.b32.xlu0 %v2688_v11, %s3070_s30 }
 0x105   : > { %1689 = vrot.lane.b32.xlu1 %v1674_v40, %s3074_s12 }
 0x107   : > { %1623 = vrot.lane.b32.xlu0 %v1598_v49, %s3073_s11  ;;  %v1478_v58 = vpop.permute.xlu1 %1477 }
 0x108   : > { %v1476_v63 = vpop.permute.xlu0 %1475 }
 0x109   : > { %1745 = vrot.lane.b32.xlu1 %v2713_v28, %s3075_s16 }
 0x10b   : > { %1687 = vrot.lane.b32.xlu0 %v1671_v4, %s3074_s12  ;;  %v1420_v11 = vpop.permute.xlu1 %1419 }
 0x10d   : > { %1881 = vrot.lane.b32.xlu1 %v1866_v8, %s3076_s18 }
 0x10f   : > { %1743 = vrot.lane.b32.xlu0 %v2712_v43, %s3075_s16  ;;  %v1422_v20 = vpop.permute.xlu1 %1421 }
 0x111   : > { %v1355_v1 = vpop.permute.xlu0 %1354  ;;  %1945 = vrot.lane.b32.xlu1 %v1930_v19, %s3077_s19 }
 0x112   : > { %v1949_v29 = vsel %vm1947_vm12, %v3503_v55, %v1355_v1 }
 0x113   : > { %1879 = vrot.lane.b32.xlu0 %v1854_v22, %s3076_s18  ;;  %v1614_v53 = vpop.permute.xlu1 %1613  ;;  %v1966_v35 = vsel %vm1964_vm13, %v1949_v29, %v1420_v11 }
 0x114   : > { %v1983_v37 = vsel %vm1981_vm14, %v1966_v35, %v1476_v63 }
 0x115   : > { %v1357_v26 = vpop.permute.xlu0 %1356 }
 0x116   : > { %v1951_v31 = vsel %vm1947_vm12, %v3507_v61, %v1357_v26 }
 0x117   : > { %1943 = vrot.lane.b32.xlu0 %v1927_v25, %s3077_s19  ;;  %v1678_v9 = vpop.permute.xlu1 %1677  ;;  %v1968_v36 = vsel %vm1964_vm13, %v1951_v31, %v1422_v20 }
 0x118   : > { %v1985_v13 = vsel %vm1981_vm14, %v1968_v36, %v1478_v58 }
 0x119   : > { %v1612_v27 = vpop.permute.xlu0 %1611  ;;  %v2002_v61 = vsel %vm1998_vm15, %v1985_v13, %v1614_v53 }
 0x11a   : > { %v2000_v39 = vsel %vm1998_vm15, %v1983_v37, %v1612_v27  ;;  %v2019_v40 = vsel %vm2015_vm0, %v2002_v61, %v1678_v9 }
 0x11b   : > { %v1734_v12 = vpop.permute.xlu1 %1733 }
 0x11c   : > { %v2036_v45 = vsel %vm2032_vm1, %v2019_v40, %v1734_v12 }
 0x11d   : > { %v1676_v28 = vpop.permute.xlu0 %1675 }
 0x11e   : > { %v2017_v55 = vsel %vm2015_vm0, %v2000_v39, %v1676_v28 }
 0x11f   : > { %v1870_v32 = vpop.permute.xlu1 %1869 }
 0x120   : > { %v2053_v46 = vsel %vm2049_vm3, %v2036_v45, %v1870_v32 }
 0x121   : > { %v1732_v34 = vpop.permute.xlu0 %1731 }
 0x122   : > { %v2034_v41 = vsel %vm2032_vm1, %v2017_v55, %v1732_v34 }
 0x123   : > { %v1359_v14 = vpop.permute.xlu1 %1358 }
 0x124   : > { %v1953_v5 = vsel %vm1947_vm12, %v3560_v57, %v1359_v14 }
 0x125   : > { %v1868_v38 = vpop.permute.xlu0 %1867 }
 0x126   : > { %v2051_v50 = vsel %vm2049_vm3, %v2034_v41, %v1868_v38 }
 0x127   : > { %v1361_v44 = vpop.permute.xlu1 %1360 }
 0x128   : > { %v1955_v63 = vsel %vm1947_vm12, %v3578_v10, %v1361_v44 }
 0x129   : > { %v1932_v42 = vpop.permute.xlu0 %1931 }
 0x12a   : > { %v2068_v43 = vsel %vm2066_vm2, %v2051_v50, %v1932_v42 }
 0x12b   : > { %2877 = vmatprep.mubr.msk.bf16.mxu0 %vm2110_vm4, %v2068_v43  ;;  %v1426_v30 = vpop.permute.xlu1 %1425 }
 0x12c   : > { %v1972_v48 = vsel %vm1964_vm13, %v1955_v63, %v1426_v30 }
 0x12d   : > { %v1934_v47 = vpop.permute.xlu0 %1933 }
 0x12e   : > { %v2070_v49 = vsel %vm2066_vm2, %v2053_v46, %v1934_v47 }
 0x12f   : > { %2878 = vmatmul.mubr.msk.bf16.vlgmr.msra.gmra.mrb[0].mxu0 %vm2110_vm4, %v2070_v49  ;;  %v1482_v52 = vpop.permute.xlu1 %1481 }
 0x130   : > { %v1989_v57 = vsel %vm1981_vm14, %v1972_v48, %v1482_v52 }
 0x131   : > { %v1424_v51 = vpop.permute.xlu0 %1423 }
 0x132   : > { %v1970_v6 = vsel %vm1964_vm13, %v1953_v5, %v1424_v51 }
 0x133   : > { %v1618_v54 = vpop.permute.xlu1 %1617 }
 0x134   : > { %v2006_v22 = vsel %vm1998_vm15, %v1989_v57, %v1618_v54 }
 0x135   : > { %v1480_v56 = vpop.permute.xlu0 %1479 }
 0x136   : > { %v1987_v8 = vsel %vm1981_vm14, %v1970_v6, %v1480_v56 }
 0x137   : > { %v1682_v58 = vpop.permute.xlu1 %1681 }
 0x138   : > { %v2023_v23 = vsel %vm2015_vm0, %v2006_v22, %v1682_v58 }
 0x139   : > { %v1616_v60 = vpop.permute.xlu0 %1615 }
 0x13a   : > { %v2004_v3 = vsel %vm1998_vm15, %v1987_v8, %v1616_v60 }
 0x13b   : > { %v1738_v62 = vpop.permute.xlu1 %1737 }
 0x13c   : > { %v2040_v24 = vsel %vm2032_vm1, %v2023_v23, %v1738_v62 }
 0x13d   : > { %v1680_v2 = vpop.permute.xlu0 %1679 }
 0x13e   : > { %v2021_v11 = vsel %vm2015_vm0, %v2004_v3, %v1680_v2 }
 0x13f   : > { %v1874_v4 = vpop.permute.xlu1 %1873 }
 0x140   : > { %v2057_v53 = vsel %vm2049_vm3, %v2040_v24, %v1874_v4 }
 0x141   : > { %v1736_v0 = vpop.permute.xlu0 %1735 }
 0x142   : > { %v2038_v16 = vsel %vm2032_vm1, %v2021_v11, %v1736_v0 }
 0x143   : > { %v1363_v7 = vpop.permute.xlu1 %1362 }
 0x144   : > { %v1957_v14 = vsel %vm1947_vm12, %v3645_v21, %v1363_v7 }
 0x145   : > { %v1872_v15 = vpop.permute.xlu0 %1871 }
 0x146   : > { %v2055_v19 = vsel %vm2049_vm3, %v2038_v16, %v1872_v15 }
 0x147   : > { %v1365_v18 = vpop.permute.xlu1 %1364 }
 0x148   : > { %v1959_v38 = vsel %vm1947_vm12, %v3661_v33, %v1365_v18 }
 0x149   : > { %v1936_v20 = vpop.permute.xlu0 %1935 }
 0x14a   : > { %v2072_v10 = vsel %vm2066_vm2, %v2055_v19, %v1936_v20 }
 0x14b   : > { %2881 = vmatprep.mubr.msk.bf16.mxu0 %vm2110_vm4, %v2072_v10  ;;  %v1430_v1 = vpop.permute.xlu1 %1429 }
 0x14c   : > { %v1976_v44 = vsel %vm1964_vm13, %v1959_v38, %v1430_v1 }
 0x14d   : > { %v1938_v25 = vpop.permute.xlu0 %1937 }
 0x14e   : > { %v2074_v26 = vsel %vm2066_vm2, %v2057_v53, %v1938_v25  ;;  %v3918_v53 = vld [vmem:[%s4058_s4] ss:$0 sm:$0xff] }
 0x14f   : > { %2882 = vmatmul.mubr.msk.bf16.gmra.mrb[4].mxu0 %vm2110_vm4, %v2074_v26  ;;  %v1486_v9 = vpop.permute.xlu1 %1485 }
 0x150   : > { %v1993_v21 = vsel %vm1981_vm14, %v1976_v44, %v1486_v9 }
 0x151   : > { %v1428_v27 = vpop.permute.xlu0 %1427 }
 0x152   : > { %v1974_v13 = vsel %vm1964_vm13, %v1957_v14, %v1428_v27 }
 0x153   : > { %v1622_v12 = vpop.permute.xlu1 %1621 }
 0x154   : > { %v2010_v45 = vsel %vm1998_vm15, %v1993_v21, %v1622_v12 }
 0x155   : > { %v1484_v28 = vpop.permute.xlu0 %1483 }
 0x156   : > { %v1991_v39 = vsel %vm1981_vm14, %v1974_v13, %v1484_v28 }
 0x157   : > { %v1686_v29 = vpop.permute.xlu1 %1685 }
 0x158   : > { %v2027_v30 = vsel %vm2015_vm0, %v2010_v45, %v1686_v29 }
 0x159   : > { %v1620_v31 = vpop.permute.xlu0 %1619 }
 0x15a   : > { %v2008_v61 = vsel %vm1998_vm15, %v1991_v39, %v1620_v31 }
 0x15b   : > { %v1742_v32 = vpop.permute.xlu1 %1741 }
 0x15c   : > { %v2044_v46 = vsel %vm2032_vm1, %v2027_v30, %v1742_v32 }
 0x15d   : > { %v1684_v34 = vpop.permute.xlu0 %1683 }
 0x15e   : > { %v2025_v41 = vsel %vm2015_vm0, %v2008_v61, %v1684_v34 }
 0x15f   : > { %v1878_v35 = vpop.permute.xlu1 %1877 }
 0x160   : > { %v2061_v49 = vsel %vm2049_vm3, %v2044_v46, %v1878_v35 }
 0x161   : > { %v1740_v36 = vpop.permute.xlu0 %1739 }
 0x162   : > { %v2042_v50 = vsel %vm2032_vm1, %v2025_v41, %v1740_v36 }
 0x163   : > { %v1367_v37 = vpop.permute.xlu1 %1366 }
 0x164   : > { %v1961_v63 = vsel %vm1947_vm12, %v3735_v59, %v1367_v37 }
 0x165   : > { %v1876_v55 = vpop.permute.xlu0 %1875 }
 0x166   : > { %v2059_v43 = vsel %vm2049_vm3, %v2042_v50, %v1876_v55 }
 0x167   : > { %v1369_v42 = vpop.permute.xlu1 %1368 }
 0x168   : > { %v1963_v6 = vsel %vm1947_vm12, %v3757_v17, %v1369_v42 }
 0x169   : > { %v1940_v40 = vpop.permute.xlu0 %1939 }
 0x16a   : > { %v2076_v33 = vsel %vm2066_vm2, %v2059_v43, %v1940_v40 }
 0x16b   : > { %2885 = vmatprep.mubr.msk.bf16.mxu1 %vm2110_vm4, %v2076_v33  ;;  %v1434_v47 = vpop.permute.xlu1 %1433 }
 0x16c   : > { %v1980_v15 = vsel %vm1964_vm13, %v1963_v6, %v1434_v47 }
 0x16d   : > { %v1942_v52 = vpop.permute.xlu0 %1941 }
 0x16e   : > { %v2078_v51 = vsel %vm2066_vm2, %v2061_v49, %v1942_v52 }
 0x16f   : > { %2886 = vmatmul.mubr.msk.bf16.vlgmr.msra.gmra.mrb[0].mxu1 %vm2110_vm4, %v2078_v51  ;;  %v1490_v54 = vpop.permute.xlu1 %1489 }
 0x170   : > { %v1997_v48 = vsel %vm1981_vm14, %v1980_v15, %v1490_v54 }
 0x171   : > { %v1432_v56 = vpop.permute.xlu0 %1431 }
 0x172   : > { %v1978_v8 = vsel %vm1964_vm13, %v1961_v63, %v1432_v56 }
 0x173   : > { %v1626_v58 = vpop.permute.xlu1 %1625 }
 0x174   : > { %v2014_v18 = vsel %vm1998_vm15, %v1997_v48, %v1626_v58 }
 0x175   : > { %v1488_v60 = vpop.permute.xlu0 %1487 }
 0x176   : > { %v1995_v3 = vsel %vm1981_vm14, %v1978_v8, %v1488_v60 }
 0x177   : > { %v1690_v62 = vpop.permute.xlu1 %1689 }
 0x178   : > { %v2031_v17 = vsel %vm2015_vm0, %v2014_v18, %v1690_v62 }
 0x179   : > { %v1624_v2 = vpop.permute.xlu0 %1623 }
 0x17a   : > { %v2012_v16 = vsel %vm1998_vm15, %v1995_v3, %v1624_v2 }
 0x17b   : > { %v1746_v4 = vpop.permute.xlu1 %1745 }
 0x17c   : > { %v2048_v20 = vsel %vm2032_vm1, %v2031_v17, %v1746_v4 }
 0x17d   : > { %v1688_v0 = vpop.permute.xlu0 %1687 }
 0x17e   : > { %v2029_v57 = vsel %vm2015_vm0, %v2012_v16, %v1688_v0 }
 0x17f   : > { %v1882_v7 = vpop.permute.xlu1 %1881 }
 0x180   : > { %v2065_v23 = vsel %vm2049_vm3, %v2048_v20, %v1882_v7 }
 0x181   : > { %v1744_v5 = vpop.permute.xlu0 %1743 }
 0x182   : > { %v2046_v19 = vsel %vm2032_vm1, %v2029_v57, %v1744_v5 }
 0x183   : > { %v1946_v59 = vpop.permute.xlu1 %1945 }
 0x184   : > { %v2082_v1 = vsel %vm2066_vm2, %v2065_v23, %v1946_v59 }
 0x185   : > { %v1880_v11 = vpop.permute.xlu0 %1879 }
 0x186   : > { %v2063_v22 = vsel %vm2049_vm3, %v2046_v19, %v1880_v11 }
 0x189   : > { %v1944_v10 = vpop.permute.xlu0 %1943 }
 0x18a   : > { %v2080_v24 = vsel %vm2066_vm2, %v2063_v22, %v1944_v10 }
 0x18b   : > { %2889 = vmatprep.mubr.msk.bf16.mxu1 %vm2110_vm4, %v2080_v24 }
 0x18c   : > { %2890 = vmatmul.mubr.msk.bf16.gmra.mrb[4].mxu1 %vm2110_vm4, %v2082_v1 }
 0x202   : > { %v2879_v25 = vpop.f32.mrb[0].mxu0 }
 0x203   : > { %v2165_v26 = vpop.f32.mrb[1].mxu0  ;;  %v2174_v31 = vadd.f32 %v2879_v25, %v3918_v53 }
 0x204   : > { %v2166_v9 = vadd.f32 %v3918_v53, %v2165_v26  ;;  %v2880_v27 = vpop.f32.mrb[2].mxu0 }
 0x205   : > { %v2168_v12 = vpop.f32.mrb[3].mxu0  ;;  %v3929_v34 = vmax.f32 %v2174_v31, 0.0  ;;  %v2177_v35 = vadd.f32 %v2880_v27, %v3918_v53 }
 0x206   : > { %v3921_v28 = vmax.f32 %v2166_v9, 0.0  ;;  %v2169_v29 = vadd.f32 %v3918_v53, %v2168_v12 }
 0x207   : > { %v3933_v36 = vmax.f32 %v2177_v35, 0.0  ;;  %v2280_v33 = vsel %vm1947_vm12, %v3929_v34, 0.0 }
 0x208   : > { %2244 = vxpose.xlu0.b32.start [1/16] (narrow) %v3921_v28, 8  ;;  %v3926_v32 = vmax.f32 %v2169_v29, 0.0  ;;  %v2277_v43 = vsel %vm1947_vm12, %v3921_v28, 0.0 }
 0x209   : > { %v2282_v46 = vsel %vm1947_vm12, %v3933_v36, 0.0 }
 0x20a   : > { %v2278_v50 = vsel %vm1947_vm12, %v3926_v32, 0.0 }
 0x20b   : > { %v2279_v40 = vadd.f32 %v2278_v50, %v2277_v43 }
 0x20c   : > { %2245 = vxpose.xlu0.b32.cont [2/16] (narrow) %v3926_v32, 8 }
 0x20d   : > { %v2281_v30 = vadd.f32 %v2280_v33, %v2279_v40 }
 0x20f   : > { %v2283_v49 = vadd.f32 %v2282_v46, %v2281_v30 }
 0x210   : > { %2246 = vxpose.xlu0.b32.cont [3/16] (narrow) %v3929_v34, 8 }
 0x214   : > { %2247 = vxpose.xlu0.b32.cont [4/16] (narrow) %v3933_v36, 8 }
 0x222   : > { %v2883_v14 = vpop.f32.mrb[4].mxu0 }
 0x223   : > { %v2181_v13 = vpop.f32.mrb[5].mxu0  ;;  %v2190_v41 = vadd.f32 %v2883_v14, %v3918_v53 }
 0x224   : > { %v2182_v37 = vadd.f32 %v3918_v53, %v2181_v13  ;;  %v2884_v38 = vpop.f32.mrb[6].mxu0 }
 0x225   : > { %v2184_v39 = vpop.f32.mrb[7].mxu0  ;;  %v3947_v42 = vmax.f32 %v2190_v41, 0.0  ;;  %v2193_v21 = vadd.f32 %v2884_v38, %v3918_v53 }
 0x226   : > { %v3937_v55 = vmax.f32 %v2182_v37, 0.0  ;;  %v2185_v61 = vadd.f32 %v3918_v53, %v2184_v39 }
 0x227   : > { %v3953_v45 = vmax.f32 %v2193_v21, 0.0  ;;  %v2288_v56 = vsel %vm1947_vm12, %v3947_v42, 0.0 }
 0x228   : > { %2248 = vxpose.xlu0.b32.cont [5/16] (narrow) %v3937_v55, 8  ;;  %v3942_v44 = vmax.f32 %v2185_v61, 0.0  ;;  %v2284_v47 = vsel %vm1947_vm12, %v3937_v55, 0.0 }
 0x229   : > { %v2285_v52 = vadd.f32 %v2284_v47, %v2283_v49  ;;  %v2290_v6 = vsel %vm1947_vm12, %v3953_v45, 0.0 }
 0x22a   : > { %v2286_v51 = vsel %vm1947_vm12, %v3942_v44, 0.0 }
 0x22b   : > { %v2287_v54 = vadd.f32 %v2286_v51, %v2285_v52 }
 0x22c   : > { %2249 = vxpose.xlu0.b32.cont [6/16] (narrow) %v3942_v44, 8 }
 0x22d   : > { %v2289_v60 = vadd.f32 %v2288_v56, %v2287_v54 }
 0x22f   : > { %v2291_v15 = vadd.f32 %v2290_v6, %v2289_v60 }
 0x230   : > { %2250 = vxpose.xlu0.b32.cont [7/16] (narrow) %v3947_v42, 8 }
 0x234   : > { %2251 = vxpose.xlu0.b32.cont [8/16] (narrow) %v3953_v45, 8 }
 0x242   : > { %v2887_v58 = vpop.f32.mrb[0].mxu1 }
 0x243   : > { %v2197_v62 = vpop.f32.mrb[1].mxu1  ;;  %v2206_v2 = vadd.f32 %v2887_v58, %v3918_v53 }
 0x244   : > { %v2198_v4 = vadd.f32 %v3918_v53, %v2197_v62  ;;  %v2888_v0 = vpop.f32.mrb[2].mxu1 }
 0x245   : > { %v2200_v5 = vpop.f32.mrb[3].mxu1  ;;  %v2209_v63 = vadd.f32 %v2888_v0, %v3918_v53  ;;  %v2238_v3 = vmax.f32 %v2206_v2, 0.0 }
 0x246   : > { %v2236_v7 = vmax.f32 %v2198_v4, 0.0  ;;  %v2201_v8 = vadd.f32 %v3918_v53, %v2200_v5 }
 0x247   : > { %v2239_v18 = vmax.f32 %v2209_v63, 0.0  ;;  %v2296_v19 = vsel %vm1947_vm12, %v2238_v3, 0.0 }
 0x248   : > { %v2292_v11 = vsel %vm1947_vm12, %v2236_v7, 0.0  ;;  %v2237_v48 = vmax.f32 %v2201_v8, 0.0  ;;  %2252 = vxpose.xlu0.b32.cont [9/16] (narrow) %v2236_v7, 8 }
 0x249   : > { %v2293_v16 = vadd.f32 %v2292_v11, %v2291_v15  ;;  %v2298_v20 = vsel %vm1947_vm12, %v2239_v18, 0.0 }
 0x24a   : > { %v2294_v57 = vsel %vm1947_vm12, %v2237_v48, 0.0 }
 0x24b   : > { %v2295_v17 = vadd.f32 %v2294_v57, %v2293_v16 }
 0x24c   : > { %2253 = vxpose.xlu0.b32.cont [10/16] (narrow) %v2237_v48, 8 }
 0x24d   : > { %v2297_v59 = vadd.f32 %v2296_v19, %v2295_v17 }
 0x24f   : > { %v2299_v22 = vadd.f32 %v2298_v20, %v2297_v59 }
 0x250   : > { %2254 = vxpose.xlu0.b32.cont [11/16] (narrow) %v2238_v3, 8 }
 0x254   : > { %2255 = vxpose.xlu0.b32.cont [12/16] (narrow) %v2239_v18, 8 }
 0x25f   : > { %v2891_v10 = vpop.f32.mrb[4].mxu1 }
 0x260   : > { %v2213_v23 = vpop.f32.mrb[5].mxu1  ;;  %v2222_v24 = vadd.f32 %v2891_v10, %v3918_v53 }
 0x261   : > { %v2214_v1 = vadd.f32 %v3918_v53, %v2213_v23  ;;  %v2892_v25 = vpop.f32.mrb[6].mxu1 }
 0x262   : > { %v2216_v26 = vpop.f32.mrb[7].mxu1  ;;  %v2225_v27 = vadd.f32 %v2892_v25, %v3918_v53  ;;  %v2242_v29 = vmax.f32 %v2222_v24, 0.0 }
 0x263   : > { %v2240_v9 = vmax.f32 %v2214_v1, 0.0  ;;  %v2217_v12 = vadd.f32 %v3918_v53, %v2216_v26 }
 0x264   : > { %v2243_v13 = vmax.f32 %v2225_v27, 0.0  ;;  %v2304_v39 = vsel %vm1947_vm12, %v2242_v29, 0.0 }
 0x265   : > { %v2300_v31 = vsel %vm1947_vm12, %v2240_v9, 0.0  ;;  %v2241_v35 = vmax.f32 %v2217_v12, 0.0  ;;  %2256 = vxpose.xlu0.b32.cont [13/16] (narrow) %v2240_v9, 8 }
 0x266   : > { %v2301_v14 = vadd.f32 %v2300_v31, %v2299_v22  ;;  %v2306_v41 = vsel %vm1947_vm12, %v2243_v13, 0.0 }
 0x267   : > { %v2302_v37 = vsel %vm1947_vm12, %v2241_v35, 0.0 }
 0x268   : > { %v2303_v38 = vadd.f32 %v2302_v37, %v2301_v14 }
 0x269   : > { %2257 = vxpose.xlu0.b32.cont [14/16] (narrow) %v2241_v35, 8 }
 0x26a   : > { %v2305_v61 = vadd.f32 %v2304_v39, %v2303_v38 }
 0x26c   : > { %v2307_v50 = vadd.f32 %v2306_v41, %v2305_v61 }
 0x26d   : > { %2258 = vxpose.xlu0.b32.cont [15/16] (narrow) %v2242_v29, 8 }
 0x26e   : > { %v2308_v21 = vrot.slane %v2307_v50, 4 }
 0x270   : > { %v2309_v53 = vadd.f32 %v2308_v21, %v2307_v50 }
 0x271   : > { %2259 = vxpose.xlu0.b32.end [16/16] (narrow) %v2243_v13, 8 }
 0x272   : > { %v2310_v43 = vrot.slane %v2309_v53, 2 }
 0x274   : > { %v2311_v40 = vadd.f32 %v2310_v43, %v2309_v53 }
 0x276   : > { %v2312_v33 = vrot.slane %v2311_v40, 1 }
 0x278   : > { %v2313_v30 = vadd.f32 %v2312_v33, %v2311_v40 }
 0x27a   : > { %v3984_v46 = vmul.f32 0.0078125, %v2313_v30 }
 0x27c   : > { %v2316_v47 = vsub.f32 %v3921_v28, %v3984_v46  ;;  %v2317_v49 = vsub.f32 %v3926_v32, %v3984_v46  ;;  %v2318_v52 = vsub.f32 %v3929_v34, %v3984_v46  ;;  %v2324_v51 = vsub.f32 %v2236_v7, %v3984_v46  ;;  %2389 = vst.msk [vmem:[%s3155_s14] sm:$0x1] (!%p2552_p7), %vm2388_vm5, %v3984_v46 }
 0x27d   : > { %v2325_v54 = vsub.f32 %v2237_v48, %v3984_v46  ;;  %v2326_v56 = vsub.f32 %v2238_v3, %v3984_v46  ;;  %v2327_v58 = vsub.f32 %v2239_v18, %v3984_v46  ;;  %v2328_v60 = vsub.f32 %v2240_v9, %v3984_v46 }
 0x27e   : > { %v2329_v62 = vsub.f32 %v2241_v35, %v3984_v46  ;;  %v2330_v28 = vsub.f32 %v2242_v29, %v3984_v46  ;;  %v2331_v2 = vsub.f32 %v2243_v13, %v3984_v46  ;;  %v2319_v32 = vsub.f32 %v3933_v36, %v3984_v46 }
 0x27f   : > { %v2332_v34 = vmul.f32 %v2316_v47, %v2316_v47  ;;  %v2333_v4 = vmul.f32 %v2317_v49, %v2317_v49  ;;  %v2320_v0 = vsub.f32 %v3937_v55, %v3984_v46  ;;  %v2334_v5 = vmul.f32 %v2318_v52, %v2318_v52 }
 0x280   : > { %v2321_v6 = vsub.f32 %v3942_v44, %v3984_v46  ;;  %v2335_v7 = vmul.f32 %v2319_v32, %v2319_v32  ;;  %v2322_v3 = vsub.f32 %v3947_v42, %v3984_v46  ;;  %v2323_v55 = vsub.f32 %v3953_v45, %v3984_v46 }
 0x281   : > { %v2348_v63 = vsel %vm1947_vm12, %v2332_v34, 0.0  ;;  %v2349_v8 = vsel %vm1947_vm12, %v2333_v4, 0.0  ;;  %v2336_v11 = vmul.f32 %v2320_v0, %v2320_v0  ;;  %v2351_v36 = vsel %vm1947_vm12, %v2334_v5, 0.0 }
 0x282   : > { %v2350_v15 = vadd.f32 %v2349_v8, %v2348_v63  ;;  %v2337_v16 = vmul.f32 %v2321_v6, %v2321_v6  ;;  %v2353_v18 = vsel %vm1947_vm12, %v2335_v7, 0.0  ;;  %v2338_v57 = vmul.f32 %v2322_v3, %v2322_v3 }
 0x283   : > { %v2355_v17 = vsel %vm1947_vm12, %v2336_v11, 0.0  ;;  %v2339_v59 = vmul.f32 %v2323_v55, %v2323_v55  ;;  %v2340_v42 = vmul.f32 %v2324_v51, %v2324_v51  ;;  %v2341_v24 = vmul.f32 %v2325_v54, %v2325_v54 }
 0x284   : > { %v2352_v48 = vadd.f32 %v2351_v36, %v2350_v15  ;;  %v2357_v20 = vsel %vm1947_vm12, %v2337_v16, 0.0  ;;  %v2359_v10 = vsel %vm1947_vm12, %v2338_v57, 0.0  ;;  %v2342_v25 = vmul.f32 %v2326_v56, %v2326_v56 }
 0x285   : > { %v2361_v1 = vsel %vm1947_vm12, %v2339_v59, 0.0  ;;  %v2363_v26 = vsel %vm1947_vm12, %v2340_v42, 0.0  ;;  %v2343_v27 = vmul.f32 %v2327_v58, %v2327_v58  ;;  %v2365_v12 = vsel %vm1947_vm12, %v2341_v24, 0.0 }
 0x286   : > { %v2354_v44 = vadd.f32 %v2353_v18, %v2352_v48  ;;  %v2344_v31 = vmul.f32 %v2328_v60, %v2328_v60  ;;  %v2367_v35 = vsel %vm1947_vm12, %v2342_v25, 0.0  ;;  %v2345_v13 = vmul.f32 %v2329_v62, %v2329_v62 }
 0x287   : > { %v2369_v37 = vsel %vm1947_vm12, %v2343_v27, 0.0  ;;  %v2346_v39 = vmul.f32 %v2330_v28, %v2330_v28  ;;  %v2347_v50 = vmul.f32 %v2331_v2, %v2331_v2 }
 0x288   : > { %v2356_v19 = vadd.f32 %v2355_v17, %v2354_v44  ;;  %v2371_v61 = vsel %vm1947_vm12, %v2344_v31, 0.0  ;;  %v2373_v21 = vsel %vm1947_vm12, %v2345_v13, 0.0 }
 0x289   : > { %v2375_v43 = vsel %vm1947_vm12, %v2346_v39, 0.0  ;;  %v2377_v33 = vsel %vm1947_vm12, %v2347_v50, 0.0 }
 0x28a   : > { %v2358_v22 = vadd.f32 %v2357_v20, %v2356_v19 }
 0x28c   : > { %v2360_v23 = vadd.f32 %v2359_v10, %v2358_v22 }
 0x28e   : > { %v2362_v45 = vadd.f32 %v2361_v1, %v2360_v23 }
 0x290   : > { %v2364_v9 = vadd.f32 %v2363_v26, %v2362_v45 }
 0x292   : > { %v2366_v29 = vadd.f32 %v2365_v12, %v2364_v9 }
 0x294   : > { %v2368_v14 = vadd.f32 %v2367_v35, %v2366_v29 }
 0x296   : > { %v2370_v38 = vadd.f32 %v2369_v37, %v2368_v14 }
 0x298   : > { %v2372_v41 = vadd.f32 %v2371_v61, %v2370_v38 }
 0x29a   : > { %v2374_v53 = vadd.f32 %v2373_v21, %v2372_v41 }
 0x29c   : > { %v2376_v40 = vadd.f32 %v2375_v43, %v2374_v53 }
 0x29e   : > { %v2378_v30 = vadd.f32 %v2377_v33, %v2376_v40 }
 0x2a0   : > { %v2379_v47 = vrot.slane %v2378_v30, 4 }
 0x2a2   : > { %v2380_v49 = vadd.f32 %v2379_v47, %v2378_v30 }
 0x2a4   : > { %v2381_v52 = vrot.slane %v2380_v49, 2 }
 0x2a6   : > { %v2382_v51 = vadd.f32 %v2381_v52, %v2380_v49 }
 0x2a8   : > { %v2383_v54 = vrot.slane %v2382_v51, 1 }
 0x2aa   : > { %v2384_v56 = vadd.f32 %v2383_v54, %v2382_v51 }
 0x2ac   : > { %2390 = vst.msk [vmem:[%s3155_s14 + $0x1] sm:$0x1] (!%p2552_p7), %vm2388_vm5, %v2384_v56 }
 0x2b0   : > { %2387 = sbr.rel (%p2552_p7) target bundleno = 695 (0x2b7), region = 48 }
 0x2b5   : > { %v2260_v58 = vpop.trf.xlu0 }
 0x2b6   : > { %2276 = vst [vmem:[%s3160_s17] sm:$0xf] %v2260_v58 }
 0x2b7 PF: > { %p2743_p8 = scmp.eq.s32.totalorder %s3051_s21, 0 }
 0x2b8   : > { %s2744_s30 = sshll.u32 (!%p2743_p8), %s3051_s21, 7  ;;  %v2398_v28 = vld [vmem:[%s3155_s14] sm:$0x1] (!%p2743_p8)  ;;  %v2409_v32 = vld [vmem:[%s3155_s14 + $0x1] sm:$0x1] (!%p2743_p8)  ;;  %vm2407_vm6 = vcmask (!%p2743_p8), 24576  }
 0x2b9   : > { %2394 = sbr.rel (%p2743_p8) target bundleno = 772 (0x304), region = 52  ;;  %s2396_s7 = scvt.s32.f32 (!%p2743_p8), %s2744_s30  ;;  %v2399_v2 = vsub.f32 (!%p2743_p8), %v3984_v46, %v2398_v28  ;;  %v2410_v0 = vadd.f32 (!%p2743_p8), %v2409_v32, %v2384_v56 }
 0x2bb   : > { %s2397_s8 = sadd.f32 (!%p2743_p8), 128.0, %s2396_s7  ;;  %s2412_s17 = smul.f32 (!%p2743_p8), 128.0, %s2396_s7  ;;  %v2411_v34 = vmul.f32 (!%p2743_p8), %v2399_v2, %v2399_v2 }
 0x2bd   : > { %v2400_v60 = vstv (!%p2743_p8), %s2397_s8 }
 0x2be   : > { %3027 = vrcp.f32 (!%p2743_p8), %v2400_v60 }
 0x2c8   : > { %v3028_v62 = vpop.eup %3027 }
 0x2c9   : > { %2901 = vpush %v3028_v62 }
 0x2fa   : > { %s2902_s9 = spop %2901 }
 0x2fb   : > { %s2403_s10 = smul.f32 128.0, %s2902_s9 }
 0x2fc   : > { %s2416_s11 = smul.f32 %s2902_s9, %s2412_s17 }
 0x2fd   : > { %v2404_v4 = vstv %s2403_s10 }
 0x2fe   : > { %v2405_v5 = vmul.f32 %v2404_v4, %v2399_v2  ;;  %v2417_v6 = vstv %s2416_s11 }
 0x2ff   : > { %v2418_v7 = vmul.f32 %v2417_v6, %v2411_v34 }
 0x300   : > { %v2406_v63 = vadd.f32 %v2405_v5, %v2398_v28 }
 0x301   : > { %v2419_v8 = vadd.f32 %v2418_v7, %v2410_v0 }
 0x302   : > { %2408 = vst.msk [vmem:[%s3155_s14] sm:$0x1] %vm2407_vm6, %v2406_v63 }
 0x303   : > { %2420 = vst.msk [vmem:[%s3155_s14 + $0x1] sm:$0x1] %vm2407_vm6, %v2419_v8 }
 0x304 PF: > { %s17_s25 = sadd.s32 1, %s3067_s25   ;;  %s4069_s21 = smov %s3059_s23 }
 0x305   : > { %p14_p9 = scmp.ge.s32.totalorder %s17_s25, 6   ;;  %s4070_s22 = smov %s3063_s24 }
 0x306   : > { %s4071_s23 = smov %s4074_s26  ;;  %s4072_s24 = smov %s4078_s27 }
 0x307   :  { %16 = sbr.rel (!%p14_p9) target bundleno = 3 (0x3), region = 99 }

// kernel: conv_up_block_forward.5
= control target key start
LH: loop header
LB: loop body
LE: loop exit
PB: predicated region body
PF: predicated region fallthrough
CT: control target
= control target key end

     0   :  { %s3479_s18 = smov 0   ;;  %s3481_s19 = smov 0   ;;  %s5051_s0 = inlined_call_operand.vmem [shape: bf16[2,16,16,4], index: 0, kind: input, shape index: {}]   ;;  %s5052_s1 = inlined_call_operand.vmem [shape: bf16[2,16,16,4], index: 1, kind: input, shape index: {}]   ;;  %s5053_s2 = inlined_call_operand.vmem [shape: bf16[72,4], index: 2, kind: input, shape index: {}]   ;;  %s5054_s3 = inlined_call_operand.vmem [shape: f32[1,4], index: 3, kind: input, shape index: {}]   ;;  %s5055_s4 = inlined_call_operand.vmem [shape: bf16[2,16,16,4], index: 4, kind: output, shape index: {0}]   ;;  %s5056_s5 = inlined_call_operand.vmem [shape: f32[2,2,4], index: 5, kind: output, shape index: {1}]  }
   0x1   :  { %s3483_s20 = smov 0   ;;  %s3485_s21 = smov 0  }
   0x2   :  { %s3487_s22 = smov 0  }
   0x3 LB: > { %s25_s23 = sadd.s32 1, %s3429_s20  ;;  %s28_s24 = sadd.s32 1, %s3433_s21  ;;  %s3437_s22 = sphi %s3487_s22, %s16_s22   ;;  %s3433_s21 = sphi %s3485_s21, %s5089_s21   ;;  %s3429_s20 = sphi %s3483_s20, %s5088_s20   ;;  %s3425_s19 = sphi %s3481_s19, %s5087_s19   ;;  %s3421_s18 = sphi %s3479_s18, %s5086_s18  }
   0x4   : > { %p26_p0 = scmp.ge.s32.totalorder %s25_s23, 2  ;;  %p3009_p1 = scmp.ge.s32.totalorder %s3437_s22, 1 }
   0x5   : > { %p214_p2 = scmp.lt.s32.totalorder %s3437_s22, 5 }
   0x6   : > { %s5091_s23 = smov (%p26_p0, %s25_s23), 0  ;;  %s5093_s24 = smov (!%p26_p0, %s28_s24), %s3433_s21 }
   0x7   : > { %p215_p3 = pnand %p3009_p1, %p214_p2  ;;  %p30_p4 = scmp.ge.s32.totalorder %s5093_s24, 2 }
   0x8   : > { %p256_p5 = scmp.lt.s32.totalorder (!%p215_p3), %s3425_s19, 1  ;;  %s3014_s25 = sshll.u32 (!%p215_p3), %s3421_s18, 3 }
   0x9   : > { %s5095_s24 = smov (%p30_p4, %s5093_s24), 0  ;;  %218 = sbr.rel (%p215_p3) target bundleno = 876 (0x36c), region = 36 }
   0xa   : > { %p269_p6 = scmp.lt.s32.totalorder (!%p215_p3), %s3014_s25, 15  ;;  %p3019_p7 = scmp.ne.s32.totalorder (!%p215_p3), %s3421_s18, 0 }
  0x10   : > { %s5097_s19 = smov (!%p256_p5, %s3425_s19), 1  ;;  %s5099_s25 = smov (!%p269_p6, %s3014_s25), 15 }
  0x11   : > { %s3198_s26 = sshll.u32 %s5097_s19, 7  ;;  %s3016_s27 = sshll.u32 %s5097_s19, 5  ;;  %vm296_vm0 = vsmask.f32 (!%p3019_p7), 256  ;;  %vm440_vm1 = vsmask.f32 (!%p3019_p7), 4368 }
  0x12   : > { %s3515_s30 = scalar_lea.vmem %s5051_s0, %s3198_s26  ;;  %s3520_s8 = scalar_lea.vmem %s5052_s1, %s3198_s26  ;;  %vm3542_vm2 = vmor (!%p3019_p7), %vm296_vm0, %vm440_vm1  ;;  %vm289_vm3 = vcmask (!%p3019_p7), 57344   ;;  %vm352_vm4 = vsmask.f32 (!%p3019_p7), 7938  ;;  %vm770_vm7 = vcmask (!%p3019_p7), 24576   ;;  %vm763_vm8 = vcmask (!%p3019_p7), 27648  }
  0x13   : > { %s3015_s9 = sshll.u32 %s5099_s25, 1  ;;  %s3018_s10 = sshll.u32 %s5097_s19, 1  ;;  %v881_v0 = vld [vmem:[%s3520_s8 + $0x4] sm:$0xf] (!%p3019_p7)  ;;  %v880_v1 = vld [vmem:[%s3520_s8] sm:$0xf] (!%p3019_p7)  ;;  %vm3755_vm5 = vmand (!%p3019_p7), %vm289_vm3, %vm352_vm4 }
  0x14   : > { %s273_s11 = sadd.s32 %s3016_s27, %s3015_s9  ;;  %s3525_s14 = scalar_lea.vmem %s5056_s5, %s3018_s10  ;;  %v921_v2 = vshrl.u32 (!%p3019_p7), %v881_v0, 16  ;;  %v924_v3 = vshll.u32 (!%p3019_p7), %v881_v0, 16  ;;  %v913_v4 = vshrl.u32 (!%p3019_p7), %v880_v1, 16  ;;  %v916_v5 = vshll.u32 (!%p3019_p7), %v880_v1, 16  ;;  %v882_v6 = vld [vmem:[%s3520_s8 + $0x8] sm:$0xf] (!%p3019_p7)  ;;  %vm3782_vm6 = vmand (!%p3019_p7), %vm289_vm3, %vm296_vm0 }
  0x15   : > { %s3017_s15 = sshll.u32 %s273_s11, 2  ;;  %285 = sbr.rel (%p3019_p7) target bundleno = 247 (0xf7), region = 40  ;;  %v930_v7 = vshrl.u32 (!%p3019_p7), %v882_v6, 16  ;;  %v933_v8 = vshll.u32 (!%p3019_p7), %v882_v6, 16  ;;  %v883_v11 = vld [vmem:[%s3520_s8 + $0xc] sm:$0xf] (!%p3019_p7)  ;;  %vm3805_vm9 = vmand (!%p3019_p7), %vm770_vm7, %vm296_vm0 }
  0x16   : > { %s3530_s28 = scalar_lea.vmem %s5055_s4, %s3017_s15  ;;  %v923_v9 = vrot.slane (!%p3019_p7), %v921_v2, 7  ;;  %v915_v10 = vrot.slane (!%p3019_p7), %v913_v4, 7  ;;  %v884_v12 = vld [vmem:[%s3520_s8 + $0x10] sm:$0xf] (!%p3019_p7)  ;;  %v938_v14 = vshrl.u32 (!%p3019_p7), %v883_v11, 16  ;;  %v941_v15 = vshll.u32 (!%p3019_p7), %v883_v11, 16  ;;  %vm3815_vm10 = vmand (!%p3019_p7), %vm763_vm8, %vm352_vm4 }
  0x17   : > { %v932_v13 = vrot.slane (!%p3019_p7), %v930_v7, 7  ;;  %v885_v16 = vld [vmem:[%s3520_s8 + $0x14] sm:$0xf] (!%p3019_p7)  ;;  %v947_v17 = vshrl.u32 (!%p3019_p7), %v884_v12, 16  ;;  %s3439_s19 = smov (!%p3019_p7), 4   ;;  %v950_v37 = vshll.u32 (!%p3019_p7), %v884_v12, 16 }
  0x18   : > { %v928_v18 = vrot.slane (!%p3019_p7), %v923_v9, 4  ;;  %v926_v19 = vor.u32 (!%p3019_p7), %v924_v3, %v923_v9  ;;  %v918_v20 = vor.u32 (!%p3019_p7), %v916_v5, %v915_v10  ;;  %v919_v21 = vrot.slane (!%p3019_p7), %v915_v10, 4  ;;  %v886_v27 = vld [vmem:[%s3520_s8 + $0x18] sm:$0xf] (!%p3019_p7)  ;;  %v887_v32 = vld [vmem:[%s3520_s8 + $0x1c] sm:$0xf] (!%p3019_p7) }
  0x19   : > { %v940_v23 = vrot.slane (!%p3019_p7), %v938_v14, 7  ;;  %v935_v24 = vor.u32 (!%p3019_p7), %v933_v8, %v932_v13  ;;  %v936_v25 = vrot.slane (!%p3019_p7), %v932_v13, 4  ;;  %v955_v26 = vshrl.u32 (!%p3019_p7), %v885_v16, 16  ;;  %v3553_v34 = vld [vmem:[%s3520_s8 + $0x20] sm:$0xf] (!%p3019_p7) }
  0x1a   : > { %1188 = vrot.lane.b32.xlu1 (!%p3019_p7), %v928_v18, %s3439_s19  ;;  %1184 = vrot.lane.b32.xlu0 (!%p3019_p7), %v918_v20, %s3439_s19  ;;  %v927_v28 = vsel (!%p3019_p7), %vm3542_vm2, %v919_v21, %v926_v19  ;;  %v949_v30 = vrot.slane (!%p3019_p7), %v947_v17, 7  ;;  %v958_v31 = vshll.u32 (!%p3019_p7), %v885_v16, 16  ;;  %v964_v35 = vshrl.u32 (!%p3019_p7), %v886_v27, 16  ;;  %v889_v42 = vld [vmem:[%s3520_s8 + $0x24] sm:$0xf] (!%p3019_p7) }
  0x1b   : > { %v943_v29 = vor.u32 (!%p3019_p7), %v941_v15, %v940_v23  ;;  %v957_v33 = vrot.slane (!%p3019_p7), %v955_v26, 7  ;;  %v945_v36 = vrot.slane (!%p3019_p7), %v940_v23, 4  ;;  %v972_v38 = vshrl.u32 (!%p3019_p7), %v887_v32, 16  ;;  %v891_v46 = vld [vmem:[%s3520_s8 + $0x2c] sm:$0xf] (!%p3019_p7) }
  0x1c   : > { %v953_v40 = vrot.slane %v949_v30, 4  ;;  %v981_v43 = vshrl.u32 %v3553_v34, 16  ;;  %v966_v44 = vrot.slane %v964_v35, 7  ;;  %v967_v45 = vshll.u32 %v886_v27, 16  ;;  %v890_v51 = vld [vmem:[%s3520_s8 + $0x28] sm:$0xf] }
  0x1d   : > { %v944_v39 = vsel %vm3542_vm2, %v936_v25, %v943_v29  ;;  %v960_v41 = vor.u32 %v958_v31, %v957_v33  ;;  %v952_v47 = vor.u32 %v950_v37, %v949_v30  ;;  %v974_v48 = vrot.slane %v972_v38, 7  ;;  %v3568_v58 = vld [vmem:[%s3520_s8 + $0x34] sm:$0xf]  ;;  %v892_v59 = vld [vmem:[%s3520_s8 + $0x30] sm:$0xf] }
  0x1e   : > { %1190 = vrot.lane.b32.xlu1 %v935_v24, %s3439_s19  ;;  %1186 = vrot.lane.b32.xlu0 %v927_v28, %s3439_s19  ;;  %v975_v49 = vshll.u32 %v887_v32, 16  ;;  %v989_v50 = vshrl.u32 %v889_v42, 16  ;;  %v983_v53 = vrot.slane %v981_v43, 7  ;;  %v1006_v54 = vshrl.u32 %v891_v46, 16  ;;  %v3576_v0 = vld [vmem:[%s3520_s8 + $0x3c] sm:$0xf] }
  0x1f   : > { %v961_v52 = vsel %vm3542_vm2, %v953_v40, %v960_v41  ;;  %v969_v55 = vor.u32 %v967_v45, %v966_v44  ;;  %v962_v56 = vrot.slane %v957_v33, 4  ;;  %v998_v57 = vshrl.u32 %v890_v51, 16  ;;  %v894_v3 = vld [vmem:[%s3520_s8 + $0x38] sm:$0xf]  ;;  %v3580_v4 = vld [vmem:[%s3520_s8 + $0x44] sm:$0xf] }
  0x20   : > { %v970_v60 = vrot.slane %v966_v44, 4  ;;  %v977_v61 = vor.u32 %v975_v49, %v974_v48  ;;  %v3573_v62 = vrot.slane %v989_v50, 7  ;;  %v992_v63 = vshll.u32 %v889_v42, 16  ;;  %v896_v9 = vld [vmem:[%s3520_s8 + $0x40] sm:$0xf] }
  0x21   : > { %v979_v1 = vrot.slane %v974_v48, 4  ;;  %v987_v2 = vrot.slane %v983_v53, 4  ;;  %v3582_v5 = vrot.slane %v1006_v54, 7  ;;  %v1009_v6 = vshll.u32 %v891_v46, 16  ;;  %v3589_v14 = vld [vmem:[%s3520_s8 + $0x4c] sm:$0xf] }
  0x22   : > { %1194 = vrot.lane.b32.xlu1 %v945_v36, %s3439_s19  ;;  %1192 = vrot.lane.b32.xlu0 %v944_v39, %s3439_s19  ;;  %v1023_v7 = vshrl.u32 %v3568_v58, 16  ;;  %v1015_v8 = vshrl.u32 %v892_v59, 16  ;;  %v984_v10 = vshll.u32 %v3553_v34, 16  ;;  %v1000_v11 = vrot.slane %v998_v57, 7  ;;  %v898_v19 = vld [vmem:[%s3520_s8 + $0x48] sm:$0xf] }
  0x23   : > { %v1001_v12 = vshll.u32 %v890_v51, 16  ;;  %v1040_v13 = vshrl.u32 %v3576_v0, 16  ;;  %v978_v15 = vsel %vm3542_vm2, %v970_v60, %v977_v61  ;;  %v994_v16 = vor.u32 %v992_v63, %v3573_v62  ;;  %v3600_v25 = vld [vmem:[%s3520_s8 + $0x54] sm:$0xf]  ;;  %v3609_v30 = vld [vmem:[%s3520_s8 + $0x50] sm:$0xf] }
  0x24   : > { %v1032_v17 = vshrl.u32 %v894_v3, 16  ;;  %v1057_v18 = vshrl.u32 %v3580_v4, 16  ;;  %v996_v20 = vrot.slane %v3573_v62, 4  ;;  %v1004_v21 = vrot.slane %v1000_v11, 4  ;;  %v3615_v35 = vld [vmem:[%s3520_s8 + $0x5c] sm:$0xf] }
  0x25   : > { %v1018_v23 = vshll.u32 %v892_v59, 16  ;;  %v1049_v24 = vshrl.u32 %v896_v9, 16  ;;  %v1011_v26 = vor.u32 %v1009_v6, %v3582_v5  ;;  %v3603_v27 = vrot.slane %v1023_v7, 7  ;;  %v3625_v40 = vld [vmem:[%s3520_s8 + $0x58] sm:$0xf] }
  0x26   : > { %1198 = vrot.lane.b32.xlu1 %v961_v52, %s3439_s19  ;;  %1196 = vrot.lane.b32.xlu0 %v952_v47, %s3439_s19  ;;  %v3605_v28 = vrot.slane %v1015_v8, 7  ;;  %v1074_v29 = vshrl.u32 %v3589_v14, 16  ;;  %v986_v31 = vor.u32 %v984_v10, %v983_v53  ;;  %v1013_v32 = vrot.slane %v3582_v5, 4  ;;  %v3632_v45 = vld [vmem:[%s3520_s8 + $0x64] sm:$0xf] }
  0x27   : > { %v3612_v33 = vrot.slane %v1040_v13, 7  ;;  %v1066_v34 = vshrl.u32 %v898_v19, 16  ;;  %v3619_v36 = vrot.slane %v1032_v17, 7  ;;  %v1035_v37 = vshll.u32 %v894_v3, 16  ;;  %v904_v46 = vld [vmem:[%s3520_s8 + $0x60] sm:$0xf] }
  0x28   : > { %v3621_v38 = vrot.slane %v1057_v18, 7  ;;  %v1091_v39 = vshrl.u32 %v3600_v25, 16  ;;  %v995_v41 = vsel %vm3542_vm2, %v987_v2, %v994_v16  ;;  %v1003_v42 = vor.u32 %v1001_v12, %v1000_v11  ;;  %v3644_v51 = vld [vmem:[%s3520_s8 + $0x6c] sm:$0xf]  ;;  %v906_v52 = vld [vmem:[%s3520_s8 + $0x68] sm:$0xf] }
  0x29   : > { %v3629_v43 = vrot.slane %v1049_v24, 7  ;;  %v1052_v44 = vshll.u32 %v896_v9, 16  ;;  %v1012_v47 = vsel %vm3542_vm2, %v1004_v21, %v1011_v26  ;;  %v1030_v48 = vrot.slane %v3603_v27, 4  ;;  %v3652_v57 = vld [vmem:[%s3520_s8 + $0x74] sm:$0xf] }
  0x2a   : > { %1202 = vrot.lane.b32.xlu1 %v969_v55, %s3439_s19  ;;  %1200 = vrot.lane.b32.xlu0 %v962_v56, %s3439_s19  ;;  %v3639_v49 = vor.u32 %v1018_v23, %v3605_v28  ;;  %v3641_v50 = vrot.slane %v1074_v29, 7  ;;  %v1047_v53 = vrot.slane %v3612_v33, 4  ;;  %v3648_v54 = vrot.slane %v1066_v34, 7  ;;  %v908_v63 = vld [vmem:[%s3520_s8 + $0x70] sm:$0xf] }
  0x2b   : > { %v1069_v55 = vshll.u32 %v898_v19, 16  ;;  %v1083_v56 = vshrl.u32 %v3609_v30, 16  ;;  %v3657_v59 = vor.u32 %v1035_v37, %v3619_v36  ;;  %v1064_v60 = vrot.slane %v3621_v38, 4  ;;  %v3671_v7 = vld [vmem:[%s3520_s8 + $0x7c] sm:$0xf] }
  0x2c   : > { %v3660_v61 = vrot.slane %v1091_v39, 7  ;;  %v1108_v62 = vshrl.u32 %v3615_v35, 16  ;;  %v1086_v2 = vshll.u32 %v3609_v30, 16  ;;  %v1100_v3 = vshrl.u32 %v3625_v40, 16  ;;  %v910_v12 = vld [vmem:[%s3520_s8 + $0x78] sm:$0xf] }
  0x2d   : > { %v1125_v6 = vshrl.u32 %v3632_v45, 16  ;;  %v1117_v9 = vshrl.u32 %v904_v46, 16  ;;  %v1142_v10 = vshrl.u32 %v3644_v51, 16  ;;  %v1134_v11 = vshrl.u32 %v906_v52, 16 }
  0x2e   : > { %1206 = vrot.lane.b32.xlu1 %v979_v1, %s3439_s19  ;;  %1204 = vrot.lane.b32.xlu0 %v978_v15, %s3439_s19  ;;  %v3665_v1 = vor.u32 %v1052_v44, %v3629_v43  ;;  %v3677_v13 = vor.u32 %v1069_v55, %v3648_v54  ;;  %v3679_v15 = vrot.slane %v1083_v56, 7  ;;  %v1159_v16 = vshrl.u32 %v3652_v57, 16 }
  0x2f   : > { %v1151_v17 = vshrl.u32 %v908_v63, 16  ;;  %v3685_v19 = vrot.slane %v1108_v62, 7  ;;  %v1103_v21 = vshll.u32 %v3625_v40, 16  ;;  %v1176_v23 = vshrl.u32 %v3671_v7, 16 }
  0x30   : > { %v3689_v24 = vrot.slane %v1100_v3, 7  ;;  %v3691_v26 = vrot.slane %v1125_v6, 7  ;;  %v1120_v29 = vshll.u32 %v904_v46, 16  ;;  %v1168_v30 = vshrl.u32 %v910_v12, 16  ;;  %v363_v46 = vld [vmem:[#allocation2 + $0x2c] sm:$0x1] }
  0x31   : > { %v3695_v34 = vrot.slane %v1142_v10, 7  ;;  %v3697_v37 = vrot.slane %v1134_v11, 7  ;;  %v3699_v39 = vrot.slane %v1159_v16, 7  ;;  %v1154_v40 = vshll.u32 %v908_v63, 16  ;;  %v357_v10 = vld [vmem:[#allocation2 + $0x14] sm:$0x1] }
  0x32   : > { %1210 = vrot.lane.b32.xlu1 %v995_v41, %s3439_s19  ;;  %1208 = vrot.lane.b32.xlu0 %v986_v31, %s3439_s19  ;;  %v3693_v31 = vrot.slane %v1117_v9, 7  ;;  %v3701_v41 = vrot.slane %v1151_v17, 7  ;;  %v3709_v44 = vor.u32 %v1086_v2, %v3679_v15  ;;  %v1026_v55 = vshll.u32 %v3568_v58, 16  ;;  %v409_v11 = vld [vmem:[%s3515_s30 + $0x4] sm:$0xf] }
  0x33   : > { %v3716_v56 = vor.u32 %v1103_v21, %v3689_v24  ;;  %v3719_v62 = vrot.slane %v1168_v30, 7  ;;  %v1171_v5 = vshll.u32 %v910_v12, 16  ;;  %v1038_v2 = vrot.slane %v3619_v36, 4  ;;  %v301_v21 = vld [vmem:[#allocation2 + $0xc] sm:$0x1] }
  0x34   : > { %v3731_v3 = vor.u32 %v1154_v40, %v3701_v41  ;;  %v1077_v9 = vshll.u32 %v3589_v14, 16  ;;  %v1021_v12 = vrot.slane %v3605_v28, 4  ;;  %v1028_v16 = vor.u32 %v1026_v55, %v3603_v27  ;;  %v410_v36 = vld [vmem:[%s3515_s30 + $0x8] sm:$0xf]  ;;  %v413_v17 = vld [vmem:[%s3515_s30 + $0x14] sm:$0xf] }
  0x35   : > { %v3746_v14 = vor.u32 %v1171_v5, %v3719_v62  ;;  %v451_v30 = vshrl.u32 %v409_v11, 16  ;;  %v358_v5 = vsel %vm3755_vm5, 0, %v357_v10  ;;  %v454_v58 = vshll.u32 %v409_v11, 16  ;;  %v307_v11 = vld [vmem:[#allocation2 + $0x24] sm:$0x1] }
  0x36   : > { %1214 = vrot.lane.b32.xlu1 %v1003_v42, %s3439_s19  ;;  %1212 = vrot.lane.b32.xlu0 %v996_v20, %s3439_s19  ;;  %v1137_v20 = vshll.u32 %v906_v52, 16  ;;  %v1043_v42 = vshll.u32 %v3576_v0, 16  ;;  %v3712_v52 = vrot.slane %v1176_v23, 7  ;;  %359 = vst [vmem:[#allocation2 + $0x14] sm:$0x1] %v358_v5  ;;  %v460_v5 = vshrl.u32 %v410_v36, 16 }
  0x37   : > { %v463_v23 = vshll.u32 %v410_v36, 16  ;;  %vm286_vm11 = vcmask 60416   ;;  %vm1335_vm12 = vcmask 57376   ;;  %vm1328_vm13 = vcmask 60448  }
  0x38   : > { %v3726_v63 = vor.u32 %v1137_v20, %v3697_v37  ;;  %v1045_v6 = vor.u32 %v1043_v42, %v3612_v33  ;;  %v304_v20 = vld [vmem:[#allocation2 + $0x18] sm:$0x1]  ;;  %v3764_v42 = vor.u32 %v1077_v9, %v3641_v50  ;;  %v453_v9 = vrot.slane %v451_v30, 7  ;;  %vm4329_vm14 = vmand %vm1335_vm12, %vm296_vm0 }
  0x39   : > { %vm4338_vm15 = vmand %vm1328_vm13, %vm352_vm4 }
  0x3a   : > { %1218 = vrot.lane.b32.xlu1 %v1013_v32, %s3439_s19  ;;  %1216 = vrot.lane.b32.xlu0 %v1012_v47, %s3439_s19  ;;  %v3722_v32 = vor.u32 %v1120_v29, %v3693_v31  ;;  %v3761_v40 = vsel %vm3542_vm2, %v1038_v2, %v1045_v6  ;;  %v360_v29 = vld [vmem:[#allocation2 + $0x20] sm:$0x1]  ;;  %v3777_v2 = vsel %vm3542_vm2, %v1021_v12, %v1028_v16  ;;  %v305_v12 = vsel %vm3782_vm6, 0, %v304_v20  ;;  %v3792_v16 = vld [vmem:[%s3515_s30 + $0x10] sm:$0xf] }
  0x3b   : > { %306 = vst [vmem:[#allocation2 + $0x18] sm:$0x1] %v305_v12  ;;  %v361_v47 = vsel %vm3755_vm5, 0, %v360_v29  ;;  %v462_v20 = vrot.slane %v460_v5, 7  ;;  %v477_v36 = vshrl.u32 %v3792_v16, 16 }
  0x3c   : > { %362 = vst [vmem:[#allocation2 + $0x20] sm:$0x1] %v361_v47  ;;  %v310_v6 = vld [vmem:[#allocation2 + $0x30] sm:$0x1] }
  0x3d   : > { %v465_v5 = vor.u32 %v463_v23, %v462_v20  ;;  %v466_v28 = vrot.slane %v462_v20, 4  ;;  %v479_v47 = vrot.slane %v477_v36, 7  ;;  %v772_v8 = vld [vmem:[#allocation2 + $0x14] sm:$0x1]  ;;  %v366_v23 = vld [vmem:[#allocation2 + $0x38] sm:$0x1] }
  0x3e   : > { %1224 = vrot.lane.b32.xlu1 %v1030_v48, %s3439_s19  ;;  %1220 = vrot.lane.b32.xlu0 %v3639_v49, %s3439_s19  ;;  %v408_v48 = vld [vmem:[%s3515_s30] sm:$0xf]  ;;  %v488_v49 = vshll.u32 %v413_v17, 16 }
  0x3f   : > { %v443_v33 = vshrl.u32 %v408_v48, 16  ;;  %v446_v55 = vshll.u32 %v408_v48, 16  ;;  %v458_v48 = vrot.slane %v453_v9, 4  ;;  %v483_v18 = vrot.slane %v479_v47, 4 }
  0x41   : > { %v445_v30 = vrot.slane %v443_v33, 7  ;;  %v773_v20 = vsel %vm3805_vm9, %v458_v48, %v772_v8 }
  0x42   : > { %1230 = vrot.lane.b32.xlu1 %v1047_v53, %s3439_s19  ;;  %1226 = vrot.lane.b32.xlu0 %v3657_v59, %s3439_s19  ;;  %v411_v53 = vld [vmem:[%s3515_s30 + $0xc] sm:$0xf]  ;;  %v302_v59 = vsel %vm3782_vm6, 0, %v301_v21  ;;  %774 = vst [vmem:[#allocation2 + $0x14] sm:$0x1] %v773_v20 }
  0x43   : > { %303 = vst [vmem:[#allocation2 + $0xc] sm:$0x1] %v302_v59  ;;  %v468_v0 = vshrl.u32 %v411_v53, 16  ;;  %v471_v21 = vshll.u32 %v411_v53, 16  ;;  %v449_v33 = vrot.slane %v445_v30, 4  ;;  %v448_v53 = vor.u32 %v446_v55, %v445_v30 }
  0x44   : > { %v456_v59 = vor.u32 %v454_v58, %v453_v9  ;;  %v415_v30 = vld [vmem:[%s3515_s30 + $0x1c] sm:$0xf] }
  0x45   : > { %v470_v12 = vrot.slane %v468_v0, 7 }
  0x46   : > { %1236 = vrot.lane.b32.xlu1 %v1064_v60, %s3439_s19  ;;  %1232 = vrot.lane.b32.xlu0 %v3665_v1, %s3439_s19  ;;  %v485_v60 = vshrl.u32 %v413_v17, 16  ;;  %v3810_v1 = vld [vmem:[%s3515_s30 + $0x18] sm:$0xf]  ;;  %v457_v0 = vsel %vm3542_vm2, %v449_v33, %v456_v59  ;;  %v5067_v17 = vrot.slane %v3641_v50, 4  ;;  %v3835_v33 = vld [vmem:[%s3515_s30 + $0x20] sm:$0xf] }
  0x47   : > { %v473_v58 = vor.u32 %v471_v21, %v470_v12  ;;  %769 = vst.msk [vmem:[#allocation2 + $0x10] sm:$0xf] %vm763_vm8, %v457_v0  ;;  %v475_v36 = vrot.slane %v470_v12, 4  ;;  %v308_v21 = vsel %vm3782_vm6, 0, %v307_v11  ;;  %v775_v50 = vld [vmem:[#allocation2 + $0x18] sm:$0xf] }
  0x48   : > { %v3821_v9 = vrot.slane %v485_v60, 7  ;;  %309 = vst [vmem:[#allocation2 + $0x24] sm:$0x1] %v308_v21  ;;  %v494_v48 = vshrl.u32 %v3810_v1, 16  ;;  %v776_v11 = vsel %vm3815_vm10, %v465_v5, %v775_v50  ;;  %v497_v0 = vshll.u32 %v3810_v1, 16 }
  0x49   : > { %v474_v60 = vsel %vm3542_vm2, %v466_v28, %v473_v58  ;;  %v311_v28 = vsel %vm3782_vm6, 0, %v310_v6  ;;  %v417_v58 = vld [vmem:[%s3515_s30 + $0x24] sm:$0xf]  ;;  %777 = vst [vmem:[#allocation2 + $0x18] sm:$0xf] %v776_v11  ;;  %v502_v5 = vshrl.u32 %v415_v30, 16 }
  0x4a   : > { %1242 = vrot.lane.b32.xlu1 %v5067_v17, %s3439_s19  ;;  %1238 = vrot.lane.b32.xlu0 %v3677_v13, %s3439_s19  ;;  %v765_v59 = vld [vmem:[#allocation2 + $0xc] sm:$0xf]  ;;  %v480_v13 = vshll.u32 %v3792_v16, 16  ;;  %v490_v8 = vor.u32 %v488_v49, %v3821_v9  ;;  %778 = vst.msk [vmem:[#allocation2 + $0x1c] sm:$0xf] %vm763_vm8, %v474_v60  ;;  %v496_v20 = vrot.slane %v494_v48, 7 }
  0x4b   : > { %v766_v12 = vsel %vm3815_vm10, %v448_v53, %v765_v59  ;;  %v313_v16 = vld [vmem:[#allocation2 + $0x3c] sm:$0x1]  ;;  %v779_v49 = vld [vmem:[#allocation2 + $0x20] sm:$0x1]  ;;  %312 = vst [vmem:[#allocation2 + $0x30] sm:$0x1] %v311_v28 }
  0x4c   : > { %767 = vst [vmem:[#allocation2 + $0xc] sm:$0xf] %v766_v12  ;;  %v491_v17 = vsel %vm3542_vm2, %v483_v18, %v490_v8  ;;  %v364_v53 = vsel %vm3755_vm5, 0, %v363_v46  ;;  %v5068_v1 = vrot.slane %v3660_v61, 4  ;;  %v780_v6 = vsel %vm3805_vm9, %v475_v36, %v779_v49  ;;  %v3872_v11 = vld [vmem:[%s3515_s30 + $0x28] sm:$0xf] }
  0x4d   : > { %785 = vst.msk [vmem:[#allocation2 + $0x28] sm:$0xf] %vm763_vm8, %v491_v17  ;;  %365 = vst [vmem:[#allocation2 + $0x2c] sm:$0x1] %v364_v53  ;;  %v367_v18 = vsel %vm3755_vm5, 0, %v366_v23  ;;  %v505_v21 = vshll.u32 %v415_v30, 16  ;;  %v482_v50 = vor.u32 %v480_v13, %v479_v47  ;;  %v499_v30 = vor.u32 %v497_v0, %v496_v20 }
  0x4e   : > { %1248 = vrot.lane.b32.xlu1 %v5068_v1, %s3439_s19  ;;  %1244 = vrot.lane.b32.xlu0 %v3709_v44, %s3439_s19  ;;  %v511_v46 = vshrl.u32 %v3835_v33, 16  ;;  %v1145_v59 = vshll.u32 %v3644_v51, 16  ;;  %781 = vst [vmem:[#allocation2 + $0x20] sm:$0x1] %v780_v6  ;;  %v3867_v60 = vrot.slane %v502_v5, 7  ;;  %v500_v44 = vrot.slane %v496_v20, 4 }
  0x4f   : > { %368 = vst [vmem:[#allocation2 + $0x38] sm:$0x1] %v367_v18  ;;  %v519_v36 = vshrl.u32 %v417_v58, 16  ;;  %v522_v48 = vshll.u32 %v417_v58, 16  ;;  %v314_v12 = vsel %vm3782_vm6, 0, %v313_v16  ;;  %v1123_v23 = vrot.slane %v3693_v31, 4 }
  0x50   : > { %v513_v8 = vrot.slane %v511_v46, 7  ;;  %v507_v28 = vor.u32 %v505_v21, %v3867_v60  ;;  %v514_v47 = vshll.u32 %v3835_v33, 16  ;;  %315 = vst [vmem:[#allocation2 + $0x3c] sm:$0x1] %v314_v12  ;;  %v316_v13 = vld [vmem:[#allocation2 + $0x48] sm:$0x1] }
  0x51   : > { %v369_v49 = vld [vmem:[#allocation2 + $0x44] sm:$0x1]  ;;  %v5069_v58 = vrot.slane %v3685_v19, 4  ;;  %v492_v16 = vrot.slane %v3821_v9, 4  ;;  %v509_v0 = vrot.slane %v3867_v60, 4  ;;  %v3884_v53 = vrot.slane %v519_v36, 7 }
  0x52   : > { %1250 = vrot.lane.b32.xlu0 %v3716_v56, %s3439_s19  ;;  %v782_v17 = vld [vmem:[#allocation2 + $0x24] sm:$0xf]  ;;  %v517_v20 = vrot.slane %v513_v8, 4  ;;  %v372_v33 = vld [vmem:[#allocation2 + $0x50] sm:$0x1]  ;;  %v508_v6 = vsel %vm3542_vm2, %v500_v44, %v507_v28  ;;  %v528_v56 = vshrl.u32 %v3872_v11, 16 }
  0x53   : > { %1254 = vrot.lane.b32.xlu1 %v5069_v58, %s3439_s19  ;;  %v3887_v5 = vld [vmem:[%s3515_s30 + $0x2c] sm:$0xf]  ;;  %v783_v1 = vsel %vm3815_vm10, %v482_v50, %v782_v17  ;;  %v375_v9 = vld [vmem:[#allocation2 + $0x5c] sm:$0x1]  ;;  %v3895_v18 = vld [vmem:[%s3515_s30 + $0x34] sm:$0xf]  ;;  %v524_v28 = vor.u32 %v522_v48, %v3884_v53 }
  0x54   : > { %v5070_v21 = vshll.u32 %v3580_v4, 16  ;;  %v5071_v60 = vshll.u32 %v3615_v35, 16  ;;  %v5072_v50 = vshll.u32 %v3600_v25, 16  ;;  %784 = vst [vmem:[#allocation2 + $0x24] sm:$0xf] %v783_v1  ;;  %v531_v17 = vshll.u32 %v3872_v11, 16 }
  0x55   : > { %v789_v12 = vld [vmem:[#allocation2 + $0x30] sm:$0xf]  ;;  %792 = vst.msk [vmem:[#allocation2 + $0x34] sm:$0xf] %vm763_vm8, %v508_v6  ;;  %v319_v58 = vld [vmem:[#allocation2 + $0x54] sm:$0x1] }
  0x56   : > { %v3900_v46 = vor.u32 %v5070_v21, %v3621_v38  ;;  %v3905_v36 = vor.u32 %v5071_v60, %v3685_v19  ;;  %v3910_v44 = vor.u32 %v5072_v50, %v3660_v61  ;;  %v3915_v4 = vld [vmem:[%s3515_s30 + $0x30] sm:$0xf]  ;;  %v790_v38 = vsel %vm3815_vm10, %v499_v30, %v789_v12  ;;  %v786_v35 = vld [vmem:[#allocation2 + $0x2c] sm:$0x1]  ;;  %v378_v21 = vld [vmem:[#allocation2 + $0x68] sm:$0x1]  ;;  %1256 = vrot.lane.b32.xlu0 %v3722_v32, %s3439_s19 }
  0x57   : > { %v516_v19 = vor.u32 %v514_v47, %v513_v8  ;;  %v5073_v25 = vrot.slane %v3691_v26, 4  ;;  %791 = vst [vmem:[#allocation2 + $0x30] sm:$0xf] %v790_v38  ;;  %v787_v61 = vsel %vm3805_vm9, %v492_v16, %v786_v35  ;;  %v793_v48 = vld [vmem:[#allocation2 + $0x38] sm:$0x1]  ;;  %v525_v30 = vsel %vm3542_vm2, %v517_v20, %v524_v28 }
  0x58   : > { %v3440_v8 = vmov 0   ;;  %v317_v32 = vsel %vm3782_vm6, 0, %v316_v13  ;;  %v370_v11 = vsel %vm3755_vm5, 0, %v369_v49  ;;  %v3940_v47 = vld [vmem:[%s3515_s30 + $0x3c] sm:$0xf]  ;;  %v794_v16 = vsel %vm3805_vm9, %v509_v0, %v793_v48 }
  0x59   : > { %1260 = vrot.lane.b32.xlu1 %v5073_v25, %s3439_s19  ;;  %287 = vst.msk [vmem:[#allocation2] sm:$0xf] %vm286_vm11, %v3440_v8  ;;  %288 = vst.msk [vmem:[#allocation2 + $0x4] sm:$0xf] %vm286_vm11, %v3440_v8  ;;  %v530_v20 = vrot.slane %v528_v56, 7  ;;  %v536_v1 = vshrl.u32 %v3887_v5, 16 }
  0x5a   : > { %290 = vst.msk [vmem:[#allocation2 + $0x8] sm:$0x1] %vm289_vm3, %v3440_v8  ;;  %294 = vst.msk [vmem:[#allocation2 + $0xd4] sm:$0x1] %vm289_vm3, %v3440_v8  ;;  %v373_v13 = vsel %vm3755_vm5, 0, %v372_v33  ;;  %v539_v60 = vshll.u32 %v3887_v5, 16  ;;  %1262 = vrot.lane.b32.xlu0 %v3726_v63, %s3439_s19 }
  0x5b   : > { %292 = vst.msk [vmem:[#allocation2 + $0xcc] sm:$0xf] %vm286_vm11, %v3440_v8  ;;  %293 = vst.msk [vmem:[#allocation2 + $0xd0] sm:$0xf] %vm286_vm11, %v3440_v8  ;;  %v322_v6 = vld [vmem:[#allocation2 + $0x60] sm:$0x1] }
  0x5c   : > { %788 = vst [vmem:[#allocation2 + $0x2c] sm:$0x1] %v787_v61  ;;  %799 = vst.msk [vmem:[#allocation2 + $0x40] sm:$0xf] %vm763_vm8, %v525_v30  ;;  %v796_v49 = vld [vmem:[#allocation2 + $0x3c] sm:$0xf] }
  0x5d   : > { %318 = vst [vmem:[#allocation2 + $0x48] sm:$0x1] %v317_v32  ;;  %371 = vst [vmem:[#allocation2 + $0x44] sm:$0x1] %v370_v11  ;;  %v553_v50 = vshrl.u32 %v3895_v18, 16  ;;  %v376_v0 = vsel %vm3755_vm5, 0, %v375_v9  ;;  %v797_v12 = vsel %vm3815_vm10, %v516_v19, %v796_v49 }
  0x5e   : > { %795 = vst [vmem:[#allocation2 + $0x38] sm:$0x1] %v794_v16  ;;  %374 = vst [vmem:[#allocation2 + $0x50] sm:$0x1] %v373_v13  ;;  %v545_v56 = vshrl.u32 %v3915_v4, 16  ;;  %v3955_v28 = vrot.slane %v536_v1, 7  ;;  %v533_v1 = vor.u32 %v531_v17, %v530_v20  ;;  %1268 = vrot.lane.b32.xlu0 %v3731_v3, %s3439_s19 }
  0x5f   : > { %v534_v38 = vrot.slane %v530_v20, 4  ;;  %377 = vst [vmem:[#allocation2 + $0x5c] sm:$0x1] %v376_v0  ;;  %v320_v33 = vsel %vm3782_vm6, 0, %v319_v58  ;;  %v3960_v35 = vld [vmem:[%s3515_s30 + $0x38] sm:$0xf] }
  0x60   : > { %v5074_v5 = vrot.slane %v3695_v34, 4  ;;  %v1128_v9 = vshll.u32 %v3632_v45, 16  ;;  %798 = vst [vmem:[#allocation2 + $0x3c] sm:$0xf] %v797_v12  ;;  %v3968_v19 = vrot.slane %v553_v50, 7  ;;  %v570_v25 = vshrl.u32 %v3940_v47, 16 }
  0x61   : > { %321 = vst [vmem:[#allocation2 + $0x54] sm:$0x1] %v320_v33  ;;  %v379_v58 = vsel %vm3755_vm5, 0, %v378_v21  ;;  %v1174_v61 = vrot.slane %v3719_v62, 4  ;;  %v541_v48 = vor.u32 %v539_v60, %v3955_v28  ;;  %v3975_v30 = vrot.slane %v545_v56, 7 }
  0x62   : > { %1266 = vrot.lane.b32.xlu1 %v5074_v5, %s3439_s19  ;;  %v548_v63 = vshll.u32 %v3915_v4, 16  ;;  %380 = vst [vmem:[#allocation2 + $0x68] sm:$0x1] %v379_v58  ;;  %v1179_v8 = vshll.u32 %v3671_v7, 16  ;;  %v3979_v32 = vrot.slane %v570_v25, 7  ;;  %v562_v11 = vshrl.u32 %v3960_v35, 16  ;;  %1274 = vrot.lane.b32.xlu0 %v3746_v14, %s3439_s19 }
  0x63   : > { %v323_v16 = vsel %vm3782_vm6, 0, %v322_v6  ;;  %v526_v21 = vrot.slane %v3884_v53, 4  ;;  %v298_v13 = vld [vmem:[#allocation2] sm:$0x1]  ;;  %v349_v49 = vld [vmem:[#allocation2 + $0xcc] sm:$0x1]  ;;  %v542_v4 = vsel %vm3542_vm2, %v534_v38, %v541_v48 }
  0x64   : > { %v543_v60 = vrot.slane %v3955_v28, 4  ;;  %324 = vst [vmem:[#allocation2 + $0x60] sm:$0x1] %v323_v16  ;;  %v3989_v50 = vld [vmem:[%s3515_s30 + $0x44] sm:$0xf]  ;;  %v5075_v0 = vrot.slane %v3699_v39, 4  ;;  %v550_v25 = vor.u32 %v548_v63, %v3975_v30 }
  0x65   : > { %v299_v53 = vsel %vm3782_vm6, 0, %v298_v13  ;;  %v350_v17 = vsel %vm3782_vm6, 0, %v349_v49  ;;  %v354_v20 = vld [vmem:[#allocation2 + $0x8] sm:$0x1]  ;;  %806 = vst.msk [vmem:[#allocation2 + $0x4c] sm:$0xf] %vm763_vm8, %v542_v4 }
  0x66   : > { %1272 = vrot.lane.b32.xlu1 %v5075_v0, %s3439_s19  ;;  %v560_v6 = vrot.slane %v3968_v19, 4  ;;  %v565_v56 = vshll.u32 %v3960_v35, 16  ;;  %v381_v12 = vld [vmem:[#allocation2 + $0x74] sm:$0x1]  ;;  %v4004_v28 = vld [vmem:[%s3515_s30 + $0x40] sm:$0xf]  ;;  %1222 = vrot.lane.b32.xlu0 %v3777_v2, %s3439_s19  ;;  %v1181_v2 = vor.u32 %v1179_v8, %v3712_v52 }
  0x67   : > { %v5076_v3 = vrot.slane %v3648_v54, 4  ;;  %300 = vst [vmem:[#allocation2] sm:$0x1] %v299_v53  ;;  %351 = vst [vmem:[#allocation2 + $0xcc] sm:$0x1] %v350_v17  ;;  %v355_v33 = vsel %vm3755_vm5, 0, %v354_v20 }
  0x68   : > { %v405_v5 = vld [vmem:[#allocation2 + $0xd4] sm:$0x1]  ;;  %v577_v35 = vrot.slane %v3979_v32, 4  ;;  %v325_v58 = vld [vmem:[#allocation2 + $0x6c] sm:$0x1]  ;;  %v5077_v54 = vrot.slane %v3629_v43, 4 }
  0x69   : > { %v4011_v38 = vsel %vm3542_vm2, %v5076_v3, %v3764_v42  ;;  %v4018_v48 = vld [vmem:[%s3515_s30 + $0x4c] sm:$0xf]  ;;  %v5078_v16 = vrot.slane %v3689_v24, 4  ;;  %356 = vst [vmem:[#allocation2 + $0x8] sm:$0x1] %v355_v33  ;;  %v406_v63 = vsel %vm3755_vm5, 0, %v405_v5 }
  0x6a   : > { %v4025_v42 = vsel %vm3542_vm2, %v5077_v54, %v3900_v46  ;;  %v803_v49 = vld [vmem:[#allocation2 + $0x48] sm:$0xf]  ;;  %v800_v4 = vld [vmem:[#allocation2 + $0x44] sm:$0x1]  ;;  %v4036_v0 = vrot.slane %v562_v11, 7  ;;  %v5079_v46 = vrot.slane %v3679_v15, 4 }
  0x6b   : > { %v4032_v13 = vsel %vm3542_vm2, %v5078_v16, %v3905_v36  ;;  %v384_v43 = vld [vmem:[#allocation2 + $0x80] sm:$0x1]  ;;  %v4048_v36 = vor.u32 %v1145_v59, %v3695_v34  ;;  %407 = vst [vmem:[#allocation2 + $0xd4] sm:$0x1] %v406_v63  ;;  %v804_v53 = vsel %vm3815_vm10, %v533_v1, %v803_v49  ;;  %v801_v11 = vsel %vm3805_vm9, %v526_v21, %v800_v4  ;;  %v807_v17 = vld [vmem:[#allocation2 + $0x50] sm:$0x1] }
  0x6c   : > { %v4043_v24 = vsel %vm3542_vm2, %v5079_v46, %v3910_v44  ;;  %v814_v20 = vld [vmem:[#allocation2 + $0x5c] sm:$0x1]  ;;  %v328_v3 = vld [vmem:[#allocation2 + $0x78] sm:$0x1]  ;;  %v4055_v15 = vld [vmem:[%s3515_s30 + $0x48] sm:$0xf]  ;;  %v808_v51 = vsel %vm3805_vm9, %v543_v60, %v807_v17  ;;  %v567_v1 = vor.u32 %v565_v56, %v4036_v0  ;;  %1234 = vrot.lane.b32.xlu0 %v4025_v42, %s3439_s19 }
  0x6d   : > { %v5080_v44 = vrot.slane %v3712_v52, 4  ;;  %805 = vst [vmem:[#allocation2 + $0x48] sm:$0xf] %v804_v53  ;;  %802 = vst [vmem:[#allocation2 + $0x44] sm:$0x1] %v801_v11  ;;  %v815_v34 = vsel %vm3805_vm9, %v560_v6, %v814_v20  ;;  %v587_v33 = vshrl.u32 %v3989_v50, 16 }
  0x6e   : > { %v810_v59 = vld [vmem:[#allocation2 + $0x54] sm:$0xf]  ;;  %v821_v21 = vld [vmem:[#allocation2 + $0x68] sm:$0x1]  ;;  %v387_v5 = vld [vmem:[#allocation2 + $0x8c] sm:$0x1] }
  0x6f   : > { %1278 = vrot.lane.b32.xlu1 %v5080_v44, %s3439_s19  ;;  %809 = vst [vmem:[#allocation2 + $0x50] sm:$0x1] %v808_v51  ;;  %816 = vst [vmem:[#allocation2 + $0x5c] sm:$0x1] %v815_v34  ;;  %v811_v14 = vsel %vm3815_vm10, %v550_v25, %v810_v59  ;;  %v822_v54 = vsel %vm3805_vm9, %v577_v35, %v821_v21  ;;  %v382_v60 = vsel %vm3755_vm5, 0, %v381_v12  ;;  %v579_v6 = vshrl.u32 %v4004_v28, 16 }
  0x70   : > { %v4076_v16 = vld [vmem:[%s3515_s30 + $0x54] sm:$0xf]  ;;  %v331_v56 = vld [vmem:[#allocation2 + $0x84] sm:$0x1]  ;;  %812 = vst [vmem:[#allocation2 + $0x54] sm:$0xf] %v811_v14  ;;  %1246 = vrot.lane.b32.xlu0 %v4043_v24, %s3439_s19 }
  0x71   : > { %823 = vst [vmem:[#allocation2 + $0x68] sm:$0x1] %v822_v54  ;;  %v817_v63 = vld [vmem:[#allocation2 + $0x60] sm:$0xf]  ;;  %v4078_v49 = vrot.slane %v587_v33, 7  ;;  %v582_v25 = vshll.u32 %v4004_v28, 16  ;;  %v1130_v28 = vor.u32 %v1128_v9, %v3691_v26 }
  0x72   : > { %383 = vst [vmem:[#allocation2 + $0x74] sm:$0x1] %v382_v60  ;;  %v326_v35 = vsel %vm3782_vm6, 0, %v325_v58  ;;  %v604_v12 = vshrl.u32 %v4018_v48, 16  ;;  %v818_v4 = vsel %vm3815_vm10, %v567_v1, %v817_v63  ;;  %v4086_v46 = vrot.slane %v579_v6, 7 }
  0x73   : > { %327 = vst [vmem:[#allocation2 + $0x6c] sm:$0x1] %v326_v35  ;;  %v385_v53 = vsel %vm3755_vm5, 0, %v384_v43  ;;  %v596_v11 = vshrl.u32 %v4055_v15, 16  ;;  %v428_v17 = vld [vmem:[%s3515_s30 + $0x50] sm:$0xf]  ;;  %1228 = vrot.lane.b32.xlu1 %v3761_v40, %s3439_s19 }
  0x74   : > { %v1162_v58 = vshll.u32 %v3652_v57, 16  ;;  %819 = vst [vmem:[#allocation2 + $0x60] sm:$0xf] %v818_v4  ;;  %v4100_v20 = vrot.slane %v604_v12, 7  ;;  %386 = vst [vmem:[#allocation2 + $0x80] sm:$0x1] %v385_v53  ;;  %v584_v34 = vor.u32 %v582_v25, %v4086_v46 }
  0x75   : > { %v329_v43 = vsel %vm3782_vm6, 0, %v328_v3  ;;  %v4105_v44 = vld [vmem:[%s3515_s30 + $0x5c] sm:$0xf]  ;;  %v4107_v51 = vrot.slane %v596_v11, 7  ;;  %v599_v40 = vshll.u32 %v4055_v15, 16  ;;  %v621_v45 = vshrl.u32 %v4076_v16, 16 }
  0x76   : > { %330 = vst [vmem:[#allocation2 + $0x78] sm:$0x1] %v329_v43  ;;  %v388_v57 = vsel %vm3755_vm5, 0, %v387_v5  ;;  %v390_v26 = vld [vmem:[#allocation2 + $0x98] sm:$0x1]  ;;  %v594_v9 = vrot.slane %v4078_v49, 4  ;;  %v1164_v42 = vor.u32 %v1162_v58, %v3699_v39 }
  0x77   : > { %389 = vst [vmem:[#allocation2 + $0x8c] sm:$0x1] %v388_v57  ;;  %v613_v3 = vshrl.u32 %v428_v17, 16  ;;  %v332_v15 = vsel %vm3782_vm6, 0, %v331_v56  ;;  %v4120_v59 = vrot.slane %v621_v45, 7  ;;  %v616_v21 = vshll.u32 %v428_v17, 16  ;;  %1240 = vrot.lane.b32.xlu1 %v4011_v38, %s3439_s19 }
  0x78   : > { %333 = vst [vmem:[#allocation2 + $0x84] sm:$0x1] %v332_v15  ;;  %v638_v1 = vshrl.u32 %v4105_v44, 16  ;;  %v334_v33 = vld [vmem:[#allocation2 + $0x90] sm:$0x1]  ;;  %v1157_v7 = vrot.slane %v3701_v41, 4  ;;  %v1131_v41 = vsel %vm3542_vm2, %v1123_v23, %v1130_v28  ;;  %v601_v63 = vor.u32 %v599_v40, %v4107_v51 }
  0x79   : > { %v4124_v5 = vld [vmem:[%s3515_s30 + $0x58] sm:$0xf]  ;;  %v611_v52 = vrot.slane %v4100_v20, 4  ;;  %v4132_v8 = vrot.slane %v613_v3, 7  ;;  %v391_v14 = vsel %vm3755_vm5, 0, %v390_v26  ;;  %v5081_v6 = vrot.slane %v3697_v37, 4  ;;  %1258 = vrot.lane.b32.xlu0 %v1131_v41, %s3439_s19 }
  0x7a   : > { %v393_v54 = vld [vmem:[#allocation2 + $0xa4] sm:$0x1]  ;;  %v828_v56 = vld [vmem:[#allocation2 + $0x74] sm:$0x1]  ;;  %392 = vst [vmem:[#allocation2 + $0x98] sm:$0x1] %v391_v14  ;;  %v4157_v37 = vsel %vm3542_vm2, %v1174_v61, %v1181_v2  ;;  %v1165_v14 = vsel %vm3542_vm2, %v1157_v7, %v1164_v42 }
  0x7b   : > { %v4137_v60 = vld [vmem:[%s3515_s30 + $0x64] sm:$0xf]  ;;  %v1148_v38 = vsel %vm3542_vm2, %v5081_v6, %v4048_v36  ;;  %v337_v25 = vld [vmem:[#allocation2 + $0x9c] sm:$0x1]  ;;  %v4151_v35 = vld [vmem:[%s3515_s30 + $0x60] sm:$0xf]  ;;  %v829_v31 = vsel %vm3805_vm9, %v594_v9, %v828_v56  ;;  %v618_v62 = vor.u32 %v616_v21, %v4132_v8  ;;  %1252 = vrot.lane.b32.xlu1 %v4032_v13, %s3439_s19 }
  0x7c   : > { %v824_v23 = vld [vmem:[#allocation2 + $0x6c] sm:$0xf]  ;;  %v628_v39 = vrot.slane %v4120_v59, 4  ;;  %v4162_v36 = vrot.slane %v638_v1, 7  ;;  %830 = vst [vmem:[#allocation2 + $0x74] sm:$0x1] %v829_v31 }
  0x7d   : > { %v4165_v12 = vld [vmem:[%s3515_s30 + $0x6c] sm:$0xf]  ;;  %v825_v4 = vsel %vm3815_vm10, %v584_v34, %v824_v23  ;;  %v835_v53 = vld [vmem:[#allocation2 + $0x80] sm:$0x1]  ;;  %v630_v61 = vshrl.u32 %v4124_v5, 16  ;;  %v633_v11 = vshll.u32 %v4124_v5, 16  ;;  %1270 = vrot.lane.b32.xlu0 %v1165_v14, %s3439_s19 }
  0x7e   : > { %v396_v17 = vld [vmem:[#allocation2 + $0xb0] sm:$0x1]  ;;  %v4173_v28 = vld [vmem:[%s3515_s30 + $0x68] sm:$0xf]  ;;  %826 = vst [vmem:[#allocation2 + $0x6c] sm:$0xf] %v825_v4  ;;  %v836_v58 = vsel %vm3805_vm9, %v611_v52, %v835_v53 }
  0x7f   : > { %v831_v43 = vld [vmem:[#allocation2 + $0x78] sm:$0xf]  ;;  %v645_v40 = vrot.slane %v4162_v36, 4  ;;  %v335_v45 = vsel %vm3782_vm6, 0, %v334_v33  ;;  %v655_v57 = vshrl.u32 %v4137_v60, 16  ;;  %v4187_v24 = vrot.slane %v630_v61, 7  ;;  %1264 = vrot.lane.b32.xlu1 %v1148_v38, %s3439_s19 }
  0x80   : > { %v340_v26 = vld [vmem:[#allocation2 + $0xa8] sm:$0x1]  ;;  %837 = vst [vmem:[#allocation2 + $0x80] sm:$0x1] %v836_v58  ;;  %v832_v13 = vsel %vm3815_vm10, %v601_v63, %v831_v43  ;;  %v842_v2 = vld [vmem:[#allocation2 + $0x8c] sm:$0x1] }
  0x81   : > { %336 = vst [vmem:[#allocation2 + $0x90] sm:$0x1] %v335_v45  ;;  %v394_v9 = vsel %vm3755_vm5, 0, %v393_v54  ;;  %v647_v3 = vshrl.u32 %v4151_v35, 16  ;;  %v399_v15 = vld [vmem:[#allocation2 + $0xbc] sm:$0x1]  ;;  %v843_v21 = vsel %vm3805_vm9, %v628_v39, %v842_v2  ;;  %v635_v7 = vor.u32 %v633_v11, %v4187_v24 }
  0x82   : > { %v4193_v34 = vld [vmem:[%s3515_s30 + $0x74] sm:$0xf]  ;;  %833 = vst [vmem:[#allocation2 + $0x78] sm:$0xf] %v832_v13  ;;  %v838_v1 = vld [vmem:[#allocation2 + $0x84] sm:$0xf] }
  0x83   : > { %v4197_v33 = vrot.slane %v655_v57, 7  ;;  %395 = vst [vmem:[#allocation2 + $0xa4] sm:$0x1] %v394_v9  ;;  %v650_v5 = vshll.u32 %v4151_v35, 16  ;;  %v338_v52 = vsel %vm3782_vm6, 0, %v337_v25  ;;  %v839_v54 = vsel %vm3815_vm10, %v618_v62, %v838_v1  ;;  %1276 = vrot.lane.b32.xlu1 %v4157_v37, %s3439_s19 }
  0x84   : > { %844 = vst [vmem:[#allocation2 + $0x8c] sm:$0x1] %v843_v21  ;;  %v4206_v6 = vrot.slane %v647_v3, 7  ;;  %339 = vst [vmem:[#allocation2 + $0x9c] sm:$0x1] %v338_v52  ;;  %v672_v56 = vshrl.u32 %v4165_v12, 16 }
  0x85   : > { %v343_v63 = vld [vmem:[#allocation2 + $0xb4] sm:$0x1]  ;;  %v436_v31 = vld [vmem:[%s3515_s30 + $0x70] sm:$0xf]  ;;  %840 = vst [vmem:[#allocation2 + $0x84] sm:$0xf] %v839_v54 }
  0x86   : > { %v849_v25 = vld [vmem:[#allocation2 + $0x98] sm:$0x1]  ;;  %v662_v42 = vrot.slane %v4197_v33, 4  ;;  %v397_v35 = vsel %vm3755_vm5, 0, %v396_v17  ;;  %v664_v23 = vshrl.u32 %v4173_v28, 16  ;;  %v4219_v4 = vrot.slane %v672_v56, 7 }
  0x87   : > { %v850_v39 = vsel %vm3805_vm9, %v645_v40, %v849_v25  ;;  %398 = vst [vmem:[#allocation2 + $0xb0] sm:$0x1] %v397_v35  ;;  %v667_v38 = vshll.u32 %v4173_v28, 16  ;;  %v341_v41 = vsel %vm3782_vm6, 0, %v340_v26  ;;  %v4225_v53 = vld [vmem:[%s3515_s30 + $0x7c] sm:$0xf]  ;;  %v652_v43 = vor.u32 %v650_v5, %v4206_v6 }
  0x88   : > { %851 = vst [vmem:[#allocation2 + $0x98] sm:$0x1] %v850_v39  ;;  %v4227_v62 = vrot.slane %v664_v23, 7  ;;  %342 = vst [vmem:[#allocation2 + $0xa8] sm:$0x1] %v341_v41  ;;  %v689_v61 = vshrl.u32 %v4193_v34, 16 }
  0x89   : > { %v400_v11 = vsel %vm3755_vm5, 0, %v399_v15  ;;  %v681_v17 = vshrl.u32 %v436_v31, 16  ;;  %v402_v58 = vld [vmem:[#allocation2 + $0xc8] sm:$0x1]  ;;  %v344_v28 = vsel %vm3782_vm6, 0, %v343_v63  ;;  %v706_v40 = vshrl.u32 %v4225_v53, 16 }
  0x8a   : > { %401 = vst [vmem:[#allocation2 + $0xbc] sm:$0x1] %v400_v11  ;;  %v845_v45 = vld [vmem:[#allocation2 + $0x90] sm:$0xf]  ;;  %v4239_v57 = vrot.slane %v689_v61, 7  ;;  %v684_v13 = vshll.u32 %v436_v31, 16  ;;  %v669_v5 = vor.u32 %v667_v38, %v4227_v62 }
  0x8b   : > { %v4241_v26 = vrot.slane %v681_v17, 7  ;;  %345 = vst [vmem:[#allocation2 + $0xb4] sm:$0x1] %v344_v28  ;;  %v846_v2 = vsel %vm3815_vm10, %v635_v7, %v845_v45  ;;  %v856_v9 = vld [vmem:[#allocation2 + $0xa4] sm:$0x1]  ;;  %v679_v3 = vrot.slane %v4219_v4, 4 }
  0x8c   : > { %v4246_v15 = vrot.slane %v706_v40, 7  ;;  %v403_v37 = vsel %vm3755_vm5, 0, %v402_v58  ;;  %847 = vst [vmem:[#allocation2 + $0x90] sm:$0xf] %v846_v2  ;;  %v857_v21 = vsel %vm3805_vm9, %v662_v42, %v856_v9  ;;  %v852_v1 = vld [vmem:[#allocation2 + $0x9c] sm:$0xf] }
  0x8d   : > { %v696_v52 = vrot.slane %v4239_v57, 4  ;;  %404 = vst [vmem:[#allocation2 + $0xc8] sm:$0x1] %v403_v37  ;;  %858 = vst [vmem:[#allocation2 + $0xa4] sm:$0x1] %v857_v21  ;;  %v853_v14 = vsel %vm3815_vm10, %v652_v43, %v852_v1  ;;  %v568_v27 = vrot.slane %v4036_v0, 4  ;;  %v686_v25 = vor.u32 %v684_v13, %v4241_v26 }
  0x8e   : > { %v713_v54 = vrot.slane %v4246_v15, 4  ;;  %v346_v56 = vld [vmem:[#allocation2 + $0xc0] sm:$0x1]  ;;  %v573_v63 = vshll.u32 %v3940_v47, 16  ;;  %854 = vst [vmem:[#allocation2 + $0x9c] sm:$0xf] %v853_v14 }
  0x8f   : > { %v863_v31 = vld [vmem:[#allocation2 + $0xb0] sm:$0x1]  ;;  %v438_v7 = vld [vmem:[%s3515_s30 + $0x78] sm:$0xf]  ;;  %v347_v42 = vsel %vm3782_vm6, 0, %v346_v56  ;;  %v551_v35 = vrot.slane %v3975_v30, 4 }
  0x90   : > { %v864_v23 = vsel %vm3805_vm9, %v679_v3, %v863_v31  ;;  %v859_v39 = vld [vmem:[#allocation2 + $0xa8] sm:$0xf]  ;;  %v698_v38 = vshrl.u32 %v438_v7, 16  ;;  %v701_v41 = vshll.u32 %v438_v7, 16  ;;  %348 = vst [vmem:[#allocation2 + $0xc0] sm:$0x1] %v347_v42  ;;  %v575_v0 = vor.u32 %v573_v63, %v3979_v32  ;;  %v1185_v63 = vpop.permute.xlu0 %1184 }
  0x91   : > { %865 = vst [vmem:[#allocation2 + $0xb0] sm:$0x1] %v864_v23  ;;  %v860_v47 = vsel %vm3815_vm10, %v669_v5, %v859_v39  ;;  %v870_v61 = vld [vmem:[#allocation2 + $0xbc] sm:$0x1]  ;;  %v556_v11 = vshll.u32 %v3895_v18, 16  ;;  %v602_v10 = vrot.slane %v4107_v51, 4 }
  0x92   : > { %v607_v30 = vshll.u32 %v4018_v48, 16  ;;  %861 = vst [vmem:[#allocation2 + $0xa8] sm:$0xf] %v860_v47  ;;  %v871_v17 = vsel %vm3805_vm9, %v696_v52, %v870_v61  ;;  %v866_v58 = vld [vmem:[#allocation2 + $0xb4] sm:$0xf]  ;;  %v700_v43 = vrot.slane %v698_v38, 7  ;;  %v576_v32 = vsel %vm3542_vm2, %v568_v27, %v575_v0  ;;  %v1189_v27 = vpop.permute.xlu1 %1188 }
  0x93   : > { %v585_v28 = vrot.slane %v4086_v46, 4  ;;  %872 = vst [vmem:[#allocation2 + $0xbc] sm:$0x1] %v871_v17  ;;  %v867_v40 = vsel %vm3815_vm10, %v686_v25, %v866_v58  ;;  %820 = vst.msk [vmem:[#allocation2 + $0x64] sm:$0xf] %vm763_vm8, %v576_v32  ;;  %v558_v18 = vor.u32 %v556_v11, %v3968_v19  ;;  %v590_v51 = vshll.u32 %v3989_v50, 16 }
  0x94   : > { %v609_v48 = vor.u32 %v607_v30, %v4100_v20  ;;  %868 = vst [vmem:[#allocation2 + $0xb4] sm:$0xf] %v867_v40  ;;  %v877_v45 = vld [vmem:[#allocation2 + $0xc8] sm:$0x1]  ;;  %v703_v13 = vor.u32 %v701_v41, %v700_v43  ;;  %v636_v2 = vrot.slane %v4187_v24, 4  ;;  %v641_v9 = vshll.u32 %v4105_v44, 16  ;;  %v1187_v42 = vpop.permute.xlu0 %1186 }
  0x95   : > { %v878_v46 = vsel %vm3805_vm9, %v713_v54, %v877_v45  ;;  %v559_v3 = vsel %vm3542_vm2, %v551_v35, %v558_v18  ;;  %v592_v20 = vor.u32 %v590_v51, %v4078_v49  ;;  %v619_v44 = vrot.slane %v4132_v8, 4  ;;  %v1337_v54 = vld [vmem:[#allocation2 + $0x14] sm:$0x1]  ;;  %v1340_v22 = vld [vmem:[#allocation2 + $0x18] sm:$0xf] }
  0x96   : > { %v610_v19 = vsel %vm3542_vm2, %v602_v10, %v609_v48  ;;  %879 = vst [vmem:[#allocation2 + $0xc8] sm:$0x1] %v878_v46  ;;  %813 = vst.msk [vmem:[#allocation2 + $0x58] sm:$0xf] %vm763_vm8, %v559_v3  ;;  %v643_v50 = vor.u32 %v641_v9, %v4162_v36  ;;  %v624_v29 = vshll.u32 %v4076_v16, 16  ;;  %v670_v24 = vrot.slane %v4227_v62, 4  ;;  %v1191_v7 = vpop.permute.xlu1 %1190 }
  0x97   : > { %834 = vst.msk [vmem:[#allocation2 + $0x7c] sm:$0xf] %vm763_vm8, %v610_v19  ;;  %v873_v37 = vld [vmem:[#allocation2 + $0xc0] sm:$0xf]  ;;  %v593_v21 = vsel %vm3542_vm2, %v585_v28, %v592_v20  ;;  %v675_v1 = vshll.u32 %v4165_v12, 16  ;;  %v653_v49 = vrot.slane %v4206_v6, 4  ;;  %v1338_v31 = vsel %vm4329_vm14, %v1189_v27, %v1337_v54 }
  0x98   : > { %v658_v5 = vshll.u32 %v4137_v60, 16  ;;  %v874_v52 = vsel %vm3815_vm10, %v703_v13, %v873_v37  ;;  %827 = vst.msk [vmem:[#allocation2 + $0x70] sm:$0xf] %vm763_vm8, %v593_v21  ;;  %v644_v16 = vsel %vm3542_vm2, %v636_v2, %v643_v50  ;;  %v626_v8 = vor.u32 %v624_v29, %v4120_v59  ;;  %1339 = vst [vmem:[#allocation2 + $0x14] sm:$0x1] %v1338_v31  ;;  %v1193_v38 = vpop.permute.xlu0 %1192 }
  0x99   : > { %875 = vst [vmem:[#allocation2 + $0xc0] sm:$0xf] %v874_v52  ;;  %848 = vst.msk [vmem:[#allocation2 + $0x94] sm:$0xf] %vm763_vm8, %v644_v16  ;;  %v677_v36 = vor.u32 %v675_v1, %v4219_v4  ;;  %v704_v6 = vrot.slane %v700_v43, 4  ;;  %v709_v60 = vshll.u32 %v4225_v53, 16  ;;  %v1341_v35 = vsel %vm4338_vm15, %v1191_v7, %v1340_v22 }
  0x9a   : > { %v660_v12 = vor.u32 %v658_v5, %v4197_v33  ;;  %v627_v55 = vsel %vm3542_vm2, %v619_v44, %v626_v8  ;;  %v687_v62 = vrot.slane %v4241_v26, 4  ;;  %v692_v14 = vshll.u32 %v4193_v34, 16  ;;  %1334 = vst.msk [vmem:[#allocation2 + $0x10] sm:$0xf] %vm1328_vm13, %v1187_v42  ;;  %1342 = vst [vmem:[#allocation2 + $0x18] sm:$0xf] %v1341_v35  ;;  %v1195_v39 = vpop.permute.xlu1 %1194 }
  0x9b   : > { %841 = vst.msk [vmem:[#allocation2 + $0x88] sm:$0xf] %vm763_vm8, %v627_v55  ;;  %v678_v59 = vsel %vm3542_vm2, %v670_v24, %v677_v36  ;;  %v711_v33 = vor.u32 %v709_v60, %v4246_v15  ;;  %v1344_v23 = vld [vmem:[#allocation2 + $0x20] sm:$0x1]  ;;  %v1347_v0 = vld [vmem:[#allocation2 + $0x24] sm:$0xf] }
  0x9c   : > { %v661_v4 = vsel %vm3542_vm2, %v653_v49, %v660_v12  ;;  %862 = vst.msk [vmem:[#allocation2 + $0xac] sm:$0xf] %vm763_vm8, %v678_v59  ;;  %v694_v53 = vor.u32 %v692_v14, %v4239_v57  ;;  %v1330_v57 = vld [vmem:[#allocation2 + $0xc] sm:$0xf]  ;;  %v1345_v41 = vsel %vm4329_vm14, %v1195_v39, %v1344_v23  ;;  %v1197_v61 = vpop.permute.xlu0 %1196  ;;  %v1354_v10 = vld [vmem:[#allocation2 + $0x30] sm:$0xf] }
  0x9d   : > { %855 = vst.msk [vmem:[#allocation2 + $0xa0] sm:$0xf] %vm763_vm8, %v661_v4  ;;  %v712_v34 = vsel %vm3542_vm2, %v704_v6, %v711_v33  ;;  %v1331_v25 = vsel %vm4338_vm15, %v1185_v63, %v1330_v57  ;;  %1346 = vst [vmem:[#allocation2 + $0x20] sm:$0x1] %v1345_v41  ;;  %v1348_v11 = vsel %vm4338_vm15, %v1197_v61, %v1347_v0  ;;  %v1351_v30 = vld [vmem:[#allocation2 + $0x2c] sm:$0x1] }
  0x9e   : > { %876 = vst.msk [vmem:[#allocation2 + $0xc4] sm:$0xf] %vm763_vm8, %v712_v34  ;;  %v695_v15 = vsel %vm3542_vm2, %v687_v62, %v694_v53  ;;  %1332 = vst [vmem:[#allocation2 + $0xc] sm:$0xf] %v1331_v25  ;;  %v1199_v47 = vpop.permute.xlu1 %1198  ;;  %v1358_v28 = vld [vmem:[#allocation2 + $0x38] sm:$0x1] }
  0x9f   : > { %869 = vst.msk [vmem:[#allocation2 + $0xb8] sm:$0xf] %vm763_vm8, %v695_v15  ;;  %1349 = vst [vmem:[#allocation2 + $0x24] sm:$0xf] %v1348_v11  ;;  %v1361_v51 = vld [vmem:[#allocation2 + $0x3c] sm:$0xf] }
  0xa0   : > { %1343 = vst.msk [vmem:[#allocation2 + $0x1c] sm:$0xf] %vm1328_vm13, %v1193_v38  ;;  %1350 = vst.msk [vmem:[#allocation2 + $0x28] sm:$0xf] %vm1328_vm13, %v1199_v47  ;;  %v1201_v58 = vpop.permute.xlu0 %1200  ;;  %v1368_v9 = vld [vmem:[#allocation2 + $0x48] sm:$0xf] }
  0xa1   : > { %v1352_v32 = vsel %vm4329_vm14, %v1201_v58, %v1351_v30  ;;  %v1365_v46 = vld [vmem:[#allocation2 + $0x44] sm:$0x1]  ;;  %v1372_v44 = vld [vmem:[#allocation2 + $0x50] sm:$0x1]  ;;  %v1379_v21 = vld [vmem:[#allocation2 + $0x5c] sm:$0x1] }
  0xa2   : > { %v1203_v17 = vpop.permute.xlu1 %1202  ;;  %1353 = vst [vmem:[#allocation2 + $0x2c] sm:$0x1] %v1352_v32  ;;  %v1375_v1 = vld [vmem:[#allocation2 + $0x54] sm:$0xf]  ;;  %v1386_v8 = vld [vmem:[#allocation2 + $0x68] sm:$0x1] }
  0xa3   : > { %v1355_v43 = vsel %vm4338_vm15, %v1203_v17, %v1354_v10  ;;  %v1382_v36 = vld [vmem:[#allocation2 + $0x60] sm:$0xf]  ;;  %v1393_v62 = vld [vmem:[#allocation2 + $0x74] sm:$0x1]  ;;  %v1389_v14 = vld [vmem:[#allocation2 + $0x6c] sm:$0xf] }
  0xa4   : > { %1356 = vst [vmem:[#allocation2 + $0x30] sm:$0xf] %v1355_v43  ;;  %v1205_v18 = vpop.permute.xlu0 %1204  ;;  %v1400_v34 = vld [vmem:[#allocation2 + $0x80] sm:$0x1]  ;;  %v1396_v15 = vld [vmem:[#allocation2 + $0x78] sm:$0xf] }
  0xa5   : > { %1357 = vst.msk [vmem:[#allocation2 + $0x34] sm:$0xf] %vm1328_vm13, %v1205_v18  ;;  %v1407_v31 = vld [vmem:[#allocation2 + $0x8c] sm:$0x1]  ;;  %v1403_v25 = vld [vmem:[#allocation2 + $0x84] sm:$0xf] }
  0xa6   : > { %v1207_v40 = vpop.permute.xlu1 %1206  ;;  %v1414_v23 = vld [vmem:[#allocation2 + $0x98] sm:$0x1]  ;;  %v1410_v39 = vld [vmem:[#allocation2 + $0x90] sm:$0xf]  ;;  %v1421_v61 = vld [vmem:[#allocation2 + $0xa4] sm:$0x1] }
  0xa7   : > { %v1359_v48 = vsel %vm4329_vm14, %v1207_v40, %v1358_v28  ;;  %v1417_v11 = vld [vmem:[#allocation2 + $0x9c] sm:$0xf]  ;;  %v1428_v43 = vld [vmem:[#allocation2 + $0xb0] sm:$0x1]  ;;  %v1424_v32 = vld [vmem:[#allocation2 + $0xa8] sm:$0xf] }
  0xa8   : > { %1360 = vst [vmem:[#allocation2 + $0x38] sm:$0x1] %v1359_v48  ;;  %v1209_v13 = vpop.permute.xlu0 %1208 }
  0xa9   : > { %v1362_v2 = vsel %vm4338_vm15, %v1209_v13, %v1361_v51  ;;  %v1435_v51 = vld [vmem:[#allocation2 + $0xbc] sm:$0x1] }
  0xaa   : > { %v1211_v45 = vpop.permute.xlu1 %1210  ;;  %1363 = vst [vmem:[#allocation2 + $0x3c] sm:$0xf] %v1362_v2 }
  0xab   : > { %1364 = vst.msk [vmem:[#allocation2 + $0x40] sm:$0xf] %vm1328_vm13, %v1211_v45  ;;  %v1431_v45 = vld [vmem:[#allocation2 + $0xb4] sm:$0xf] }
  0xac   : > { %v1213_v19 = vpop.permute.xlu0 %1212 }
  0xad   : > { %v1366_v50 = vsel %vm4329_vm14, %v1213_v19, %v1365_v46  ;;  %v1438_v19 = vld [vmem:[#allocation2 + $0xc0] sm:$0xf] }
  0xae   : > { %v1215_v3 = vpop.permute.xlu1 %1214  ;;  %1367 = vst [vmem:[#allocation2 + $0x44] sm:$0x1] %v1366_v50 }
  0xaf   : > { %v1369_v20 = vsel %vm4338_vm15, %v1215_v3, %v1368_v9  ;;  %v1442_v3 = vld [vmem:[#allocation2 + $0xc8] sm:$0x1] }
  0xb0   : > { %1370 = vst [vmem:[#allocation2 + $0x48] sm:$0xf] %v1369_v20  ;;  %v1217_v24 = vpop.permute.xlu0 %1216 }
  0xb1   : > { %1371 = vst.msk [vmem:[#allocation2 + $0x4c] sm:$0xf] %vm1328_vm13, %v1217_v24 }
  0xb2   : > { %v1219_v29 = vpop.permute.xlu1 %1218 }
  0xb3   : > { %v1373_v37 = vsel %vm4329_vm14, %v1219_v29, %v1372_v44 }
  0xb4   : > { %1374 = vst [vmem:[#allocation2 + $0x50] sm:$0x1] %v1373_v37  ;;  %v1221_v5 = vpop.permute.xlu0 %1220 }
  0xb5   : > { %v1376_v16 = vsel %vm4338_vm15, %v1221_v5, %v1375_v1 }
  0xb6   : > { %v1225_v49 = vpop.permute.xlu1 %1224  ;;  %1377 = vst [vmem:[#allocation2 + $0x54] sm:$0xf] %v1376_v16 }
  0xb7   : > { %v1380_v52 = vsel %vm4329_vm14, %v1225_v49, %v1379_v21 }
  0xb8   : > { %1381 = vst [vmem:[#allocation2 + $0x5c] sm:$0x1] %v1380_v52  ;;  %v1227_v6 = vpop.permute.xlu0 %1226 }
  0xb9   : > { %v1383_v55 = vsel %vm4338_vm15, %v1227_v6, %v1382_v36 }
  0xba   : > { %v1231_v12 = vpop.permute.xlu1 %1230  ;;  %1384 = vst [vmem:[#allocation2 + $0x60] sm:$0xf] %v1383_v55 }
  0xbb   : > { %v1387_v60 = vsel %vm4329_vm14, %v1231_v12, %v1386_v8 }
  0xbc   : > { %1388 = vst [vmem:[#allocation2 + $0x68] sm:$0x1] %v1387_v60  ;;  %v1233_v4 = vpop.permute.xlu0 %1232 }
  0xbd   : > { %v1390_v53 = vsel %vm4338_vm15, %v1233_v4, %v1389_v14 }
  0xbe   : > { %v1237_v59 = vpop.permute.xlu1 %1236  ;;  %1391 = vst [vmem:[#allocation2 + $0x6c] sm:$0xf] %v1390_v53 }
  0xbf   : > { %v1394_v33 = vsel %vm4329_vm14, %v1237_v59, %v1393_v62 }
  0xc0   : > { %1395 = vst [vmem:[#allocation2 + $0x74] sm:$0x1] %v1394_v33  ;;  %v1239_v57 = vpop.permute.xlu0 %1238 }
  0xc1   : > { %v1397_v63 = vsel %vm4338_vm15, %v1239_v57, %v1396_v15 }
  0xc2   : > { %v1243_v54 = vpop.permute.xlu1 %1242  ;;  %1398 = vst [vmem:[#allocation2 + $0x78] sm:$0xf] %v1397_v63 }
  0xc3   : > { %v1401_v27 = vsel %vm4329_vm14, %v1243_v54, %v1400_v34 }
  0xc4   : > { %1402 = vst [vmem:[#allocation2 + $0x80] sm:$0x1] %v1401_v27  ;;  %v1245_v7 = vpop.permute.xlu0 %1244 }
  0xc5   : > { %v1404_v35 = vsel %vm4338_vm15, %v1245_v7, %v1403_v25 }
  0xc6   : > { %v1249_v22 = vpop.permute.xlu1 %1248  ;;  %1405 = vst [vmem:[#allocation2 + $0x84] sm:$0xf] %v1404_v35 }
  0xc7   : > { %v1408_v42 = vsel %vm4329_vm14, %v1249_v22, %v1407_v31 }
  0xc8   : > { %1409 = vst [vmem:[#allocation2 + $0x8c] sm:$0x1] %v1408_v42  ;;  %v1251_v41 = vpop.permute.xlu0 %1250 }
  0xc9   : > { %v1411_v47 = vsel %vm4338_vm15, %v1251_v41, %v1410_v39 }
  0xca   : > { %v1255_v38 = vpop.permute.xlu1 %1254  ;;  %1412 = vst [vmem:[#allocation2 + $0x90] sm:$0xf] %v1411_v47 }
  0xcb   : > { %v1415_v0 = vsel %vm4329_vm14, %v1255_v38, %v1414_v23 }
  0xcc   : > { %1416 = vst [vmem:[#allocation2 + $0x98] sm:$0x1] %v1415_v0  ;;  %v1257_v30 = vpop.permute.xlu0 %1256 }
  0xcd   : > { %v1418_v58 = vsel %vm4338_vm15, %v1257_v30, %v1417_v11 }
  0xce   : > { %v1261_v10 = vpop.permute.xlu1 %1260  ;;  %1419 = vst [vmem:[#allocation2 + $0x9c] sm:$0xf] %v1418_v58 }
  0xcf   : > { %v1422_v17 = vsel %vm4329_vm14, %v1261_v10, %v1421_v61 }
  0xd0   : > { %1423 = vst [vmem:[#allocation2 + $0xa4] sm:$0x1] %v1422_v17  ;;  %v1263_v40 = vpop.permute.xlu0 %1262 }
  0xd1   : > { %v1425_v48 = vsel %vm4338_vm15, %v1263_v40, %v1424_v32 }
  0xd2   : > { %1426 = vst [vmem:[#allocation2 + $0xa8] sm:$0xf] %v1425_v48 }
  0xd4   : > { %v1267_v28 = vpop.permute.xlu1 %1266  ;;  %v1269_v2 = vpop.permute.xlu0 %1268 }
  0xd5   : > { %v1429_v18 = vsel %vm4329_vm14, %v1267_v28, %v1428_v43  ;;  %v1432_v46 = vsel %vm4338_vm15, %v1269_v2, %v1431_v45 }
  0xd6   : > { %1430 = vst [vmem:[#allocation2 + $0xb0] sm:$0x1] %v1429_v18  ;;  %1433 = vst [vmem:[#allocation2 + $0xb4] sm:$0xf] %v1432_v46 }
  0xd8   : > { %v1273_v13 = vpop.permute.xlu1 %1272  ;;  %v1275_v50 = vpop.permute.xlu0 %1274 }
  0xd9   : > { %v1436_v9 = vsel %vm4329_vm14, %v1273_v13, %v1435_v51  ;;  %v1439_v29 = vsel %vm4338_vm15, %v1275_v50, %v1438_v19 }
  0xda   : > { %1437 = vst [vmem:[#allocation2 + $0xbc] sm:$0x1] %v1436_v9  ;;  %1440 = vst [vmem:[#allocation2 + $0xc0] sm:$0xf] %v1439_v29 }
  0xdc   : > { %v1223_v37 = vpop.permute.xlu0 %1222 }
  0xdd   : > { %1378 = vst.msk [vmem:[#allocation2 + $0x58] sm:$0xf] %vm1328_vm13, %v1223_v37 }
  0xe0   : > { %v1235_v1 = vpop.permute.xlu0 %1234 }
  0xe1   : > { %v1279_v20 = vpop.permute.xlu1 %1278  ;;  %1392 = vst.msk [vmem:[#allocation2 + $0x70] sm:$0xf] %vm1328_vm13, %v1235_v1 }
  0xe2   : > { %v1443_v44 = vsel %vm4329_vm14, %v1279_v20, %v1442_v3 }
  0xe3   : > { %1444 = vst [vmem:[#allocation2 + $0xc8] sm:$0x1] %v1443_v44 }
  0xe4   : > { %v1247_v26 = vpop.permute.xlu0 %1246 }
  0xe5   : > { %v1229_v24 = vpop.permute.xlu1 %1228  ;;  %1406 = vst.msk [vmem:[#allocation2 + $0x88] sm:$0xf] %vm1328_vm13, %v1247_v26 }
  0xe6   : > { %1385 = vst.msk [vmem:[#allocation2 + $0x64] sm:$0xf] %vm1328_vm13, %v1229_v24 }
  0xe9   : > { %v1241_v21 = vpop.permute.xlu1 %1240 }
  0xea   : > { %1399 = vst.msk [vmem:[#allocation2 + $0x7c] sm:$0xf] %vm1328_vm13, %v1241_v21 }
  0xeb   : > { %v1259_v5 = vpop.permute.xlu0 %1258 }
  0xec   : > { %1420 = vst.msk [vmem:[#allocation2 + $0xa0] sm:$0xf] %vm1328_vm13, %v1259_v5 }
  0xed   : > { %v1253_v49 = vpop.permute.xlu1 %1252 }
  0xee   : > { %1413 = vst.msk [vmem:[#allocation2 + $0x94] sm:$0xf] %vm1328_vm13, %v1253_v49 }
  0xef   : > { %v1271_v16 = vpop.permute.xlu0 %1270 }
  0xf0   : > { %1434 = vst.msk [vmem:[#allocation2 + $0xb8] sm:$0xf] %vm1328_vm13, %v1271_v16 }
  0xf1   : > { %v1265_v56 = vpop.permute.xlu1 %1264 }
  0xf2   : > { %1427 = vst.msk [vmem:[#allocation2 + $0xac] sm:$0xf] %vm1328_vm13, %v1265_v56 }
  0xf5   : > { %v1277_v52 = vpop.permute.xlu1 %1276 }
  0xf6   : > { %1441 = vst.msk [vmem:[#allocation2 + $0xc4] sm:$0xf] %vm1328_vm13, %v1277_v52 }
  0xf7 PF: > { %s3200_s25 = smul.u32 96, %s3421_s18  ;;  %vm1754_vm0 = vcmask 1046528   ;;  %vm1617_vm1 = vsmask.f32 7424  ;;  %s3441_s27 = smov 24   ;;  %v3392_v26 = vld [vmem:[%s5053_s2] sm:$0xff]  }
  0xf8   : > { %s3442_s29 = smov 16   ;;  %s3443_s30 = smov 8   ;;  %3230 = vmatprep.subr.bf16.mxu0 %v3392_v26  ;;  %3256 = vmatprep.subr.bf16.mxu1 %v3392_v26  ;;  %vm2503_vm2 = vcmask 1043456   ;;  %vm2307_vm3 = vcmask 64512   ;;  %vm2324_vm4 = vcmask 130048   ;;  %vm2341_vm5 = vcmask 195584  }
  0xf9   : > { %s4424_s26 = scalar_lea.vmem [#allocation2], %s3200_s25  ;;  %s3444_s10 = smov 32   ;;  %3231 = vmatpush3.bf16.msra.mxu0 %v3392_v26  ;;  %3261 = vmatpush3.bf16.msra.mxu1 %v3392_v26  ;;  %vm2358_vm6 = vcmask 261120   ;;  %vm2375_vm7 = vcmask 326656   ;;  %vm2392_vm8 = vcmask 392192   ;;  %vm2426_vm9 = vcmask 523264  }
  0xfa   : > { %s3445_s13 = smov 40   ;;  %s3446_s17 = smov 48   ;;  %vm2409_vm10 = vcmask 457728   ;;  %vm2486_vm11 = vcmask 588800   ;;  %vm2684_vm12 = vcmask 27648   ;;  %vm2717_vm13 = vcmask 31744  }
  0xfb   : > { %s3447_s19 = smov 56   ;;  %s3448_s25 = smov 64   ;;  %vm2829_vm14 = vcmask (!%p3019_p7), 24576  }
  0xfd   : > { %v3027_v8 = vld [vmem:[%s4424_s26 + $0x18] sm:$0xf]  ;;  %v4428_v36 = vld [vmem:[%s4424_s26 + $0x1c] sm:$0xf]  ;;  %v3025_v6 = vld [vmem:[%s4424_s26 + $0xc] sm:$0xf] }
  0xfe   : > { %v3116_v12 = vcombine.low %v3027_v8, %v4428_v36  ;;  %v4433_v60 = vld [vmem:[%s4424_s26 + $0x10] sm:$0xf]  ;;  %v1450_v62 = vld [vmem:[%s4424_s26 + $0x4] sm:$0xf]  ;;  %v1473_v14 = vld [vmem:[%s4424_s26] sm:$0xe] }
  0xff   : > { %v3115_v55 = vcombine.low %v3025_v6, %v4433_v60  ;;  %v3050_v59 = vld [vmem:[%s4424_s26 + $0x18] sm:$0xe]  ;;  %v3324_v33 = vld [vmem:[%s4424_s26 + $0x8] ss:$0 sps:$4 sm:$0x11]   ;;  %v3107_v53 = vcombine.low %v1473_v14, %v1450_v62 }
 0x100   : > { %1837 = vrot.lane.b32.xlu1 %v3116_v12, %s3441_s27  ;;  %v1890_v4 = vshll.u32 %v3116_v12, 16  ;;  %v1449_v34 = vld [vmem:[%s4424_s26] sm:$0xf]  ;;  %v1451_v57 = vld [vmem:[%s4424_s26 + $0xc] sm:$0xf]  ;;  %v1888_v63 = vshrl.u32 %v3116_v12, 16  ;;  %v3132_v11 = vcombine.low %v3050_v59, %v4428_v36 }
 0x101   : > { %1835 = vrot.lane.b32.xlu0 %v3115_v55, %s3441_s27  ;;  %v1878_v15 = vshll.u32 %v3115_v55, 16  ;;  %v4443_v54 = vcombine.low %v1449_v34, %v1450_v62  ;;  %v1452_v27 = vld [vmem:[%s4424_s26 + $0x10] sm:$0xf]  ;;  %v1755_v31 = vrot.slane %v3107_v53, 1  ;;  %v1756_v25 = vrot.slane %v3324_v33, 1  ;;  %v3393_v36 = vld [vmem:[%s5053_s2 + $0x8] sm:$0xff]  }
 0x102   : > { %v1626_v22 = vshll.u32 %v3324_v33, 16  ;;  %v4447_v7 = vcombine.low %v1451_v57, %v1452_v27  ;;  %v3049_v42 = vld [vmem:[%s4424_s26 + $0xc] sm:$0xe]  ;;  %v3328_v0 = vld [vmem:[%s4424_s26 + $0x14] ss:$0 sps:$4 sm:$0x11]   ;;  %3232 = vmatprep.subr.bf16.mxu0 %v3393_v36  ;;  %3257 = vmatprep.subr.bf16.mxu1 %v3393_v36 }
 0x103   : > { %v1619_v35 = vshrl.u32 %v4443_v54, 16  ;;  %v1621_v23 = vshll.u32 %v4443_v54, 16  ;;  %v1474_v39 = vld [vmem:[%s4424_s26 + $0xc] sm:$0xe]  ;;  %v1757_v38 = vsel %vm1754_vm0, %v1755_v31, %v1756_v25  ;;  %v1892_v58 = vrot.slane %v1890_v4, 1  ;;  %v3394_v34 = vld [vmem:[%s5053_s2 + $0x10] sm:$0xff]   ;;  %3233 = vmatpush3.bf16.msra.mxu0 %v3393_v36  ;;  %3262 = vmatpush3.bf16.msra.mxu1 %v3393_v36 }
 0x104   : > { %v1628_v41 = vrot.slane %v1626_v22, 1  ;;  %v3108_v47 = vcombine.low %v1474_v39, %v1452_v27  ;;  %v1631_v61 = vshrl.u32 %v4447_v7, 16  ;;  %1779 = vrot.lane.b32.xlu1 %v1757_v38, %s3442_s29  ;;  %v1633_v30 = vshll.u32 %v4447_v7, 16  ;;  %v3330_v17 = vld [vmem:[%s4424_s26 + $0x20] ss:$0 sps:$4 sm:$0x11]   ;;  %3234 = vmatprep.subr.bf16.mxu0 %v3394_v34 }
 0x105   : > { %v1623_v10 = vrot.slane %v1621_v23, 1  ;;  %v1759_v32 = vrot.slane %v3328_v0, 1  ;;  %v1638_v28 = vshll.u32 %v3328_v0, 16  ;;  %v1876_v40 = vshrl.u32 %v3115_v55, 16  ;;  %v3061_v19 = vld [vmem:[%s4424_s26 + $0x24] sm:$0xf]  ;;  %3258 = vmatprep.subr.bf16.mxu1 %v3394_v34 }
 0x106   : > { %v1758_v43 = vrot.slane %v3108_v47, 1  ;;  %v1635_v48 = vrot.slane %v1633_v30, 1  ;;  %v1893_v51 = vor.u32 %v1892_v58, %v1888_v63  ;;  %v1895_v45 = vshll.u32 %v3330_v17, 16  ;;  %v3331_v13 = vld [vmem:[%s4424_s26 + $0x14] ss:$0 sps:$4 sm:$0x11]  }
 0x107   : > { %v1624_v18 = vor.u32 %v1623_v10, %v1619_v35  ;;  %v3131_v2 = vcombine.low %v3049_v42, %v4433_v60  ;;  %v1640_v46 = vrot.slane %v1638_v28, 1  ;;  %v1880_v3 = vrot.slane %v1878_v15, 1  ;;  %v4467_v24 = vld [vmem:[%s4424_s26 + $0x28] sm:$0xf]  ;;  %v3059_v49 = vld [vmem:[%s4424_s26 + $0x18] sm:$0xf]  ;;  %3235 = vmatpush3.bf16.msra.mxu0 %v3394_v34  ;;  %3263 = vmatpush3.bf16.msra.mxu1 %v3394_v34 }
 0x108   : > { %v1760_v9 = vsel %vm1754_vm0, %v1758_v43, %v1759_v32  ;;  %v1636_v50 = vor.u32 %v1635_v48, %v1631_v61  ;;  %v1897_v44 = vrot.slane %v1895_v45, 1  ;;  %v1883_v29 = vshll.u32 %v3331_v13, 16  ;;  %v4478_v8 = vld [vmem:[%s4424_s26 + $0x1c] sm:$0xf]  ;;  %v1453_v14 = vld [vmem:[%s4424_s26 + $0x18] sm:$0xf] }
 0x109   : > { %v1629_v20 = vsel %vm1617_vm1, %v1624_v18, %v1628_v41  ;;  %1781 = vrot.lane.b32.xlu1 %v1760_v9, %s3442_s29  ;;  %v1881_v37 = vor.u32 %v1880_v3, %v1876_v40  ;;  %v2014_v21 = vrot.slane %v3132_v11, 1  ;;  %v2015_v1 = vrot.slane %v3330_v17, 1  ;;  %v4487_v60 = vld [vmem:[%s4424_s26 + $0x2c] ss:$0 sps:$4 sm:$0x11]   ;;  %v3395_v47 = vld [vmem:[%s5053_s2 + $0x18] sm:$0xff]  }
 0x10a   : > { %1714 = vrot.lane.b32.xlu0 %v1629_v20, %s3443_s30  ;;  %v1641_v56 = vsel %vm1617_vm1, %v1636_v50, %v1640_v46  ;;  %v1898_v5 = vsel %vm1617_vm1, %v1893_v51, %v1897_v44  ;;  %v1885_v52 = vrot.slane %v1883_v29, 1  ;;  %v3140_v16 = vcombine.low %v3061_v19, %v4467_v24  ;;  %v4495_v53 = vld [vmem:[%s4424_s26 + $0x20] ss:$0 sps:$4 sm:$0x11]   ;;  %v4503_v63 = vld [vmem:[%s4424_s26 + $0x1c] sm:$0xf]  ;;  %3236 = vmatprep.subr.bf16.mxu0 %v3395_v47 }
 0x10b   : > { %v2011_v12 = vrot.slane %v3131_v2, 1  ;;  %v4484_v6 = vcombine.low %v3059_v49, %v4478_v8  ;;  %v2016_v59 = vsel %vm1754_vm0, %v2014_v21, %v2015_v1  ;;  %v2012_v4 = vrot.slane %v3331_v13, 1  ;;  %v4509_v25 = vld [vmem:[%s4424_s26 + $0x20] ss:$0 sps:$4 sm:$0x11]   ;;  %3237 = vmatpush3.bf16.msra.mxu0 %v3395_v47  ;;  %3259 = vmatprep.subr.bf16.mxu1 %v3395_v47 }
 0x10c   : > { %v2146_v55 = vshll.u32 %v3140_v16, 16  ;;  %v2144_v62 = vshrl.u32 %v3140_v16, 16  ;;  %v2151_v33 = vshll.u32 %v4487_v60, 16  ;;  %v1886_v15 = vsel %vm1617_vm1, %v1881_v37, %v1885_v52  ;;  %v1455_v35 = vld [vmem:[%s4424_s26 + $0x24] sm:$0xf]  ;;  %3264 = vmatpush3.bf16.msra.mxu1 %v3395_v47 }
 0x10d   : > { %1973 = vrot.lane.b32.xlu1 %v1898_v5, %s3444_s10  ;;  %v2134_v57 = vshll.u32 %v4484_v6, 16  ;;  %v4506_v31 = vcombine.low %v1453_v14, %v4503_v63  ;;  %v1456_v23 = vld [vmem:[%s4424_s26 + $0x28] sm:$0xf]  ;;  %v2013_v39 = vsel %vm1754_vm0, %v2011_v12, %v2012_v4  ;;  %v2132_v38 = vshrl.u32 %v4484_v6, 16  ;;  %v3083_v58 = vld [vmem:[%s4424_s26 + $0x18] sm:$0xe] }
 0x10e   : > { %1716 = vrot.lane.b32.xlu0 %v1641_v56, %s3443_s30  ;;  %v2148_v27 = vrot.slane %v2146_v55, 1  ;;  %v2153_v42 = vrot.slane %v2151_v33, 1  ;;  %v2139_v11 = vshll.u32 %v4495_v53, 16  ;;  %v1650_v10 = vshll.u32 %v4509_v25, 16  ;;  %v3084_v32 = vld [vmem:[%s4424_s26 + $0x24] sm:$0xe] }
 0x10f   : > { %v1643_v41 = vshrl.u32 %v4506_v31, 16  ;;  %v1645_v0 = vshll.u32 %v4506_v31, 16  ;;  %v2136_v61 = vrot.slane %v2134_v57, 1  ;;  %v4524_v30 = vcombine.low %v1455_v35, %v1456_v23  ;;  %v4527_v17 = vld [vmem:[%s4424_s26 + $0x2c] ss:$0 sps:$4 sm:$0x11]  }
 0x110   : > { %v2149_v22 = vor.u32 %v2148_v27, %v2144_v62  ;;  %v1652_v48 = vrot.slane %v1650_v10, 1  ;;  %v1662_v45 = vshll.u32 %v4527_v17, 16  ;;  %v1476_v13 = vld [vmem:[%s4424_s26 + $0x24] sm:$0xe]  ;;  %v3155_v2 = vcombine.low %v3083_v58, %v4478_v8  ;;  %v3031_v19 = vld [vmem:[%s4424_s26 + $0x30] sm:$0xf] }
 0x111   : > { %2037 = vrot.lane.b32.xlu1 %v2016_v59, %s3445_s13  ;;  %v1647_v43 = vrot.slane %v1645_v0, 1  ;;  %v1657_v40 = vshll.u32 %v4524_v30, 16  ;;  %v1655_v51 = vshrl.u32 %v4524_v30, 16  ;;  %v2137_v9 = vor.u32 %v2136_v61, %v2132_v38  ;;  %v4541_v20 = vld [vmem:[%s4424_s26 + $0x34] sm:$0xf] }
 0x112   : > { %1971 = vrot.lane.b32.xlu0 %v1886_v15, %s3444_s10  ;;  %v2154_v28 = vsel %vm1617_vm1, %v2149_v22, %v2153_v42  ;;  %v2141_v46 = vrot.slane %v2139_v11, 1  ;;  %v3156_v50 = vcombine.low %v3084_v32, %v4467_v24  ;;  %v3110_v44 = vcombine.low %v1476_v13, %v1456_v23  ;;  %v1475_v56 = vld [vmem:[%s4424_s26 + $0x18] sm:$0xe]  ;;  %v3029_v5 = vld [vmem:[%s4424_s26 + $0x24] sm:$0xf] }
 0x113   : > { %v1648_v18 = vor.u32 %v1647_v43, %v1643_v41  ;;  %v1659_v3 = vrot.slane %v1657_v40, 1  ;;  %v1664_v21 = vrot.slane %v1662_v45, 1  ;;  %v3118_v1 = vcombine.low %v3031_v19, %v4541_v20  ;;  %v4554_v52 = vld [vmem:[%s4424_s26 + $0x28] sm:$0xf]  ;;  %v3052_v33 = vld [vmem:[%s4424_s26 + $0x30] sm:$0xe] }
 0x114   : > { %v2142_v49 = vsel %vm1617_vm1, %v2137_v9, %v2141_v46  ;;  %v2267_v24 = vrot.slane %v3155_v2, 1  ;;  %v2268_v26 = vrot.slane %v4495_v53, 1  ;;  %v1764_v8 = vrot.slane %v3110_v44, 1  ;;  %v3348_v55 = vld [vmem:[%s4424_s26 + $0x38] ss:$0 sps:$4 sm:$0x11]  }
 0x115   : > { %2093 = vrot.lane.b32.xlu1 %v3140_v16, %s3446_s17  ;;  %v1653_v29 = vsel %vm1617_vm1, %v1648_v18, %v1652_v48  ;;  %v1660_v37 = vor.u32 %v1659_v3, %v1655_v51  ;;  %v2270_v16 = vrot.slane %v3156_v50, 1  ;;  %v1765_v36 = vrot.slane %v4527_v17, 1  ;;  %v3065_v34 = vld [vmem:[%s4424_s26 + $0x3c] sm:$0xf]  ;;  %v3051_v41 = vld [vmem:[%s4424_s26 + $0x24] sm:$0xe] }
 0x116   : > { %2035 = vrot.lane.b32.xlu0 %v2013_v39, %s3445_s13  ;;  %v2269_v62 = vsel %vm1754_vm0, %v2267_v24, %v2268_v26  ;;  %v2271_v14 = vrot.slane %v4487_v60, 1  ;;  %v3109_v59 = vcombine.low %v1475_v56, %v4503_v63  ;;  %v3117_v4 = vcombine.low %v3029_v5, %v4554_v52  ;;  %v4571_v60 = vld [vmem:[%s4424_s26 + $0x40] sm:$0xf]  ;;  %v3349_v23 = vld [vmem:[%s4424_s26 + $0x2c] ss:$0 sps:$4 sm:$0x11]  }
 0x117   : > { %v1665_v12 = vsel %vm1617_vm1, %v1660_v37, %v1664_v21  ;;  %v1912_v53 = vshrl.u32 %v3118_v1, 16  ;;  %v1766_v15 = vsel %vm1754_vm0, %v1764_v8, %v1765_v36  ;;  %v1919_v27 = vshll.u32 %v3348_v55, 16  ;;  %v3063_v11 = vld [vmem:[%s4424_s26 + $0x30] sm:$0xf]  ;;  %v4585_v43 = vld [vmem:[%s4424_s26 + $0x34] sm:$0xf] }
 0x118   : > { %v2272_v63 = vsel %vm1754_vm0, %v2270_v16, %v2271_v14  ;;  %v1761_v22 = vrot.slane %v3109_v59, 1  ;;  %v1762_v42 = vrot.slane %v4509_v25, 1  ;;  %v1902_v35 = vshll.u32 %v3117_v4, 16  ;;  %v1457_v58 = vld [vmem:[%s4424_s26 + $0x30] sm:$0xf] }
 0x119   : > { %2229 = vrot.lane.b32.xlu1 %v2154_v28, %s3447_s19  ;;  %v3142_v39 = vcombine.low %v3065_v34, %v4571_v60  ;;  %v3134_v38 = vcombine.low %v3052_v33, %v4541_v20  ;;  %v1921_v47 = vrot.slane %v1919_v27, 1  ;;  %v1900_v61 = vshrl.u32 %v3117_v4, 16  ;;  %v3064_v32 = vld [vmem:[%s4424_s26 + $0x34] sm:$0xf]  ;;  %v1459_v3 = vld [vmem:[%s4424_s26 + $0x3c] sm:$0xf] }
 0x11a   : > { %2091 = vrot.lane.b32.xlu0 %v4484_v6, %s3446_s17  ;;  %v1914_v6 = vshll.u32 %v3118_v1, 16  ;;  %v1763_v25 = vsel %vm1754_vm0, %v1761_v22, %v1762_v42  ;;  %v1904_v10 = vrot.slane %v1902_v35, 1  ;;  %v1907_v17 = vshll.u32 %v3349_v23, 16  ;;  %v4589_v28 = vld [vmem:[%s4424_s26 + $0x44] ss:$0 sps:$4 sm:$0x11]  }
 0x11b   : > { %v2170_v40 = vshll.u32 %v3142_v39, 16  ;;  %v2020_v48 = vrot.slane %v3134_v38, 1  ;;  %v2021_v51 = vrot.slane %v3348_v55, 1  ;;  %v4595_v45 = vcombine.low %v1457_v58, %v4585_v43  ;;  %v4600_v19 = vld [vmem:[%s4424_s26 + $0x40] sm:$0xf] }
 0x11c   : > { %v1916_v57 = vrot.slane %v1914_v6, 1  ;;  %v3133_v13 = vcombine.low %v3051_v41, %v4554_v52  ;;  %v1905_v2 = vor.u32 %v1904_v10, %v1900_v61  ;;  %v1909_v9 = vrot.slane %v1907_v17, 1  ;;  %v3355_v5 = vld [vmem:[%s4424_s26 + $0x38] ss:$0 sps:$4 sm:$0x11]  }
 0x11d   : > { %1718 = vrot.lane.b32.xlu1 %v1653_v29, %s3443_s30  ;;  %v3141_v46 = vcombine.low %v3063_v11, %v3064_v32  ;;  %v2168_v20 = vshrl.u32 %v3142_v39, 16  ;;  %v2175_v50 = vshll.u32 %v4589_v28, 16  ;;  %v2172_v44 = vrot.slane %v2170_v40, 1  ;;  %v4605_v29 = vld [vmem:[%s4424_s26 + $0x38] ss:$0 sps:$4 sm:$0x11]  }
 0x11e   : > { %2227 = vrot.lane.b32.xlu0 %v2142_v49, %s3447_s19  ;;  %v1917_v0 = vor.u32 %v1916_v57, %v1912_v53  ;;  %v2022_v37 = vsel %vm1754_vm0, %v2020_v48, %v2021_v51  ;;  %v1669_v21 = vshll.u32 %v4595_v45, 16  ;;  %v1910_v49 = vsel %vm1617_vm1, %v1905_v2, %v1909_v9  ;;  %v3085_v52 = vld [vmem:[%s4424_s26 + $0x30] sm:$0xe]  ;;  %v1478_v57 = vld [vmem:[%s4424_s26 + $0x3c] sm:$0xe] }
 0x11f   : > { %v2017_v24 = vrot.slane %v3133_v13, 1  ;;  %v2018_v26 = vrot.slane %v3349_v23, 1  ;;  %v2158_v56 = vshll.u32 %v3141_v46, 16  ;;  %v2173_v16 = vor.u32 %v2172_v44, %v2168_v20  ;;  %v3035_v38 = vld [vmem:[%s4424_s26 + $0x48] sm:$0xf] }
 0x120   : > { %v1922_v18 = vsel %vm1617_vm1, %v1917_v0, %v1921_v47  ;;  %v2177_v8 = vrot.slane %v2175_v50, 1  ;;  %v1674_v36 = vshll.u32 %v4605_v29, 16  ;;  %v1667_v6 = vshrl.u32 %v4595_v45, 16  ;;  %v3036_v41 = vld [vmem:[%s4424_s26 + $0x4c] sm:$0xf] }
 0x121   : > { %1720 = vrot.lane.b32.xlu1 %v1665_v12, %s3443_s30  ;;  %v3359_v12 = vld [vmem:[%s4424_s26 + $0x44] ss:$0 sps:$4 sm:$0x11]   ;;  %v1671_v55 = vrot.slane %v1669_v21, 1  ;;  %v2019_v14 = vsel %vm1754_vm0, %v2017_v24, %v2018_v26  ;;  %v2156_v59 = vshrl.u32 %v3141_v46, 16  ;;  %v2163_v33 = vshll.u32 %v3355_v5, 16 }
 0x122   : > { %2291 = vrot.lane.b32.xlu0 %v2269_v62, %s3448_s25  ;;  %v3157_v53 = vcombine.low %v3085_v52, %v3064_v32  ;;  %v2178_v34 = vsel %vm1617_vm1, %v2173_v16, %v2177_v8  ;;  %v1686_v42 = vshll.u32 %v3359_v12, 16  ;;  %v2274_v47 = vrot.slane %v3355_v5, 1  ;;  %v1477_v40 = vld [vmem:[%s4424_s26 + $0x30] sm:$0xe]  ;;  %v4640_v48 = vld [vmem:[%s4424_s26 + $0x40] sm:$0xf] }
 0x123   : > { %v1672_v27 = vor.u32 %v1671_v55, %v1667_v6  ;;  %v2165_v23 = vrot.slane %v2163_v33, 1  ;;  %v3112_v61 = vcombine.low %v1478_v57, %v4600_v19  ;;  %v3120_v17 = vcombine.low %v3035_v38, %v3036_v41  ;;  %v3054_v50 = vld [vmem:[%s4424_s26 + $0x48] sm:$0xe]  ;;  %v4653_v21 = vld [vmem:[%s4424_s26 + $0x44] ss:$0 sps:$4 sm:$0x11]  }
 0x124   : > { %v2273_v0 = vrot.slane %v3157_v53, 1  ;;  %v1688_v10 = vrot.slane %v1686_v42, 1  ;;  %v1771_v9 = vrot.slane %v3359_v12, 1  ;;  %v3111_v20 = vcombine.low %v1477_v40, %v4585_v43  ;;  %v3069_v5 = vld [vmem:[%s4424_s26 + $0x54] sm:$0xf] }
 0x125   : > { %1785 = vrot.lane.b32.xlu1 %v1766_v15, %s3442_s29  ;;  %v1676_v15 = vrot.slane %v1674_v36, 1  ;;  %v1770_v2 = vrot.slane %v3112_v61, 1  ;;  %v3136_v24 = vcombine.low %v3054_v50, %v3036_v41  ;;  %v1768_v16 = vrot.slane %v4605_v29, 1  ;;  %v3053_v12 = vld [vmem:[%s4424_s26 + $0x3c] sm:$0xe] }
 0x126   : > { %2293 = vrot.lane.b32.xlu0 %v2272_v63, %s3448_s25  ;;  %v2275_v51 = vsel %vm1754_vm0, %v2273_v0, %v2274_v47  ;;  %v1767_v52 = vrot.slane %v3111_v20, 1  ;;  %v1461_v29 = vld [vmem:[%s4424_s26 + $0x48] sm:$0xf]  ;;  %v4671_v53 = vld [vmem:[%s4424_s26 + $0x4c] sm:$0xf] }
 0x127   : > { %v1677_v11 = vsel %vm1617_vm1, %v1672_v27, %v1676_v15  ;;  %v4675_v15 = vld [vmem:[%s4424_s26 + $0x4c] sm:$0xf]  ;;  %v4679_v27 = vld [vmem:[%s4424_s26 + $0x5c] ss:$0 sps:$4 sm:$0x11]  }
 0x128   : > { %v4690_v0 = vld [vmem:[%s4424_s26 + $0x58] sm:$0xf]  ;;  %v3396_v47 = vld [vmem:[%s5053_s2 + $0x20] ss:$0 sps:$4 sm:$0xff]  }
 0x129   : > { %1841 = vrot.lane.b32.xlu1 %v3118_v1, %s3441_s27  ;;  %v4611_v1 = vcombine.low %v1459_v3, %v4600_v19  ;;  %v2277_v19 = vrot.slane %v4589_v28, 1  ;;  %v4659_v28 = vld [vmem:[%s4424_s26 + $0x58] sm:$0xf]  ;;  %3266 = vmatprep.subr.msk.bf16.mxu0 %vm2503_vm2, %v3396_v47  ;;  %v2505_v40 = vsel %vm2503_vm2, %v3396_v47, 0 }
 0x12a   : > { %1783 = vrot.lane.b32.xlu0 %v1763_v25, %s3442_s29  ;;  %v3144_v36 = vcombine.low %v3069_v5, %v4659_v28  ;;  %3239 = vmatpush3.bf16.msra.mxu0 %v2505_v40  ;;  %v3377_v20 = vld [vmem:[%s4424_s26 + $0x5c] ss:$0 sps:$4 sm:$0x11]  }
 0x12b   : > { %v1681_v62 = vshll.u32 %v4611_v1, 16  ;;  %v1679_v63 = vshrl.u32 %v4611_v1, 16  ;;  %3267 = vmatprep.subr.msk.bf16.mxu1 %vm2503_vm2, %v3396_v47  ;;  %v1777_v47 = vrot.slane %v3377_v20, 1 }
 0x12c   : > { %v2194_v57 = vshll.u32 %v3144_v36, 16  ;;  %v2192_v61 = vshrl.u32 %v3144_v36, 16  ;;  %3265 = vmatpush3.bf16.msra.mxu1 %v2505_v40 }
 0x12d   : > { %1977 = vrot.lane.b32.xlu1 %v1922_v18, %s3444_s10  ;;  %v1683_v22 = vrot.slane %v1681_v62, 1  ;;  %v3033_v18 = vld [vmem:[%s4424_s26 + $0x3c] sm:$0xf]  ;;  %v1931_v62 = vshll.u32 %v4653_v21, 16 }
 0x12e   : > { %1839 = vrot.lane.b32.xlu0 %v3117_v4, %s3441_s27  ;;  %v2160_v4 = vrot.slane %v2158_v56, 1  ;;  %v3119_v44 = vcombine.low %v3033_v18, %v4640_v48 }
 0x12f   : > { %v1684_v25 = vor.u32 %v1683_v22, %v1679_v63  ;;  %v1933_v22 = vrot.slane %v1931_v62, 1  ;;  %v3039_v62 = vld [vmem:[%s4424_s26 + $0x60] sm:$0xf] }
 0x130   : > { %v2161_v35 = vor.u32 %v2160_v4, %v2156_v59  ;;  %v1926_v8 = vshll.u32 %v3119_v44, 16  ;;  %v1769_v59 = vsel %vm1754_vm0, %v1767_v52, %v1768_v16  ;;  %v1924_v4 = vshrl.u32 %v3119_v44, 16 }
 0x131   : > { %2041 = vrot.lane.b32.xlu1 %v2022_v37, %s3445_s13  ;;  %v1689_v13 = vsel %vm1617_vm1, %v1684_v25, %v1688_v10  ;;  %v1936_v37 = vshrl.u32 %v3120_v17, 16  ;;  %v2199_v25 = vshll.u32 %v4679_v27, 16  ;;  %v4698_v10 = vld [vmem:[%s4424_s26 + $0x50] ss:$0 sps:$4 sm:$0x11]   ;;  %v1710_v16 = vshll.u32 %v3377_v20, 16 }
 0x132   : > { %1975 = vrot.lane.b32.xlu0 %v1910_v49, %s3444_s10  ;;  %v2166_v32 = vsel %vm1617_vm1, %v2161_v35, %v2165_v23  ;;  %v1772_v49 = vsel %vm1754_vm0, %v1770_v2, %v1771_v9  ;;  %v1928_v33 = vrot.slane %v1926_v8, 1  ;;  %v4684_v35 = vcombine.low %v1461_v29, %v4671_v53  ;;  %v3373_v2 = vld [vmem:[%s4424_s26 + $0x50] ss:$0 sps:$4 sm:$0x11]   ;;  %v1480_v8 = vld [vmem:[%s4424_s26 + $0x54] sm:$0xe] }
 0x133   : > { %v3135_v23 = vcombine.low %v3053_v12, %v4640_v48  ;;  %v1712_v29 = vrot.slane %v1710_v16, 1  ;;  %v1774_v40 = vrot.slane %v4698_v10, 1 }
 0x134   : > { %v1929_v38 = vor.u32 %v1928_v33, %v1924_v4 }
 0x135   : > { %2097 = vrot.lane.b32.xlu1 %v3142_v39, %s3446_s17  ;;  %v3086_v39 = vld [vmem:[%s4424_s26 + $0x3c] sm:$0xe]  ;;  %v2023_v48 = vrot.slane %v3135_v23, 1  ;;  %v3037_v23 = vld [vmem:[%s4424_s26 + $0x54] sm:$0xf] }
 0x136   : > { %2039 = vrot.lane.b32.xlu0 %v2019_v14, %s3445_s13  ;;  %v3158_v58 = vcombine.low %v3086_v39, %v4571_v60  ;;  %v1938_v60 = vshll.u32 %v3120_v17, 16  ;;  %v2026_v14 = vrot.slane %v3136_v24, 1  ;;  %v1463_v39 = vld [vmem:[%s4424_s26 + $0x54] sm:$0xf]  ;;  %v1934_v18 = vsel %vm1617_vm1, %v1929_v38, %v1933_v22  ;;  %v3087_v24 = vld [vmem:[%s4424_s26 + $0x48] sm:$0xe] }
 0x137   : > { %v3159_v12 = vcombine.low %v3087_v24, %v4675_v15  ;;  %v3038_v38 = vld [vmem:[%s4424_s26 + $0x58] sm:$0xf]  ;;  %v3055_v24 = vld [vmem:[%s4424_s26 + $0x54] sm:$0xe] }
 0x138   : > { %v2276_v3 = vrot.slane %v3158_v58, 1  ;;  %v1940_v26 = vrot.slane %v1938_v60, 1  ;;  %v1693_v58 = vshll.u32 %v4684_v35, 16  ;;  %v2201_v60 = vrot.slane %v2199_v25, 1 }
 0x139   : > { %2233 = vrot.lane.b32.xlu1 %v2178_v34, %s3447_s19  ;;  %v3067_v34 = vld [vmem:[%s4424_s26 + $0x48] sm:$0xf]  ;;  %v2279_v22 = vrot.slane %v3159_v12, 1  ;;  %v3137_v12 = vcombine.low %v3055_v24, %v3038_v38 }
 0x13a   : > { %2095 = vrot.lane.b32.xlu0 %v3141_v46, %s3446_s17  ;;  %v3366_v46 = vld [vmem:[%s4424_s26 + $0x50] ss:$0 sps:$4 sm:$0x11]   ;;  %v2278_v43 = vsel %vm1754_vm0, %v2276_v3, %v2277_v19  ;;  %v1941_v6 = vor.u32 %v1940_v26, %v1936_v37  ;;  %v3143_v41 = vcombine.low %v3067_v34, %v4675_v15  ;;  %v1691_v3 = vshrl.u32 %v4684_v35, 16  ;;  %v1479_v34 = vld [vmem:[%s4424_s26 + $0x48] sm:$0xe] }
 0x13b   : > { %v1943_v56 = vshll.u32 %v3366_v46, 16  ;;  %v2027_v42 = vrot.slane %v3366_v46, 1  ;;  %v1698_v46 = vshll.u32 %v4698_v10, 16  ;;  %v1695_v19 = vrot.slane %v1693_v58, 1 }
 0x13c   : > { %v2180_v37 = vshrl.u32 %v3143_v41, 16  ;;  %v3121_v58 = vcombine.low %v3037_v23, %v3038_v38 }
 0x13d   : > { %1722 = vrot.lane.b32.xlu1 %v1677_v11, %s3443_s30  ;;  %v1945_v55 = vrot.slane %v1943_v56, 1  ;;  %v2196_v11 = vrot.slane %v2194_v57, 1  ;;  %v1700_v56 = vrot.slane %v1698_v46, 1  ;;  %v1696_v5 = vor.u32 %v1695_v19, %v1691_v3  ;;  %v3385_v46 = vld [vmem:[%s4424_s26 + $0x5c] ss:$0 sps:$4 sm:$0x11]  }
 0x13e   : > { %2231 = vrot.lane.b32.xlu0 %v2166_v32, %s3447_s19  ;;  %v4704_v32 = vcombine.low %v1463_v39, %v4690_v0  ;;  %v3074_v3 = vld [vmem:[%s4424_s26 + $0x70] sm:$0xf] }
 0x13f   : > { %v1946_v63 = vsel %vm1617_vm1, %v1941_v6, %v1945_v55  ;;  %v2197_v9 = vor.u32 %v2196_v11, %v2192_v61  ;;  %v1701_v4 = vsel %vm1617_vm1, %v1696_v5, %v1700_v56  ;;  %v3072_v56 = vld [vmem:[%s4424_s26 + $0x64] sm:$0xf] }
 0x140   : > { %v1705_v50 = vshll.u32 %v4704_v32, 16 }
 0x141   : > { %1724 = vrot.lane.b32.xlu1 %v1689_v13, %s3443_s30  ;;  %v2182_v13 = vshll.u32 %v3143_v41, 16  ;;  %v2202_v26 = vsel %vm1617_vm1, %v2197_v9, %v2201_v60  ;;  %v3073_v9 = vld [vmem:[%s4424_s26 + $0x6c] sm:$0xf] }
 0x142   : > { %2295 = vrot.lane.b32.xlu0 %v2275_v51, %s3448_s25  ;;  %v2024_v51 = vrot.slane %v4653_v21, 1  ;;  %v1707_v52 = vrot.slane %v1705_v50, 1  ;;  %v3146_v50 = vcombine.low %v3073_v9, %v3074_v3 }
 0x143   : > { %v2184_v21 = vrot.slane %v2182_v13, 1 }
 0x144   : > { %v2218_v16 = vshll.u32 %v3146_v50, 16 }
 0x145   : > { %1789 = vrot.lane.b32.xlu1 %v1772_v49, %s3442_s29  ;;  %v2187_v49 = vshll.u32 %v3373_v2, 16  ;;  %v2185_v6 = vor.u32 %v2184_v21, %v2180_v37  ;;  %v1948_v37 = vshrl.u32 %v3121_v58, 16 }
 0x146   : > { %2297 = vrot.lane.b32.xlu0 %v2278_v43, %s3448_s25  ;;  %v1703_v43 = vshrl.u32 %v4704_v32, 16 }
 0x147   : > { %v2189_v55 = vrot.slane %v2187_v49, 1  ;;  %v1955_v49 = vshll.u32 %v3385_v46, 16 }
 0x148   : > { %v1708_v33 = vor.u32 %v1707_v52, %v1703_v43 }
 0x149   : > { %1845 = vrot.lane.b32.xlu1 %v3120_v17, %s3441_s27  ;;  %v2028_v17 = vsel %vm1754_vm0, %v2026_v14, %v2027_v42  ;;  %v3088_v14 = vld [vmem:[%s4424_s26 + $0x54] sm:$0xe]  ;;  %v2280_v42 = vrot.slane %v3373_v2, 1 }
 0x14a   : > { %1787 = vrot.lane.b32.xlu0 %v1769_v59, %s3442_s29  ;;  %v3114_v59 = vcombine.low %v1480_v8, %v4690_v0  ;;  %v3160_v57 = vcombine.low %v3088_v14, %v4659_v28  ;;  %v1713_v39 = vsel %vm1617_vm1, %v1708_v33, %v1712_v29  ;;  %v3384_v28 = vld [vmem:[%s4424_s26 + $0x68] ss:$0 sps:$4 sm:$0x11]   ;;  %v3390_v8 = vld [vmem:[%s4424_s26 + $0x74] ss:$0 sps:$4 sm:$0x11]  }
 0x14b   : > { %v2281_v11 = vsel %vm1754_vm0, %v2279_v22, %v2280_v42  ;;  %v1967_v2 = vshll.u32 %v3384_v28, 16  ;;  %v2033_v52 = vrot.slane %v3384_v28, 1  ;;  %v3090_v14 = vld [vmem:[%s4424_s26 + $0x6c] sm:$0xe]  ;;  %v2223_v33 = vshll.u32 %v3390_v8, 16 }
 0x14c   : > { %v1776_v0 = vrot.slane %v3114_v59, 1  ;;  %v2282_v25 = vrot.slane %v3160_v57, 1  ;;  %v2216_v59 = vshrl.u32 %v3146_v50, 16  ;;  %v3162_v42 = vcombine.low %v3090_v14, %v3074_v3 }
 0x14d   : > { %1981 = vrot.lane.b32.xlu1 %v1946_v63, %s3444_s10  ;;  %v2190_v63 = vsel %vm1617_vm1, %v2185_v6, %v2189_v55  ;;  %v1969_v20 = vrot.slane %v1967_v2, 1  ;;  %v1957_v55 = vrot.slane %v1955_v49, 1  ;;  %v2225_v38 = vrot.slane %v2223_v33, 1 }
 0x14e   : > { %1843 = vrot.lane.b32.xlu0 %v3119_v44, %s3441_s27  ;;  %v2025_v44 = vsel %vm1754_vm0, %v2023_v48, %v2024_v51  ;;  %v1778_v48 = vsel %vm1754_vm0, %v1776_v0, %v1777_v47 }
 0x151   : > { %2045 = vrot.lane.b32.xlu1 %v2028_v17, %s3445_s13  ;;  %v2283_v17 = vrot.slane %v4679_v27, 1  ;;  %v1950_v27 = vshll.u32 %v3121_v58, 16 }
 0x152   : > { %1979 = vrot.lane.b32.xlu0 %v1934_v18, %s3444_s10  ;;  %v3056_v18 = vld [vmem:[%s4424_s26 + $0x60] sm:$0xe] }
 0x153   : > { %v2284_v60 = vsel %vm1754_vm0, %v2282_v25, %v2283_v17  ;;  %v1952_v21 = vrot.slane %v1950_v27, 1  ;;  %v2288_v25 = vrot.slane %v3162_v42, 1  ;;  %v2289_v17 = vrot.slane %v3390_v8, 1 }
 0x155   : > { %2101 = vrot.lane.b32.xlu1 %v3144_v36, %s3446_s17  ;;  %v3040_v36 = vld [vmem:[%s4424_s26 + $0x64] sm:$0xf]  ;;  %v1953_v6 = vor.u32 %v1952_v21, %v1948_v37 }
 0x156   : > { %2043 = vrot.lane.b32.xlu0 %v2025_v44, %s3445_s13  ;;  %v3122_v15 = vcombine.low %v3039_v62, %v3040_v36  ;;  %v3138_v10 = vcombine.low %v3056_v18, %v3040_v36 }
 0x157   : > { %v1958_v29 = vsel %vm1617_vm1, %v1953_v6, %v1957_v55 }
 0x158   : > { %v1962_v61 = vshll.u32 %v3122_v15, 16  ;;  %v1960_v51 = vshrl.u32 %v3122_v15, 16  ;;  %v2032_v43 = vrot.slane %v3138_v10, 1 }
 0x159   : > { %2237 = vrot.lane.b32.xlu1 %v2202_v26, %s3447_s19  ;;  %v3071_v26 = vld [vmem:[%s4424_s26 + $0x60] sm:$0xf] }
 0x15a   : > { %2099 = vrot.lane.b32.xlu0 %v3143_v41, %s3446_s17  ;;  %v3113_v41 = vcombine.low %v1479_v34, %v4671_v53  ;;  %v1964_v13 = vrot.slane %v1962_v61, 1  ;;  %v3145_v62 = vcombine.low %v3071_v26, %v3072_v56  ;;  %v2034_v36 = vsel %vm1754_vm0, %v2032_v43, %v2033_v52  ;;  %v3089_v61 = vld [vmem:[%s4424_s26 + $0x60] sm:$0xe] }
 0x15b   : > { %v2029_v34 = vrot.slane %v3137_v12, 1 }
 0x15c   : > { %v1773_v53 = vrot.slane %v3113_v41, 1  ;;  %v1965_v19 = vor.u32 %v1964_v13, %v1960_v51  ;;  %v2206_v57 = vshll.u32 %v3145_v62, 16 }
 0x15d   : > { %1726 = vrot.lane.b32.xlu1 %v1701_v4, %s3443_s30  ;;  %v2220_v4 = vrot.slane %v2218_v16, 1 }
 0x15e   : > { %2235 = vrot.lane.b32.xlu0 %v2190_v63, %s3447_s19  ;;  %v1775_v44 = vsel %vm1754_vm0, %v1773_v53, %v1774_v40  ;;  %v1970_v5 = vsel %vm1617_vm1, %v1965_v19, %v1969_v20  ;;  %v3391_v63 = vld [vmem:[%s4424_s26 + $0x68] ss:$0 sps:$4 sm:$0x11]   ;;  %v2208_v0 = vrot.slane %v2206_v57, 1  ;;  %v3161_v53 = vcombine.low %v3089_v61, %v3072_v56 }
 0x15f   : > { %v2221_v23 = vor.u32 %v2220_v4, %v2216_v59  ;;  %v2211_v47 = vshll.u32 %v3391_v63, 16  ;;  %v2286_v9 = vrot.slane %v3391_v63, 1 }
 0x160   : > { %v2285_v2 = vrot.slane %v3161_v53, 1 }
 0x161   : > { %1728 = vrot.lane.b32.xlu1 %v1713_v39, %s3443_s30  ;;  %v2204_v39 = vshrl.u32 %v3145_v62, 16  ;;  %v2213_v18 = vrot.slane %v2211_v47, 1 }
 0x162   : > { %2299 = vrot.lane.b32.xlu0 %v2281_v11, %s3448_s25  ;;  %v2226_v11 = vsel %vm1617_vm1, %v2221_v23, %v2225_v38 }
 0x163   : > { %v2209_v40 = vor.u32 %v2208_v0, %v2204_v39 }
 0x165   : > { %1793 = vrot.lane.b32.xlu1 %v1778_v48, %s3442_s29  ;;  %v2290_v48 = vsel %vm1754_vm0, %v2288_v25, %v2289_v17  ;;  %v2214_v13 = vsel %vm1617_vm1, %v2209_v40, %v2213_v18 }
 0x166   : > { %2301 = vrot.lane.b32.xlu0 %v2284_v60, %s3448_s25 }
 0x169   : > { %1849 = vrot.lane.b32.xlu1 %v3122_v15, %s3441_s27  ;;  %v2030_v15 = vrot.slane %v3385_v46, 1  ;;  %v2287_v46 = vsel %vm1754_vm0, %v2285_v2, %v2286_v9 }
 0x16a   : > { %1791 = vrot.lane.b32.xlu0 %v1775_v44, %s3442_s29 }
 0x16b   : > { %v2031_v41 = vsel %vm1754_vm0, %v2029_v34, %v2030_v15 }
 0x16d   : > { %1985 = vrot.lane.b32.xlu1 %v1970_v5, %s3444_s10 }
 0x16e   : > { %1847 = vrot.lane.b32.xlu0 %v3121_v58, %s3441_s27 }
 0x171   : > { %2049 = vrot.lane.b32.xlu1 %v2034_v36, %s3445_s13 }
 0x172   : > { %1983 = vrot.lane.b32.xlu0 %v1958_v29, %s3444_s10  ;;  %v1838_v22 = vpop.permute.xlu1 %1837 }
 0x173   : > { %v1836_v28 = vpop.permute.xlu0 %1835 }
 0x175   : > { %2105 = vrot.lane.b32.xlu1 %v3146_v50, %s3446_s17 }
 0x176   : > { %2047 = vrot.lane.b32.xlu0 %v2031_v41, %s3445_s13  ;;  %v1780_v58 = vpop.permute.xlu1 %1779 }
 0x179   : > { %2241 = vrot.lane.b32.xlu1 %v2226_v11, %s3447_s19 }
 0x17a   : > { %2103 = vrot.lane.b32.xlu0 %v3145_v62, %s3446_s17 }
 0x17b   : > { %v1782_v51 = vpop.permute.xlu1 %1781 }
 0x17c   : > { %v1715_v60 = vpop.permute.xlu0 %1714 }
 0x17d   : > { %2305 = vrot.lane.b32.xlu1 %v2290_v48, %s3448_s25  ;;  %v2309_v44 = vsel %vm2307_vm3, %v4443_v54, %v1715_v60 }
 0x17e   : > { %2239 = vrot.lane.b32.xlu0 %v2214_v13, %s3447_s19  ;;  %v2326_v24 = vsel %vm2324_vm4, %v2309_v44, %v1780_v58 }
 0x17f   : > { %v1974_v27 = vpop.permute.xlu1 %1973  ;;  %v2343_v43 = vsel %vm2341_vm5, %v2326_v24, %v1836_v28 }
 0x180   : > { %v1717_v3 = vpop.permute.xlu0 %1716 }
 0x181   : > { %v2311_v37 = vsel %vm2307_vm3, %v4447_v7, %v1717_v3 }
 0x182   : > { %2303 = vrot.lane.b32.xlu0 %v2287_v46, %s3448_s25  ;;  %v2328_v26 = vsel %vm2324_vm4, %v2311_v37, %v1782_v51 }
 0x183   : > { %v2038_v10 = vpop.permute.xlu1 %2037  ;;  %v2345_v5 = vsel %vm2341_vm5, %v2328_v26, %v1838_v22 }
 0x184   : > { %v1972_v19 = vpop.permute.xlu0 %1971  ;;  %v2362_v7 = vsel %vm2358_vm6, %v2345_v5, %v1974_v27 }
 0x185   : > { %v2360_v16 = vsel %vm2358_vm6, %v2343_v43, %v1972_v19  ;;  %v2379_v36 = vsel %vm2375_vm7, %v2362_v7, %v2038_v10 }
 0x187   : > { %v2094_v20 = vpop.permute.xlu1 %2093 }
 0x188   : > { %v2036_v50 = vpop.permute.xlu0 %2035  ;;  %v2396_v14 = vsel %vm2392_vm8, %v2379_v36, %v2094_v20 }
 0x189   : > { %v2377_v54 = vsel %vm2375_vm7, %v2360_v16, %v2036_v50 }
 0x18b   : > { %v2230_v21 = vpop.permute.xlu1 %2229 }
 0x18c   : > { %v2092_v49 = vpop.permute.xlu0 %2091  ;;  %v2413_v4 = vsel %vm2409_vm10, %v2396_v14, %v2230_v21 }
 0x18d   : > { %v2394_v8 = vsel %vm2392_vm8, %v2377_v54, %v2092_v49 }
 0x18f   : > { %v1719_v56 = vpop.permute.xlu1 %1718 }
 0x190   : > { %v2228_v52 = vpop.permute.xlu0 %2227  ;;  %v2313_v0 = vsel %vm2307_vm3, %v4506_v31, %v1719_v56 }
 0x191   : > { %v2411_v6 = vsel %vm2409_vm10, %v2394_v8, %v2228_v52 }
 0x193   : > { %v1721_v12 = vpop.permute.xlu1 %1720 }
 0x194   : > { %v2292_v55 = vpop.permute.xlu0 %2291  ;;  %v2315_v28 = vsel %vm2307_vm3, %v4524_v30, %v1721_v12 }
 0x195   : > { %v2428_v62 = vsel %vm2426_vm9, %v2411_v6, %v2292_v55 }
 0x196   : > { %3240 = vmatprep.mubr.msk.bf16.mxu0 %vm2486_vm11, %v2428_v62 }
 0x197   : > { %v1786_v59 = vpop.permute.xlu1 %1785 }
 0x198   : > { %v2294_v33 = vpop.permute.xlu0 %2293  ;;  %v2332_v53 = vsel %vm2324_vm4, %v2315_v28, %v1786_v59 }
 0x199   : > { %v2430_v29 = vsel %vm2426_vm9, %v2413_v4, %v2294_v33 }
 0x19a   : > { %3241 = vmatmul.mubr.msk.bf16.vlgmr.msra.gmra.mrb[0].mxu0 %vm2486_vm11, %v2430_v29 }
 0x19b   : > { %v1842_v34 = vpop.permute.xlu1 %1841 }
 0x19c   : > { %v1784_v15 = vpop.permute.xlu0 %1783  ;;  %v2349_v31 = vsel %vm2341_vm5, %v2332_v53, %v1842_v34 }
 0x19d   : > { %v2330_v47 = vsel %vm2324_vm4, %v2313_v0, %v1784_v15 }
 0x19f   : > { %v1978_v57 = vpop.permute.xlu1 %1977 }
 0x1a0   : > { %v1840_v63 = vpop.permute.xlu0 %1839  ;;  %v2366_v13 = vsel %vm2358_vm6, %v2349_v31, %v1978_v57 }
 0x1a1   : > { %v2347_v11 = vsel %vm2341_vm5, %v2330_v47, %v1840_v63 }
 0x1a3   : > { %v2042_v22 = vpop.permute.xlu1 %2041 }
 0x1a4   : > { %v1976_v42 = vpop.permute.xlu0 %1975  ;;  %v2383_v2 = vsel %vm2375_vm7, %v2366_v13, %v2042_v22 }
 0x1a5   : > { %v2364_v17 = vsel %vm2358_vm6, %v2347_v11, %v1976_v42 }
 0x1a7   : > { %v2098_v23 = vpop.permute.xlu1 %2097 }
 0x1a8   : > { %v2040_v38 = vpop.permute.xlu0 %2039  ;;  %v2400_v9 = vsel %vm2392_vm8, %v2383_v2, %v2098_v23 }
 0x1a9   : > { %v2381_v58 = vsel %vm2375_vm7, %v2364_v17, %v2040_v38 }
 0x1ab   : > { %v2234_v41 = vpop.permute.xlu1 %2233 }
 0x1ac   : > { %v2096_v39 = vpop.permute.xlu0 %2095  ;;  %v2417_v27 = vsel %vm2409_vm10, %v2400_v9, %v2234_v41 }
 0x1ad   : > { %v2398_v40 = vsel %vm2392_vm8, %v2381_v58, %v2096_v39 }
 0x1af   : > { %v1723_v61 = vpop.permute.xlu1 %1722 }
 0x1b0   : > { %v2232_v25 = vpop.permute.xlu0 %2231  ;;  %v2317_v56 = vsel %vm2307_vm3, %v4595_v45, %v1723_v61 }
 0x1b1   : > { %v2415_v48 = vsel %vm2409_vm10, %v2398_v40, %v2232_v25 }
 0x1b3   : > { %v1725_v18 = vpop.permute.xlu1 %1724 }
 0x1b4   : > { %v2296_v51 = vpop.permute.xlu0 %2295  ;;  %v2319_v52 = vsel %vm2307_vm3, %v4611_v1, %v1725_v18 }
 0x1b5   : > { %v2432_v30 = vsel %vm2426_vm9, %v2415_v48, %v2296_v51 }
 0x1b6   : > { %3244 = vmatprep.mubr.msk.bf16.mxu0 %vm2486_vm11, %v2432_v30 }
 0x1b7   : > { %v1790_v60 = vpop.permute.xlu1 %1789 }
 0x1b8   : > { %v2298_v46 = vpop.permute.xlu0 %2297  ;;  %v2336_v12 = vsel %vm2324_vm4, %v2319_v52, %v1790_v60 }
 0x1b9   : > { %v2434_v3 = vsel %vm2426_vm9, %v2417_v27, %v2298_v46  ;;  %v4868_v27 = vld [vmem:[%s5054_s3] ss:$0 sm:$0xff] }
 0x1ba   : > { %3245 = vmatmul.mubr.msk.bf16.gmra.mrb[4].mxu0 %vm2486_vm11, %v2434_v3 }
 0x1bb   : > { %v1846_v10 = vpop.permute.xlu1 %1845 }
 0x1bc   : > { %v1788_v19 = vpop.permute.xlu0 %1787  ;;  %v2353_v45 = vsel %vm2341_vm5, %v2336_v12, %v1846_v10 }
 0x1bd   : > { %v2334_v5 = vsel %vm2324_vm4, %v2317_v56, %v1788_v19 }
 0x1bf   : > { %v1982_v20 = vpop.permute.xlu1 %1981 }
 0x1c0   : > { %v1844_v50 = vpop.permute.xlu0 %1843  ;;  %v2370_v14 = vsel %vm2358_vm6, %v2353_v45, %v1982_v20 }
 0x1c1   : > { %v2351_v16 = vsel %vm2341_vm5, %v2334_v5, %v1844_v50 }
 0x1c3   : > { %v2046_v44 = vpop.permute.xlu1 %2045 }
 0x1c4   : > { %v1980_v37 = vpop.permute.xlu0 %1979  ;;  %v2387_v59 = vsel %vm2375_vm7, %v2370_v14, %v2046_v44 }
 0x1c5   : > { %v2368_v7 = vsel %vm2358_vm6, %v2351_v16, %v1980_v37 }
 0x1c7   : > { %v2102_v21 = vpop.permute.xlu1 %2101 }
 0x1c8   : > { %v2044_v49 = vpop.permute.xlu0 %2043  ;;  %v2404_v4 = vsel %vm2392_vm8, %v2387_v59, %v2102_v21 }
 0x1c9   : > { %v2385_v8 = vsel %vm2375_vm7, %v2368_v7, %v2044_v49 }
 0x1cb   : > { %v2238_v24 = vpop.permute.xlu1 %2237 }
 0x1cc   : > { %v2100_v26 = vpop.permute.xlu0 %2099  ;;  %v2421_v29 = vsel %vm2409_vm10, %v2404_v4, %v2238_v24 }
 0x1cd   : > { %v2402_v6 = vsel %vm2392_vm8, %v2385_v8, %v2100_v26 }
 0x1cf   : > { %v1727_v43 = vpop.permute.xlu1 %1726 }
 0x1d0   : > { %v2236_v54 = vpop.permute.xlu0 %2235  ;;  %v2321_v28 = vsel %vm2307_vm3, %v4684_v35, %v1727_v43 }
 0x1d1   : > { %v2419_v62 = vsel %vm2409_vm10, %v2402_v6, %v2236_v54 }
 0x1d3   : > { %v1729_v55 = vpop.permute.xlu1 %1728 }
 0x1d4   : > { %v2300_v36 = vpop.permute.xlu0 %2299  ;;  %v2323_v47 = vsel %vm2307_vm3, %v4704_v32, %v1729_v55 }
 0x1d5   : > { %v2436_v1 = vsel %vm2426_vm9, %v2419_v62, %v2300_v36 }
 0x1d6   : > { %3248 = vmatprep.mubr.msk.bf16.mxu1 %vm2486_vm11, %v2436_v1 }
 0x1d7   : > { %v1794_v33 = vpop.permute.xlu1 %1793 }
 0x1d8   : > { %v2302_v34 = vpop.permute.xlu0 %2301  ;;  %v2340_v25 = vsel %vm2324_vm4, %v2323_v47, %v1794_v33 }
 0x1d9   : > { %v2438_v15 = vsel %vm2426_vm9, %v2421_v29, %v2302_v34 }
 0x1da   : > { %3249 = vmatmul.mubr.msk.bf16.vlgmr.msra.gmra.mrb[0].mxu1 %vm2486_vm11, %v2438_v15 }
 0x1db   : > { %v1850_v57 = vpop.permute.xlu1 %1849 }
 0x1dc   : > { %v1792_v63 = vpop.permute.xlu0 %1791  ;;  %v2357_v53 = vsel %vm2341_vm5, %v2340_v25, %v1850_v57 }
 0x1dd   : > { %v2338_v11 = vsel %vm2324_vm4, %v2321_v28, %v1792_v63 }
 0x1df   : > { %v1986_v22 = vpop.permute.xlu1 %1985 }
 0x1e0   : > { %v1848_v42 = vpop.permute.xlu0 %1847  ;;  %v2374_v18 = vsel %vm2358_vm6, %v2357_v53, %v1986_v22 }
 0x1e1   : > { %v2355_v17 = vsel %vm2341_vm5, %v2338_v11, %v1848_v42 }
 0x1e3   : > { %v2050_v23 = vpop.permute.xlu1 %2049 }
 0x1e4   : > { %v1984_v38 = vpop.permute.xlu0 %1983  ;;  %v2391_v32 = vsel %vm2375_vm7, %v2374_v18, %v2050_v23 }
 0x1e5   : > { %v2372_v40 = vsel %vm2358_vm6, %v2355_v17, %v1984_v38 }
 0x1e7   : > { %v2106_v41 = vpop.permute.xlu1 %2105 }
 0x1e8   : > { %v2048_v39 = vpop.permute.xlu0 %2047  ;;  %v2408_v51 = vsel %vm2392_vm8, %v2391_v32, %v2106_v41 }
 0x1e9   : > { %v2389_v31 = vsel %vm2375_vm7, %v2372_v40, %v2048_v39 }
 0x1eb   : > { %v2242_v61 = vpop.permute.xlu1 %2241 }
 0x1ec   : > { %v2104_v0 = vpop.permute.xlu0 %2103  ;;  %v2425_v2 = vsel %vm2409_vm10, %v2408_v51, %v2242_v61 }
 0x1ed   : > { %v2406_v48 = vsel %vm2392_vm8, %v2389_v31, %v2104_v0 }
 0x1ef   : > { %v2306_v35 = vpop.permute.xlu1 %2305 }
 0x1f0   : > { %v2240_v58 = vpop.permute.xlu0 %2239  ;;  %v2442_v60 = vsel %vm2426_vm9, %v2425_v2, %v2306_v35 }
 0x1f1   : > { %v2423_v13 = vsel %vm2409_vm10, %v2406_v48, %v2240_v58 }
 0x1f4   : > { %v2304_v30 = vpop.permute.xlu0 %2303 }
 0x1f5   : > { %v2440_v9 = vsel %vm2426_vm9, %v2423_v13, %v2304_v30 }
 0x1f6   : > { %3252 = vmatprep.mubr.msk.bf16.mxu1 %vm2486_vm11, %v2440_v9 }
 0x1f7   : > { %3253 = vmatmul.mubr.msk.bf16.gmra.mrb[4].mxu1 %vm2486_vm11, %v2442_v60 }
 0x26d   : > { %v3242_v46 = vpop.f32.mrb[0].mxu0 }
 0x26e   : > { %v2550_v3 = vadd.f32 %v3242_v46, %v4868_v27  ;;  %v2541_v10 = vpop.f32.mrb[1].mxu0 }
 0x26f   : > { %v2542_v19 = vadd.f32 %v4868_v27, %v2541_v10  ;;  %v3243_v20 = vpop.f32.mrb[2].mxu0 }
 0x270   : > { %v2606_v50 = vmax.f32 %v2550_v3, 0.0  ;;  %v2553_v44 = vadd.f32 %v3243_v20, %v4868_v27  ;;  %v2544_v37 = vpop.f32.mrb[3].mxu0 }
 0x271   : > { %v2604_v21 = vmax.f32 %v2542_v19, 0.0  ;;  %v2545_v49 = vadd.f32 %v4868_v27, %v2544_v37 }
 0x272   : > { %v3203_v24 = vpack.c.bf16 %v2606_v50, %v2606_v50  ;;  %v2607_v26 = vmax.f32 %v2553_v44, 0.0 }
 0x273   : > { %v3201_v56 = vpack.c.bf16 %v2604_v21, %v2604_v21  ;;  %v2605_v5 = vmax.f32 %v2545_v49, 0.0 }
 0x274   : > { %2687 = vst.msk [vmem:[%s3530_s28 + $0x8] sm:$0xf] %vm2684_vm12, %v3203_v24  ;;  %v4876_v43 = vpack.c.bf16 %v2607_v26, %v2606_v50  ;;  %v3204_v52 = vpack.c.bf16 %v2607_v26, %v2607_v26 }
 0x275   : > { %2685 = vst.msk [vmem:[%s3530_s28] sm:$0xf] %vm2684_vm12, %v3201_v56  ;;  %v4880_v16 = vpack.c.bf16 %v2605_v5, %v2604_v21  ;;  %v3202_v54 = vpack.c.bf16 %v2605_v5, %v2605_v5 }
 0x276   : > { %2688 = vst.msk [vmem:[%s3530_s28 + $0xc] sm:$0xf] %vm2684_vm12, %v3204_v52  ;;  %v2703_v7 = vunpack.c.l.bf16 %v4876_v43  ;;  %v2704_v6 = vunpack.c.h.bf16 %v4876_v43 }
 0x277   : > { %2686 = vst.msk [vmem:[%s3530_s28 + $0x4] sm:$0xf] %vm2684_vm12, %v3202_v54  ;;  %v2701_v8 = vunpack.c.l.bf16 %v4880_v16  ;;  %v2702_v12 = vunpack.c.h.bf16 %v4880_v16 }
 0x278   : > { %v2721_v36 = vsel %vm2717_vm13, %v2703_v7, 0.0  ;;  %v2723_v1 = vsel %vm2717_vm13, %v2704_v6, 0.0 }
 0x279   : > { %v2718_v55 = vsel %vm2717_vm13, %v2701_v8, 0.0  ;;  %v2719_v45 = vsel %vm2717_vm13, %v2702_v12, 0.0 }
 0x27a   : > { %v2720_v62 = vadd.f32 %v2719_v45, %v2718_v55 }
 0x27c   : > { %v2722_v14 = vadd.f32 %v2721_v36, %v2720_v62 }
 0x27e   : > { %v2724_v59 = vadd.f32 %v2723_v1, %v2722_v14 }
 0x28d   : > { %v3246_v4 = vpop.f32.mrb[4].mxu0 }
 0x28e   : > { %v2566_v33 = vadd.f32 %v3246_v4, %v4868_v27  ;;  %v2557_v29 = vpop.f32.mrb[5].mxu0 }
 0x28f   : > { %v2558_v34 = vadd.f32 %v4868_v27, %v2557_v29  ;;  %v3247_v15 = vpop.f32.mrb[6].mxu0 }
 0x290   : > { %v2610_v57 = vmax.f32 %v2566_v33, 0.0  ;;  %v2569_v63 = vadd.f32 %v3247_v15, %v4868_v27  ;;  %v2560_v22 = vpop.f32.mrb[7].mxu0 }
 0x291   : > { %v2608_v42 = vmax.f32 %v2558_v34, 0.0  ;;  %v2561_v23 = vadd.f32 %v4868_v27, %v2560_v22 }
 0x292   : > { %v3207_v38 = vpack.c.bf16 %v2610_v57, %v2610_v57  ;;  %v2611_v41 = vmax.f32 %v2569_v63, 0.0 }
 0x293   : > { %v3205_v39 = vpack.c.bf16 %v2608_v42, %v2608_v42  ;;  %v2609_v0 = vmax.f32 %v2561_v23, 0.0 }
 0x294   : > { %2691 = vst.msk [vmem:[%s3530_s28 + $0x18] sm:$0xf] %vm2684_vm12, %v3207_v38  ;;  %v4908_v47 = vpack.c.bf16 %v2611_v41, %v2610_v57  ;;  %v3208_v61 = vpack.c.bf16 %v2611_v41, %v2611_v41 }
 0x295   : > { %2689 = vst.msk [vmem:[%s3530_s28 + $0x10] sm:$0xf] %vm2684_vm12, %v3205_v39  ;;  %v4912_v28 = vpack.c.bf16 %v2609_v0, %v2608_v42  ;;  %v3206_v11 = vpack.c.bf16 %v2609_v0, %v2609_v0 }
 0x296   : > { %2692 = vst.msk [vmem:[%s3530_s28 + $0x1c] sm:$0xf] %vm2684_vm12, %v3208_v61  ;;  %v2707_v58 = vunpack.c.l.bf16 %v4908_v47  ;;  %v2708_v18 = vunpack.c.h.bf16 %v4908_v47 }
 0x297   : > { %2690 = vst.msk [vmem:[%s3530_s28 + $0x14] sm:$0xf] %vm2684_vm12, %v3206_v11  ;;  %v2705_v25 = vunpack.c.l.bf16 %v4912_v28  ;;  %v2706_v17 = vunpack.c.h.bf16 %v4912_v28 }
 0x298   : > { %v2729_v48 = vsel %vm2717_vm13, %v2707_v58, 0.0  ;;  %v2731_v51 = vsel %vm2717_vm13, %v2708_v18, 0.0 }
 0x299   : > { %v2725_v53 = vsel %vm2717_vm13, %v2705_v25, 0.0  ;;  %v2727_v31 = vsel %vm2717_vm13, %v2706_v17, 0.0 }
 0x29a   : > { %v2726_v40 = vadd.f32 %v2725_v53, %v2724_v59 }
 0x29c   : > { %v2728_v32 = vadd.f32 %v2727_v31, %v2726_v40 }
 0x29e   : > { %v2730_v35 = vadd.f32 %v2729_v48, %v2728_v32 }
 0x2a0   : > { %v2732_v13 = vadd.f32 %v2731_v51, %v2730_v35 }
 0x2ad   : > { %v3250_v30 = vpop.f32.mrb[0].mxu1 }
 0x2ae   : > { %v2582_v2 = vadd.f32 %v3250_v30, %v4868_v27  ;;  %v2573_v9 = vpop.f32.mrb[1].mxu1 }
 0x2af   : > { %v2574_v60 = vadd.f32 %v4868_v27, %v2573_v9  ;;  %v3251_v46 = vpop.f32.mrb[2].mxu1 }
 0x2b0   : > { %v2614_v3 = vmax.f32 %v2582_v2, 0.0  ;;  %v2585_v10 = vadd.f32 %v3251_v46, %v4868_v27  ;;  %v2576_v19 = vpop.f32.mrb[3].mxu1 }
 0x2b1   : > { %v2612_v20 = vmax.f32 %v2574_v60, 0.0  ;;  %v2577_v50 = vadd.f32 %v4868_v27, %v2576_v19 }
 0x2b2   : > { %v3211_v44 = vpack.c.bf16 %v2614_v3, %v2614_v3  ;;  %v2615_v37 = vmax.f32 %v2585_v10, 0.0 }
 0x2b3   : > { %v3209_v21 = vpack.c.bf16 %v2612_v20, %v2612_v20  ;;  %v2613_v49 = vmax.f32 %v2577_v50, 0.0 }
 0x2b4   : > { %2695 = vst.msk [vmem:[%s3530_s28 + $0x28] sm:$0xf] %vm2684_vm12, %v3211_v44  ;;  %v4940_v24 = vpack.c.bf16 %v2615_v37, %v2614_v3  ;;  %v3212_v26 = vpack.c.bf16 %v2615_v37, %v2615_v37 }
 0x2b5   : > { %2693 = vst.msk [vmem:[%s3530_s28 + $0x20] sm:$0xf] %vm2684_vm12, %v3209_v21  ;;  %v4944_v56 = vpack.c.bf16 %v2613_v49, %v2612_v20  ;;  %v3210_v5 = vpack.c.bf16 %v2613_v49, %v2613_v49 }
 0x2b6   : > { %2696 = vst.msk [vmem:[%s3530_s28 + $0x2c] sm:$0xf] %vm2684_vm12, %v3212_v26  ;;  %v2711_v55 = vunpack.c.l.bf16 %v4940_v24  ;;  %v2712_v36 = vunpack.c.h.bf16 %v4940_v24 }
 0x2b7   : > { %2694 = vst.msk [vmem:[%s3530_s28 + $0x24] sm:$0xf] %vm2684_vm12, %v3210_v5  ;;  %v2709_v52 = vunpack.c.l.bf16 %v4944_v56  ;;  %v2710_v54 = vunpack.c.h.bf16 %v4944_v56 }
 0x2b8   : > { %v2737_v59 = vsel %vm2717_vm13, %v2711_v55, 0.0  ;;  %v2739_v33 = vsel %vm2717_vm13, %v2712_v36, 0.0 }
 0x2b9   : > { %v2733_v45 = vsel %vm2717_vm13, %v2709_v52, 0.0  ;;  %v2735_v14 = vsel %vm2717_vm13, %v2710_v54, 0.0 }
 0x2ba   : > { %v2734_v62 = vadd.f32 %v2733_v45, %v2732_v13 }
 0x2bc   : > { %v2736_v1 = vadd.f32 %v2735_v14, %v2734_v62 }
 0x2be   : > { %v2738_v4 = vadd.f32 %v2737_v59, %v2736_v1 }
 0x2c0   : > { %v2740_v29 = vadd.f32 %v2739_v33, %v2738_v4 }
 0x2ca   : > { %v3254_v34 = vpop.f32.mrb[4].mxu1 }
 0x2cb   : > { %v2598_v15 = vadd.f32 %v3254_v34, %v4868_v27  ;;  %v2589_v57 = vpop.f32.mrb[5].mxu1 }
 0x2cc   : > { %v2590_v63 = vadd.f32 %v4868_v27, %v2589_v57  ;;  %v3255_v22 = vpop.f32.mrb[6].mxu1 }
 0x2cd   : > { %v2618_v42 = vmax.f32 %v2598_v15, 0.0  ;;  %v2601_v23 = vadd.f32 %v3255_v22, %v4868_v27  ;;  %v2592_v38 = vpop.f32.mrb[7].mxu1 }
 0x2ce   : > { %v2616_v41 = vmax.f32 %v2590_v63, 0.0  ;;  %v2593_v39 = vadd.f32 %v4868_v27, %v2592_v38 }
 0x2cf   : > { %v3215_v0 = vpack.c.bf16 %v2618_v42, %v2618_v42  ;;  %v2619_v61 = vmax.f32 %v2601_v23, 0.0 }
 0x2d0   : > { %v3213_v11 = vpack.c.bf16 %v2616_v41, %v2616_v41  ;;  %v2617_v53 = vmax.f32 %v2593_v39, 0.0 }
 0x2d1   : > { %2699 = vst.msk [vmem:[%s3530_s28 + $0x38] sm:$0xf] %vm2684_vm12, %v3215_v0  ;;  %v2627_v40 = vpack.c.bf16 %v2619_v61, %v2618_v42  ;;  %v3216_v31 = vpack.c.bf16 %v2619_v61, %v2619_v61 }
 0x2d2   : > { %2697 = vst.msk [vmem:[%s3530_s28 + $0x30] sm:$0xf] %vm2684_vm12, %v3213_v11  ;;  %v2626_v32 = vpack.c.bf16 %v2617_v53, %v2616_v41  ;;  %v3214_v48 = vpack.c.bf16 %v2617_v53, %v2617_v53 }
 0x2d3   : > { %2700 = vst.msk [vmem:[%s3530_s28 + $0x3c] sm:$0xf] %vm2684_vm12, %v3216_v31  ;;  %v2715_v13 = vunpack.c.l.bf16 %v2627_v40  ;;  %v2716_v2 = vunpack.c.h.bf16 %v2627_v40 }
 0x2d4   : > { %2698 = vst.msk [vmem:[%s3530_s28 + $0x34] sm:$0xf] %vm2684_vm12, %v3214_v48  ;;  %v2713_v35 = vunpack.c.l.bf16 %v2626_v32  ;;  %v2714_v51 = vunpack.c.h.bf16 %v2626_v32 }
 0x2d5   : > { %v2745_v46 = vsel %vm2717_vm13, %v2715_v13, 0.0  ;;  %v2747_v10 = vsel %vm2717_vm13, %v2716_v2, 0.0 }
 0x2d6   : > { %v2741_v27 = vsel %vm2717_vm13, %v2713_v35, 0.0  ;;  %v2743_v9 = vsel %vm2717_vm13, %v2714_v51, 0.0 }
 0x2d7   : > { %v2742_v30 = vadd.f32 %v2741_v27, %v2740_v29 }
 0x2d9   : > { %v2744_v60 = vadd.f32 %v2743_v9, %v2742_v30 }
 0x2db   : > { %v2746_v3 = vadd.f32 %v2745_v46, %v2744_v60 }
 0x2dd   : > { %v2748_v19 = vadd.f32 %v2747_v10, %v2746_v3 }
 0x2df   : > { %v2749_v20 = vrot.slane %v2748_v19, 4 }
 0x2e1   : > { %v2750_v50 = vadd.f32 %v2749_v20, %v2748_v19 }
 0x2e3   : > { %v2751_v44 = vrot.slane %v2750_v50, 2 }
 0x2e5   : > { %v2752_v37 = vadd.f32 %v2751_v44, %v2750_v50 }
 0x2e7   : > { %v2753_v21 = vrot.slane %v2752_v37, 1 }
 0x2e9   : > { %v2754_v49 = vadd.f32 %v2753_v21, %v2752_v37 }
 0x2eb   : > { %v4974_v24 = vmul.f32 0.0078125, %v2754_v49 }
 0x2ed   : > { %v2757_v26 = vsub.f32 %v2701_v8, %v4974_v24  ;;  %v2758_v56 = vsub.f32 %v2702_v12, %v4974_v24  ;;  %v2759_v5 = vsub.f32 %v2703_v7, %v4974_v24  ;;  %v2760_v45 = vsub.f32 %v2704_v6, %v4974_v24  ;;  %2830 = vst.msk [vmem:[%s3525_s14] sm:$0x1] (!%p3019_p7), %vm2829_vm14, %v4974_v24 }
 0x2ee   : > { %v2761_v62 = vsub.f32 %v2705_v25, %v4974_v24  ;;  %v2762_v8 = vsub.f32 %v2706_v17, %v4974_v24  ;;  %v2763_v16 = vsub.f32 %v2707_v58, %v4974_v24  ;;  %v2764_v7 = vsub.f32 %v2708_v18, %v4974_v24 }
 0x2ef   : > { %v2765_v12 = vsub.f32 %v2709_v52, %v4974_v24  ;;  %v2766_v43 = vsub.f32 %v2710_v54, %v4974_v24  ;;  %v2767_v6 = vsub.f32 %v2711_v55, %v4974_v24  ;;  %v2768_v25 = vsub.f32 %v2712_v36, %v4974_v24 }
 0x2f0   : > { %v2769_v14 = vsub.f32 %v2713_v35, %v4974_v24  ;;  %v2770_v28 = vsub.f32 %v2714_v51, %v4974_v24  ;;  %v2771_v17 = vsub.f32 %v2715_v13, %v4974_v24  ;;  %v2772_v58 = vsub.f32 %v2716_v2, %v4974_v24 }
 0x2f1   : > { %v2773_v1 = vmul.f32 %v2757_v26, %v2757_v26  ;;  %v2774_v59 = vmul.f32 %v2758_v56, %v2758_v56  ;;  %v2775_v47 = vmul.f32 %v2759_v5, %v2759_v5  ;;  %v2776_v18 = vmul.f32 %v2760_v45, %v2760_v45 }
 0x2f2   : > { %v2777_v55 = vmul.f32 %v2761_v62, %v2761_v62  ;;  %v2778_v29 = vmul.f32 %v2762_v8, %v2762_v8  ;;  %v2779_v57 = vmul.f32 %v2763_v16, %v2763_v16  ;;  %v2780_v42 = vmul.f32 %v2764_v7, %v2764_v7 }
 0x2f3   : > { %v2789_v52 = vsel %vm2717_vm13, %v2773_v1, 0.0  ;;  %v2790_v54 = vsel %vm2717_vm13, %v2774_v59, 0.0  ;;  %v2792_v36 = vsel %vm2717_vm13, %v2775_v47, 0.0  ;;  %v2794_v34 = vsel %vm2717_vm13, %v2776_v18, 0.0 }
 0x2f4   : > { %v2791_v4 = vadd.f32 %v2790_v54, %v2789_v52  ;;  %v2796_v63 = vsel %vm2717_vm13, %v2777_v55, 0.0  ;;  %v2798_v23 = vsel %vm2717_vm13, %v2778_v29, 0.0  ;;  %v2781_v41 = vmul.f32 %v2765_v12, %v2765_v12 }
 0x2f5   : > { %v2800_v39 = vsel %vm2717_vm13, %v2779_v57, 0.0  ;;  %v2782_v61 = vmul.f32 %v2766_v43, %v2766_v43  ;;  %v2802_v11 = vsel %vm2717_vm13, %v2780_v42, 0.0  ;;  %v2783_v40 = vmul.f32 %v2767_v6, %v2767_v6 }
 0x2f6   : > { %v2793_v33 = vadd.f32 %v2792_v36, %v2791_v4  ;;  %v2804_v31 = vsel %vm2717_vm13, %v2781_v41, 0.0  ;;  %v2784_v48 = vmul.f32 %v2768_v25, %v2768_v25  ;;  %v2785_v13 = vmul.f32 %v2769_v14, %v2769_v14 }
 0x2f7   : > { %v2806_v35 = vsel %vm2717_vm13, %v2782_v61, 0.0  ;;  %v2808_v27 = vsel %vm2717_vm13, %v2783_v40, 0.0  ;;  %v2786_v2 = vmul.f32 %v2770_v28, %v2770_v28  ;;  %v2787_v46 = vmul.f32 %v2771_v17, %v2771_v17 }
 0x2f8   : > { %v2795_v15 = vadd.f32 %v2794_v34, %v2793_v33  ;;  %v2810_v9 = vsel %vm2717_vm13, %v2784_v48, 0.0  ;;  %v2812_v3 = vsel %vm2717_vm13, %v2785_v13, 0.0  ;;  %v2788_v19 = vmul.f32 %v2772_v58, %v2772_v58 }
 0x2f9   : > { %v2814_v20 = vsel %vm2717_vm13, %v2786_v2, 0.0  ;;  %v2816_v44 = vsel %vm2717_vm13, %v2787_v46, 0.0 }
 0x2fa   : > { %v2797_v22 = vadd.f32 %v2796_v63, %v2795_v15  ;;  %v2818_v21 = vsel %vm2717_vm13, %v2788_v19, 0.0 }
 0x2fc   : > { %v2799_v38 = vadd.f32 %v2798_v23, %v2797_v22 }
 0x2fe   : > { %v2801_v0 = vadd.f32 %v2800_v39, %v2799_v38 }
 0x300   : > { %v2803_v53 = vadd.f32 %v2802_v11, %v2801_v0 }
 0x302   : > { %v2805_v32 = vadd.f32 %v2804_v31, %v2803_v53 }
 0x304   : > { %v2807_v51 = vadd.f32 %v2806_v35, %v2805_v32 }
 0x306   : > { %v2809_v30 = vadd.f32 %v2808_v27, %v2807_v51 }
 0x308   : > { %v2811_v60 = vadd.f32 %v2810_v9, %v2809_v30 }
 0x30a   : > { %v2813_v10 = vadd.f32 %v2812_v3, %v2811_v60 }
 0x30c   : > { %v2815_v50 = vadd.f32 %v2814_v20, %v2813_v10 }
 0x30e   : > { %v2817_v37 = vadd.f32 %v2816_v44, %v2815_v50 }
 0x310   : > { %v2819_v49 = vadd.f32 %v2818_v21, %v2817_v37 }
 0x312   : > { %v2820_v26 = vrot.slane %v2819_v49, 4 }
 0x314   : > { %v2821_v56 = vadd.f32 %v2820_v26, %v2819_v49 }
 0x316   : > { %v2822_v5 = vrot.slane %v2821_v56, 2  ;;  %2828 = sbr.rel (%p3019_p7) target bundleno = 799 (0x31f), region = 44 }
 0x318   : > { %v2823_v45 = vadd.f32 %v2822_v5, %v2821_v56 }
 0x31a   : > { %v2824_v62 = vrot.slane %v2823_v45, 1 }
 0x31c   : > { %v2825_v8 = vadd.f32 %v2824_v62, %v2823_v45 }
 0x31e   : > { %2831 = vst.msk [vmem:[%s3525_s14 + $0x1] sm:$0x1] %vm2829_vm14, %v2825_v8 }
 0x31f PF: > { %p3194_p8 = scmp.eq.s32.totalorder %s3421_s18, 0 }
 0x320   : > { %s3195_s28 = sshll.u32 (!%p3194_p8), %s3421_s18, 7  ;;  %v2839_v12 = vld [vmem:[%s3525_s14] sm:$0x1] (!%p3194_p8)  ;;  %vm2848_vm15 = vcmask (!%p3194_p8), 24576  }
 0x321   : > { %2835 = sbr.rel (%p3194_p8) target bundleno = 876 (0x36c), region = 48  ;;  %s2837_s29 = scvt.s32.f32 (!%p3194_p8), %s3195_s28  ;;  %v2840_v43 = vsub.f32 (!%p3194_p8), %v4974_v24, %v2839_v12 }
 0x323   : > { %s2838_s30 = sadd.f32 (!%p3194_p8), 128.0, %s2837_s29  ;;  %s2853_s8 = smul.f32 (!%p3194_p8), 128.0, %s2837_s29  ;;  %v2852_v25 = vmul.f32 (!%p3194_p8), %v2840_v43, %v2840_v43 }
 0x325   : > { %v2841_v16 = vstv (!%p3194_p8), %s2838_s30  ;;  %v2850_v6 = vld [vmem:[%s3525_s14 + $0x1] sm:$0x1] (!%p3194_p8) }
 0x326   : > { %3397 = vrcp.f32 (!%p3194_p8), %v2841_v16  ;;  %v2851_v28 = vadd.f32 (!%p3194_p8), %v2850_v6, %v2825_v8 }
 0x330   : > { %v3398_v7 = vpop.eup %3397 }
 0x331   : > { %3268 = vpush %v3398_v7 }
 0x362   : > { %s3269_s9 = spop %3268 }
 0x363   : > { %s2844_s10 = smul.f32 128.0, %s3269_s9 }
 0x364   : > { %s2857_s11 = smul.f32 %s3269_s9, %s2853_s8 }
 0x365   : > { %v2845_v14 = vstv %s2844_s10 }
 0x366   : > { %v2846_v17 = vmul.f32 %v2845_v14, %v2840_v43  ;;  %v2858_v58 = vstv %s2857_s11 }
 0x367   : > { %v2859_v1 = vmul.f32 %v2858_v58, %v2852_v25 }
 0x368   : > { %v2847_v59 = vadd.f32 %v2846_v17, %v2839_v12 }
 0x369   : > { %v2860_v47 = vadd.f32 %v2859_v1, %v2851_v28 }
 0x36a   : > { %2849 = vst.msk [vmem:[%s3525_s14] sm:$0x1] %vm2848_vm15, %v2847_v59 }
 0x36b   : > { %2861 = vst.msk [vmem:[%s3525_s14 + $0x1] sm:$0x1] %vm2848_vm15, %v2860_v47 }
 0x36c PF: > { %s16_s22 = sadd.s32 1, %s3437_s22   ;;  %s5086_s18 = smov %s3429_s20 }
 0x36d   : > { %p13_p9 = scmp.ge.s32.totalorder %s16_s22, 6   ;;  %s5087_s19 = smov %s3433_s21 }
 0x36e   : > { %s5088_s20 = smov %s5091_s23  ;;  %s5089_s21 = smov %s5095_s24 }
 0x36f   :  { %15 = sbr.rel (!%p13_p9) target bundleno = 3 (0x3), region = 98 }

</bundles_post_ra>
